<compile_context>
chip_gen: v6e
topology: v6e:2x2x1
jax: 0.10.0
libtpu: 0.0.40
codegen_flags: <defaults>
</compile_context>

<pallas_src>
import functools

import jax
import jax.numpy as jnp
from jax import lax
from jax.experimental import pallas as pl
from jax.experimental.pallas import tpu as pltpu

EXPANSION = 4
DROP_P = 0.3
BN_EPS = 1e-5
LANE = 128


def _round_up(c, m=LANE):
    return ((c + m - 1) // m) * m


def _block_kernel(*refs, Nb, H, W, training):
    """Processes Nb images per grid step, fully batched (no per-image Python loop).

    conv1(1x1)+bn1+relu -> padded VMEM scratch -> conv2(3x3) as one im2col matmul ->
    bn2 -> dropout -> relu -> conv3(1x1)+bn3 -> +residual -> relu -> lane-dense store.
    """
    if training:
        (x_ref, mask_ref, w1_ref, s1_ref, t1_ref, w2_ref, s2_ref, t2_ref,
         w3_ref, s3_ref, t3_ref, out_ref, h1pad_ref) = refs
    else:
        (x_ref, w1_ref, s1_ref, t1_ref, w2_ref, s2_ref, t2_ref,
         w3_ref, s3_ref, t3_ref, out_ref, h1pad_ref) = refs
        mask_ref = None

    HW = H * W
    M = Nb * HW
    Cm_p = w1_ref.shape[1]

    # Zero the padded conv1-output scratch each step (megacore-safe under
    # dimension_semantics="parallel"); its border ring is never written, so it
    # provides the exact zero padding that the 3x3 conv needs.
    h1pad_ref[...] = jnp.zeros_like(h1pad_ref)

    # ---- conv1 (1x1) + bn1 + relu, batched over all Nb images ------------------
    xin = x_ref[...]                                            # (Nb, H, W, Cin_p) f32
    xin2d = xin.reshape(M, xin.shape[-1])
    h1 = jnp.dot(xin2d.astype(jnp.bfloat16), w1_ref[...],
                 preferred_element_type=jnp.float32)
    h1 = jnp.maximum(h1 * s1_ref[...] + t1_ref[...], 0.0)       # (M, Cm_p) f32
    h1pad_ref[:, pl.ds(1, H), pl.ds(1, W), :] = h1.reshape(Nb, H, W, Cm_p)

    # ---- conv2 (3x3, stride 1, pad 1): single im2col matmul --------------------
    taps = []
    for ky in range(3):
        for kx in range(3):
            t = h1pad_ref[:, pl.ds(ky, H), pl.ds(kx, W), :]      # (Nb, H, W, Cm_p)
            taps.append(t.reshape(M, Cm_p).astype(jnp.bfloat16))
    im2col = jnp.concatenate(taps, axis=-1)                      # (M, 9*Cm_p) bf16
    h2 = jnp.dot(im2col, w2_ref[...], preferred_element_type=jnp.float32)

    # bn2 -> dropout (inverted, precomputed mask) -> relu
    h2 = h2 * s2_ref[...] + t2_ref[...]
    if training:
        h2 = h2 * mask_ref[...]
    h2 = jnp.maximum(h2, 0.0)

    # ---- conv3 (1x1) + bn3 + residual + relu ------------------------------------
    h3 = jnp.dot(h2.astype(jnp.bfloat16), w3_ref[...],
                 preferred_element_type=jnp.float32)
    h3 = h3 * s3_ref[...] + t3_ref[...]
    # Residual re-read (VMEM-resident input block) keeps f32 live ranges short.
    res = x_ref[...].reshape(M, h3.shape[-1])
    out_ref[...] = jnp.maximum(h3 + res, 0.0).astype(out_ref.dtype)


def _fold_bn(gamma, beta, mean, var, conv_bias, pad):
    """Fold conv bias + inference-mode BN into per-channel scale/shift (padded)."""
    s = gamma / jnp.sqrt(var + BN_EPS)
    t = beta - mean * s + conv_bias * s
    s = jnp.pad(s.astype(jnp.float32), (0, pad))
    t = jnp.pad(t.astype(jnp.float32), (0, pad))
    return s.reshape(1, -1), t.reshape(1, -1)


def resnet_block_drop(x_nchw, params, *, training=False, rng_key=None):
    """Forward of ResNetblockdrop. Input/output are NCHW (PyTorch convention)."""
    N, Cin, H, W = x_nchw.shape
    Cm = params["w1"].shape[1]
    Cout = EXPANSION * Cm
    assert Cin == Cout, (
        "identity residual requires in_channels == expansion * intermediate_channels")

    Cin_p, Cm_p, Cout_p = _round_up(Cin), _round_up(Cm), _round_up(Cout)
    Hp, Wp = H + 2, W + 2
    HW = H * W

    # ---- JAX glue: NCHW -> NHWC, pad channels to a lane multiple (no spatial pad).
    x = jnp.transpose(x_nchw, (0, 2, 3, 1)).astype(jnp.float32)
    x = jnp.pad(x, ((0, 0), (0, 0), (0, 0), (0, Cin_p - Cin)))   # (N, H, W, Cin_p)

    # ---- weights: channel-padded, bf16 for the MXU (accumulation stays f32).
    w1 = jnp.pad(params["w1"].astype(jnp.float32),
                 ((0, Cin_p - Cin), (0, Cm_p - Cm))).astype(jnp.bfloat16)
    w2 = jnp.pad(params["w2"].astype(jnp.float32),
                 ((0, 0), (0, 0), (0, Cm_p - Cm), (0, Cm_p - Cm)))
    w2 = w2.reshape(9 * Cm_p, Cm_p).astype(jnp.bfloat16)          # im2col layout
    w3 = jnp.pad(params["w3"].astype(jnp.float32),
                 ((0, Cm_p - Cm), (0, Cout_p - Cout))).astype(jnp.bfloat16)

    s1, t1 = _fold_bn(params["bn1_gamma"], params["bn1_beta"],
                      params["bn1_mean"], params["bn1_var"], params["b1"], Cm_p - Cm)
    s2, t2 = _fold_bn(params["bn2_gamma"], params["bn2_beta"],
                      params["bn2_mean"], params["bn2_var"], params["b2"], Cm_p - Cm)
    s3, t3 = _fold_bn(params["bn3_gamma"], params["bn3_beta"],
                      params["bn3_mean"], params["bn3_var"], params["b3"], Cout_p - Cout)

    # ---- batch blocking: biggest divisor of N fitting a VMEM budget while keeping
    # >=2 grid steps when possible (keeps both v7x TensorCores busy).
    per_img = (HW * Cin_p * 8 + HW * Cout_p * 8 +
               (HW * Cm_p * 8 if training else 0) +
               Hp * Wp * Cm_p * 4 + HW * 9 * Cm_p * 2 + 4 * HW * Cm_p * 4)
    budget = 8 * 1024 * 1024
    nb_cap = N // 2 if N >= 2 else 1
    Nb = 1
    for d in range(1, N + 1):
        if N % d == 0 and d <= nb_cap and d * per_img <= budget:
            Nb = d

    args = [x]
    in_specs = [pl.BlockSpec((Nb, H, W, Cin_p), lambda n: (n, 0, 0, 0))]
    if training:
        # Inverted-dropout mask precomputed with jax.random (kept out of the kernel
        # for portability across interpret/real-HW runs).
        key = rng_key if rng_key is not None else jax.random.PRNGKey(0)
        keep = jax.random.bernoulli(key, 1.0 - DROP_P, (N * HW, Cm))
        mask = keep.astype(jnp.float32) * (1.0 / (1.0 - DROP_P))
        mask = jnp.pad(mask, ((0, 0), (0, Cm_p - Cm)))            # (N*HW, Cm_p)
        args.append(mask)
        in_specs.append(pl.BlockSpec((Nb * HW, Cm_p), lambda n: (n, 0)))

    def const_spec(shape):
        r = len(shape)
        return pl.BlockSpec(shape, lambda n, _r=r: (0,) * _r)

    args += [w1, s1, t1, w2, s2, t2, w3, s3, t3]
    in_specs += [
        const_spec((Cin_p, Cm_p)),
        const_spec((1, Cm_p)), const_spec((1, Cm_p)),
        const_spec((9 * Cm_p, Cm_p)),
        const_spec((1, Cm_p)), const_spec((1, Cm_p)),
        const_spec((Cm_p, Cout_p)),
        const_spec((1, Cout_p)), const_spec((1, Cout_p)),
    ]

    kernel = functools.partial(_block_kernel, Nb=Nb, H=H, W=W, training=training)

    out = pl.pallas_call(
        kernel,
        out_shape=jax.ShapeDtypeStruct((N * HW, Cout_p), jnp.float32),
        grid=(N // Nb,),
        in_specs=in_specs,
        out_specs=pl.BlockSpec((Nb * HW, Cout_p), lambda n: (n, 0)),
        scratch_shapes=[pltpu.VMEM((Nb, Hp, Wp, Cm_p), jnp.float32)],
        compiler_params=pltpu.CompilerParams(
            dimension_semantics=("parallel",),
            vmem_limit_bytes=32 * 1024 * 1024,
        ),
    )(*args)

    # JAX glue: drop the channel padding, back to NCHW.
    out = out.reshape(N, H, W, Cout_p)[:, :, :, :Cout]
    return jnp.transpose(out, (0, 3, 1, 2))


def _reference_eval(x_nchw, params):
    """Pure-JAX (XLA) reference of the PyTorch forward in eval mode."""
    Cin, Cm = params["w1"].shape
    Cout = EXPANSION * Cm

    def conv(x, w_oihw, b, padding):
        y = lax.conv_general_dilated(
            x, w_oihw, window_strides=(1, 1), padding=padding,
            dimension_numbers=("NCHW", "OIHW", "NCHW"),
            precision=lax.Precision.HIGHEST)
        return y + b[None, :, None, None]

    def bn(x, g, be, m, v):
        inv = g / jnp.sqrt(v + BN_EPS)
        return (x - m[None, :, None, None]) * inv[None, :, None, None] + be[None, :, None, None]

    w1 = params["w1"].T.reshape(Cm, Cin, 1, 1)
    w2 = jnp.transpose(params["w2"], (3, 2, 0, 1))        # (kh,kw,ci,co) -> (co,ci,kh,kw)
    w3 = params["w3"].T.reshape(Cout, Cm, 1, 1)

    h = jax.nn.relu(bn(conv(x_nchw, w1, params["b1"], "VALID"),
                       params["bn1_gamma"], params["bn1_beta"],
                       params["bn1_mean"], params["bn1_var"]))
    h = conv(h, w2, params["b2"], [(1, 1), (1, 1)])
    h = jax.nn.relu(bn(h, params["bn2_gamma"], params["bn2_beta"],
                       params["bn2_mean"], params["bn2_var"]))
    h = bn(conv(h, w3, params["b3"], "VALID"),
           params["bn3_gamma"], params["bn3_beta"],
           params["bn3_mean"], params["bn3_var"])
    return jax.nn.relu(h + x_nchw)


def init_params(key, in_channels, intermediate_channels):
    """Deterministic synthetic parameters matching the PyTorch module's shapes."""
    Cm = intermediate_channels
    Cout = EXPANSION * Cm
    ks = jax.random.split(key, 12)

    def nrm(k, shape, scale=0.1):
        return scale * jax.random.normal(k, shape, dtype=jnp.float32)

    return {
        # conv1: PyTorch weight (Cm, Cin, 1, 1) stored here as (Cin, Cm)
        "w1": nrm(ks[0], (in_channels, Cm)),
        "b1": nrm(ks[1], (Cm,)),
        "bn1_gamma": 1.0 + nrm(ks[2], (Cm,)),
        "bn1_beta": nrm(ks[2], (Cm,)),
        "bn1_mean": nrm(ks[3], (Cm,)),
        "bn1_var": 1.0 + 0.1 * jax.random.uniform(ks[3], (Cm,), dtype=jnp.float32),
        # conv2: PyTorch weight (Cm, Cm, 3, 3) stored here as (kh, kw, ci, co)
        "w2": nrm(ks[4], (3, 3, Cm, Cm)),
        "b2": nrm(ks[5], (Cm,)),
        "bn2_gamma": 1.0 + nrm(ks[6], (Cm,)),
        "bn2_beta": nrm(ks[6], (Cm,)),
        "bn2_mean": nrm(ks[7], (Cm,)),
        "bn2_var": 1.0 + 0.1 * jax.random.uniform(ks[7], (Cm,), dtype=jnp.float32),
        # conv3: PyTorch weight (Cout, Cm, 1, 1) stored here as (Cm, Cout)
        "w3": nrm(ks[8], (Cm, Cout)),
        "b3": nrm(ks[9], (Cout,)),
        "bn3_gamma": 1.0 + nrm(ks[10], (Cout,)),
        "bn3_beta": nrm(ks[10], (Cout,)),
        "bn3_mean": nrm(ks[11], (Cout,)),
        "bn3_var": 1.0 + 0.1 * jax.random.uniform(ks[11], (Cout,), dtype=jnp.float32),
    }


if __name__ == "__main__":
    key = jax.random.PRNGKey(0)
    k_x, k_p, k_d = jax.random.split(key, 3)

    # Small shapes: batch=2, intermediate_channels=4 -> in_channels=16, spatial 16x16.
    N, Cm, H, W = 2, 4, 16, 16
    Cin = EXPANSION * Cm
    x = jax.random.normal(k_x, (N, Cin, H, W), dtype=jnp.float32)   # NCHW, like PyTorch
    params = init_params(k_p, Cin, Cm)

    # Eval mode (dropout = identity); compare against a pure-JAX reference.
    y_eval = jax.block_until_ready(resnet_block_drop(x, params, training=False))
    assert y_eval.shape == (N, Cin, H, W)
    assert bool(jnp.all(jnp.isfinite(y_eval)))
    assert bool(jnp.all(y_eval >= 0.0))                 # final ReLU
    ref = _reference_eval(x, params)
    max_err = float(jnp.max(jnp.abs(y_eval - ref)))
    assert max_err < 5e-2, f"mismatch vs reference: max abs err = {max_err}"

    # Training mode (inverted dropout with a caller-supplied key).
    y_train = jax.block_until_ready(
        resnet_block_drop(x, params, training=True, rng_key=k_d))
    assert y_train.shape == (N, Cin, H, W)
    assert bool(jnp.all(jnp.isfinite(y_train)))
    assert bool(jnp.all(y_train >= 0.0))

    print("KERNEL_OK")
</pallas_src>

<mosaic_0001>
module attributes {stable_mosaic.version = 11 : i64} {
  func.func @_block_kernel(%arg0: i32, %arg1: memref<1x16x16x128xf32, #tpu.memory_space<vmem>>, %arg2: memref<128x128xbf16, #tpu.memory_space<vmem>>, %arg3: memref<1x128xf32, #tpu.memory_space<vmem>>, %arg4: memref<1x128xf32, #tpu.memory_space<vmem>>, %arg5: memref<1152x128xbf16, #tpu.memory_space<vmem>>, %arg6: memref<1x128xf32, #tpu.memory_space<vmem>>, %arg7: memref<1x128xf32, #tpu.memory_space<vmem>>, %arg8: memref<128x128xbf16, #tpu.memory_space<vmem>>, %arg9: memref<1x128xf32, #tpu.memory_space<vmem>>, %arg10: memref<1x128xf32, #tpu.memory_space<vmem>>, %arg11: memref<256x128xf32, #tpu.memory_space<vmem>>, %arg12: memref<1x18x18x128xf32, #tpu.memory_space<vmem>>) attributes {dimension_semantics = [#tpu.dimension_semantics<parallel>], iteration_bounds = array<i64: 2>, scalar_prefetch = 0 : i64, scratch_operands = 1 : i64, tpu.core_type = #tpu.core_type<tc>, window_params = [{transform_indices = @transform_0, window_bounds = array<i64: 1, 16, 16, 128>}, {pipeline_mode = #tpu.pipeline_mode<synchronous>, transform_indices = @transform_1, window_bounds = array<i64: 128, 128>}, {pipeline_mode = #tpu.pipeline_mode<synchronous>, transform_indices = @transform_2, window_bounds = array<i64: 1, 128>}, {pipeline_mode = #tpu.pipeline_mode<synchronous>, transform_indices = @transform_3, window_bounds = array<i64: 1, 128>}, {pipeline_mode = #tpu.pipeline_mode<synchronous>, transform_indices = @transform_4, window_bounds = array<i64: 1152, 128>}, {pipeline_mode = #tpu.pipeline_mode<synchronous>, transform_indices = @transform_5, window_bounds = array<i64: 1, 128>}, {pipeline_mode = #tpu.pipeline_mode<synchronous>, transform_indices = @transform_6, window_bounds = array<i64: 1, 128>}, {pipeline_mode = #tpu.pipeline_mode<synchronous>, transform_indices = @transform_7, window_bounds = array<i64: 128, 128>}, {pipeline_mode = #tpu.pipeline_mode<synchronous>, transform_indices = @transform_8, window_bounds = array<i64: 1, 128>}, {pipeline_mode = #tpu.pipeline_mode<synchronous>, transform_indices = @transform_9, window_bounds = array<i64: 1, 128>}, {transform_indices = @transform_10, window_bounds = array<i64: 256, 128>}]} {
    %cst = arith.constant 0.000000e+00 : f32
    %0 = vector.broadcast %cst : f32 to vector<1x18x18x128xf32>
    %c0 = arith.constant 0 : index
    %c0_0 = arith.constant 0 : index
    %c0_1 = arith.constant 0 : index
    %c0_2 = arith.constant 0 : index
    %1 = vector.load %arg12[%c0, %c0_0, %c0_1, %c0_2] : memref<1x18x18x128xf32, #tpu.memory_space<vmem>>, vector<1x18x18x128xf32>
    tpu.vector_store %arg12[%c0, %c0_0, %c0_1, %c0_2], %0 {strides = array<i32>} : memref<1x18x18x128xf32, #tpu.memory_space<vmem>>, vector<1x18x18x128xf32>,
    %c0_3 = arith.constant 0 : index
    %c0_4 = arith.constant 0 : index
    %c0_5 = arith.constant 0 : index
    %c0_6 = arith.constant 0 : index
    %2 = vector.load %arg1[%c0_3, %c0_4, %c0_5, %c0_6] : memref<1x16x16x128xf32, #tpu.memory_space<vmem>>, vector<1x16x16x128xf32>
    %3 = vector.shape_cast %2 : vector<1x16x16x128xf32> to vector<256x128xf32>
    %4 = arith.truncf %3 : vector<256x128xf32> to vector<256x128xbf16>
    %c0_7 = arith.constant 0 : index
    %c0_8 = arith.constant 0 : index
    %5 = vector.load %arg2[%c0_7, %c0_8] : memref<128x128xbf16, #tpu.memory_space<vmem>>, vector<128x128xbf16>
    %cst_9 = arith.constant dense<0.000000e+00> : vector<256x128xf32>
    %6 = tpu.matmul %4, %5, %cst_9 {dimension_numbers = #tpu.dot_dimension_numbers<[1], [0], [0], [1], [0, 0, 1, 1], [], []>} : vector<256x128xbf16>, vector<128x128xbf16>, vector<256x128xf32> -> vector<256x128xf32>
    %c0_10 = arith.constant 0 : index
    %c0_11 = arith.constant 0 : index
    %7 = vector.load %arg3[%c0_10, %c0_11] : memref<1x128xf32, #tpu.memory_space<vmem>>, vector<1x128xf32>
    %8 = vector.broadcast %7 : vector<1x128xf32> to vector<256x128xf32>
    %9 = arith.mulf %6, %8 : vector<256x128xf32>
    %c0_12 = arith.constant 0 : index
    %c0_13 = arith.constant 0 : index
    %10 = vector.load %arg4[%c0_12, %c0_13] : memref<1x128xf32, #tpu.memory_space<vmem>>, vector<1x128xf32>
    %11 = vector.broadcast %10 : vector<1x128xf32> to vector<256x128xf32>
    %12 = arith.addf %9, %11 : vector<256x128xf32>
    %cst_14 = arith.constant 0.000000e+00 : f32
    %13 = vector.broadcast %cst_14 : f32 to vector<256x128xf32>
    %14 = arith.maximumf %12, %13 : vector<256x128xf32>
    %15 = vector.shape_cast %14 : vector<256x128xf32> to vector<1x16x16x128xf32>
    %c0_15 = arith.constant 0 : index
    %c1 = arith.constant 1 : index
    %c1_16 = arith.constant 1 : index
    %c0_17 = arith.constant 0 : index
    %16 = vector.load %arg12[%c0_15, %c1, %c1_16, %c0_17] : memref<1x18x18x128xf32, #tpu.memory_space<vmem>>, vector<1x16x16x128xf32>
    tpu.vector_store %arg12[%c0_15, %c1, %c1_16, %c0_17], %15 {strides = array<i32>} : memref<1x18x18x128xf32, #tpu.memory_space<vmem>>, vector<1x16x16x128xf32>,
    %c0_18 = arith.constant 0 : index
    %c0_19 = arith.constant 0 : index
    %c0_20 = arith.constant 0 : index
    %c0_21 = arith.constant 0 : index
    %17 = vector.load %arg12[%c0_18, %c0_19, %c0_20, %c0_21] : memref<1x18x18x128xf32, #tpu.memory_space<vmem>>, vector<1x16x16x128xf32>
    %18 = vector.shape_cast %17 : vector<1x16x16x128xf32> to vector<256x128xf32>
    %19 = arith.truncf %18 : vector<256x128xf32> to vector<256x128xbf16>
    %c0_22 = arith.constant 0 : index
    %c0_23 = arith.constant 0 : index
    %c1_24 = arith.constant 1 : index
    %c0_25 = arith.constant 0 : index
    %20 = vector.load %arg12[%c0_22, %c0_23, %c1_24, %c0_25] : memref<1x18x18x128xf32, #tpu.memory_space<vmem>>, vector<1x16x16x128xf32>
    %21 = vector.shape_cast %20 : vector<1x16x16x128xf32> to vector<256x128xf32>
    %22 = arith.truncf %21 : vector<256x128xf32> to vector<256x128xbf16>
    %c0_26 = arith.constant 0 : index
    %c0_27 = arith.constant 0 : index
    %c2 = arith.constant 2 : index
    %c0_28 = arith.constant 0 : index
    %23 = vector.load %arg12[%c0_26, %c0_27, %c2, %c0_28] : memref<1x18x18x128xf32, #tpu.memory_space<vmem>>, vector<1x16x16x128xf32>
    %24 = vector.shape_cast %23 : vector<1x16x16x128xf32> to vector<256x128xf32>
    %25 = arith.truncf %24 : vector<256x128xf32> to vector<256x128xbf16>
    %c0_29 = arith.constant 0 : index
    %c1_30 = arith.constant 1 : index
    %c0_31 = arith.constant 0 : index
    %c0_32 = arith.constant 0 : index
    %26 = vector.load %arg12[%c0_29, %c1_30, %c0_31, %c0_32] : memref<1x18x18x128xf32, #tpu.memory_space<vmem>>, vector<1x16x16x128xf32>
    %27 = vector.shape_cast %26 : vector<1x16x16x128xf32> to vector<256x128xf32>
    %28 = arith.truncf %27 : vector<256x128xf32> to vector<256x128xbf16>
    %c0_33 = arith.constant 0 : index
    %c1_34 = arith.constant 1 : index
    %c1_35 = arith.constant 1 : index
    %c0_36 = arith.constant 0 : index
    %29 = vector.load %arg12[%c0_33, %c1_34, %c1_35, %c0_36] : memref<1x18x18x128xf32, #tpu.memory_space<vmem>>, vector<1x16x16x128xf32>
    %30 = vector.shape_cast %29 : vector<1x16x16x128xf32> to vector<256x128xf32>
    %31 = arith.truncf %30 : vector<256x128xf32> to vector<256x128xbf16>
    %c0_37 = arith.constant 0 : index
    %c1_38 = arith.constant 1 : index
    %c2_39 = arith.constant 2 : index
    %c0_40 = arith.constant 0 : index
    %32 = vector.load %arg12[%c0_37, %c1_38, %c2_39, %c0_40] : memref<1x18x18x128xf32, #tpu.memory_space<vmem>>, vector<1x16x16x128xf32>
    %33 = vector.shape_cast %32 : vector<1x16x16x128xf32> to vector<256x128xf32>
    %34 = arith.truncf %33 : vector<256x128xf32> to vector<256x128xbf16>
    %c0_41 = arith.constant 0 : index
    %c2_42 = arith.constant 2 : index
    %c0_43 = arith.constant 0 : index
    %c0_44 = arith.constant 0 : index
    %35 = vector.load %arg12[%c0_41, %c2_42, %c0_43, %c0_44] : memref<1x18x18x128xf32, #tpu.memory_space<vmem>>, vector<1x16x16x128xf32>
    %36 = vector.shape_cast %35 : vector<1x16x16x128xf32> to vector<256x128xf32>
    %37 = arith.truncf %36 : vector<256x128xf32> to vector<256x128xbf16>
    %c0_45 = arith.constant 0 : index
    %c2_46 = arith.constant 2 : index
    %c1_47 = arith.constant 1 : index
    %c0_48 = arith.constant 0 : index
    %38 = vector.load %arg12[%c0_45, %c2_46, %c1_47, %c0_48] : memref<1x18x18x128xf32, #tpu.memory_space<vmem>>, vector<1x16x16x128xf32>
    %39 = vector.shape_cast %38 : vector<1x16x16x128xf32> to vector<256x128xf32>
    %40 = arith.truncf %39 : vector<256x128xf32> to vector<256x128xbf16>
    %c0_49 = arith.constant 0 : index
    %c2_50 = arith.constant 2 : index
    %c2_51 = arith.constant 2 : index
    %c0_52 = arith.constant 0 : index
    %41 = vector.load %arg12[%c0_49, %c2_50, %c2_51, %c0_52] : memref<1x18x18x128xf32, #tpu.memory_space<vmem>>, vector<1x16x16x128xf32>
    %42 = vector.shape_cast %41 : vector<1x16x16x128xf32> to vector<256x128xf32>
    %43 = arith.truncf %42 : vector<256x128xf32> to vector<256x128xbf16>
    %44 = tpu.concatenate %19, %22, %25, %28, %31, %34, %37, %40, %43 in 1 : vector<256x128xbf16>, vector<256x128xbf16>, vector<256x128xbf16>, vector<256x128xbf16>, vector<256x128xbf16>, vector<256x128xbf16>, vector<256x128xbf16>, vector<256x128xbf16>, vector<256x128xbf16> -> vector<256x1152xbf16>
    %c0_53 = arith.constant 0 : index
    %c0_54 = arith.constant 0 : index
    %45 = vector.load %arg5[%c0_53, %c0_54] : memref<1152x128xbf16, #tpu.memory_space<vmem>>, vector<1152x128xbf16>
    %cst_55 = arith.constant dense<0.000000e+00> : vector<256x128xf32>
    %46 = tpu.matmul %44, %45, %cst_55 {dimension_numbers = #tpu.dot_dimension_numbers<[1], [0], [0], [1], [0, 0, 1, 1], [], []>} : vector<256x1152xbf16>, vector<1152x128xbf16>, vector<256x128xf32> -> vector<256x128xf32>
    %c0_56 = arith.constant 0 : index
    %c0_57 = arith.constant 0 : index
    %47 = vector.load %arg6[%c0_56, %c0_57] : memref<1x128xf32, #tpu.memory_space<vmem>>, vector<1x128xf32>
    %48 = vector.broadcast %47 : vector<1x128xf32> to vector<256x128xf32>
    %49 = arith.mulf %46, %48 : vector<256x128xf32>
    %c0_58 = arith.constant 0 : index
    %c0_59 = arith.constant 0 : index
    %50 = vector.load %arg7[%c0_58, %c0_59] : memref<1x128xf32, #tpu.memory_space<vmem>>, vector<1x128xf32>
    %51 = vector.broadcast %50 : vector<1x128xf32> to vector<256x128xf32>
    %52 = arith.addf %49, %51 : vector<256x128xf32>
    %cst_60 = arith.constant 0.000000e+00 : f32
    %53 = vector.broadcast %cst_60 : f32 to vector<256x128xf32>
    %54 = arith.maximumf %52, %53 : vector<256x128xf32>
    %55 = arith.truncf %54 : vector<256x128xf32> to vector<256x128xbf16>
    %c0_61 = arith.constant 0 : index
    %c0_62 = arith.constant 0 : index
    %56 = vector.load %arg8[%c0_61, %c0_62] : memref<128x128xbf16, #tpu.memory_space<vmem>>, vector<128x128xbf16>
    %cst_63 = arith.constant dense<0.000000e+00> : vector<256x128xf32>
    %57 = tpu.matmul %55, %56, %cst_63 {dimension_numbers = #tpu.dot_dimension_numbers<[1], [0], [0], [1], [0, 0, 1, 1], [], []>} : vector<256x128xbf16>, vector<128x128xbf16>, vector<256x128xf32> -> vector<256x128xf32>
    %c0_64 = arith.constant 0 : index
    %c0_65 = arith.constant 0 : index
    %58 = vector.load %arg9[%c0_64, %c0_65] : memref<1x128xf32, #tpu.memory_space<vmem>>, vector<1x128xf32>
    %59 = vector.broadcast %58 : vector<1x128xf32> to vector<256x128xf32>
    %60 = arith.mulf %57, %59 : vector<256x128xf32>
    %c0_66 = arith.constant 0 : index
    %c0_67 = arith.constant 0 : index
    %61 = vector.load %arg10[%c0_66, %c0_67] : memref<1x128xf32, #tpu.memory_space<vmem>>, vector<1x128xf32>
    %62 = vector.broadcast %61 : vector<1x128xf32> to vector<256x128xf32>
    %63 = arith.addf %60, %62 : vector<256x128xf32>
    %c0_68 = arith.constant 0 : index
    %c0_69 = arith.constant 0 : index
    %c0_70 = arith.constant 0 : index
    %c0_71 = arith.constant 0 : index
    %64 = vector.load %arg1[%c0_68, %c0_69, %c0_70, %c0_71] : memref<1x16x16x128xf32, #tpu.memory_space<vmem>>, vector<1x16x16x128xf32>
    %65 = vector.shape_cast %64 : vector<1x16x16x128xf32> to vector<256x128xf32>
    %66 = arith.addf %63, %65 : vector<256x128xf32>
    %cst_72 = arith.constant 0.000000e+00 : f32
    %67 = vector.broadcast %cst_72 : f32 to vector<256x128xf32>
    %68 = arith.maximumf %66, %67 : vector<256x128xf32>
    %c0_73 = arith.constant 0 : index
    %c0_74 = arith.constant 0 : index
    %69 = vector.load %arg11[%c0_73, %c0_74] : memref<256x128xf32, #tpu.memory_space<vmem>>, vector<256x128xf32>
    tpu.vector_store %arg11[%c0_73, %c0_74], %68 {strides = array<i32>} : memref<256x128xf32, #tpu.memory_space<vmem>>, vector<256x128xf32>,
    return
  }
  func.func @transform_0(%arg0: i32) -> (i32, i32, i32, i32) {
    %c0_i32 = arith.constant 0 : i32
    %c0_i32_0 = arith.constant 0 : i32
    %c0_i32_1 = arith.constant 0 : i32
    %c0_i32_2 = arith.constant 0 : i32
    return %arg0, %c0_i32, %c0_i32_0, %c0_i32_1 : i32, i32, i32, i32
  }
  func.func @transform_1(%arg0: i32) -> (i32, i32) {
    %c0_i32 = arith.constant 0 : i32
    %c0_i32_0 = arith.constant 0 : i32
    %c0_i32_1 = arith.constant 0 : i32
    return %c0_i32, %c0_i32_0 : i32, i32
  }
  func.func @transform_2(%arg0: i32) -> (i32, i32) {
    %c0_i32 = arith.constant 0 : i32
    %c0_i32_0 = arith.constant 0 : i32
    %c0_i32_1 = arith.constant 0 : i32
    return %c0_i32, %c0_i32_0 : i32, i32
  }
  func.func @transform_3(%arg0: i32) -> (i32, i32) {
    %c0_i32 = arith.constant 0 : i32
    %c0_i32_0 = arith.constant 0 : i32
    %c0_i32_1 = arith.constant 0 : i32
    return %c0_i32, %c0_i32_0 : i32, i32
  }
  func.func @transform_4(%arg0: i32) -> (i32, i32) {
    %c0_i32 = arith.constant 0 : i32
    %c0_i32_0 = arith.constant 0 : i32
    %c0_i32_1 = arith.constant 0 : i32
    return %c0_i32, %c0_i32_0 : i32, i32
  }
  func.func @transform_5(%arg0: i32) -> (i32, i32) {
    %c0_i32 = arith.constant 0 : i32
    %c0_i32_0 = arith.constant 0 : i32
    %c0_i32_1 = arith.constant 0 : i32
    return %c0_i32, %c0_i32_0 : i32, i32
  }
  func.func @transform_6(%arg0: i32) -> (i32, i32) {
    %c0_i32 = arith.constant 0 : i32
    %c0_i32_0 = arith.constant 0 : i32
    %c0_i32_1 = arith.constant 0 : i32
    return %c0_i32, %c0_i32_0 : i32, i32
  }
  func.func @transform_7(%arg0: i32) -> (i32, i32) {
    %c0_i32 = arith.constant 0 : i32
    %c0_i32_0 = arith.constant 0 : i32
    %c0_i32_1 = arith.constant 0 : i32
    return %c0_i32, %c0_i32_0 : i32, i32
  }
  func.func @transform_8(%arg0: i32) -> (i32, i32) {
    %c0_i32 = arith.constant 0 : i32
    %c0_i32_0 = arith.constant 0 : i32
    %c0_i32_1 = arith.constant 0 : i32
    return %c0_i32, %c0_i32_0 : i32, i32
  }
  func.func @transform_9(%arg0: i32) -> (i32, i32) {
    %c0_i32 = arith.constant 0 : i32
    %c0_i32_0 = arith.constant 0 : i32
    %c0_i32_1 = arith.constant 0 : i32
    return %c0_i32, %c0_i32_0 : i32, i32
  }
  func.func @transform_10(%arg0: i32) -> (i32, i32) {
    %c0_i32 = arith.constant 0 : i32
    %c0_i32_0 = arith.constant 0 : i32
    return %arg0, %c0_i32 : i32, i32
  }
}

</mosaic_0001>

<bundles_post_ra>
// kernel: tpu_custom_call.1
= control target key start
LH: loop header
LB: loop body
LE: loop exit
PB: predicated region body
PF: predicated region fallthrough
CT: control target
= control target key end

     0   :  { %s5813_s0 = inlined_call_operand.hbm [shape: f32[2,16,16,128], index: 0, kind: input, shape index: {}]   ;;  %s5814_s1 = inlined_call_operand.hbm [shape: bf16[128,128], index: 1, kind: input, shape index: {}]   ;;  %s5815_s2 = inlined_call_operand.vmem [shape: f32[1,128], index: 2, kind: input, shape index: {}]   ;;  %s5816_s3 = inlined_call_operand.vmem [shape: f32[1,128], index: 3, kind: input, shape index: {}]   ;;  %s5817_s4 = inlined_call_operand.hbm [shape: bf16[1152,128], index: 4, kind: input, shape index: {}]   ;;  %s5818_s5 = inlined_call_operand.vmem [shape: f32[1,128], index: 5, kind: input, shape index: {}]   ;;  %s5819_s6 = inlined_call_operand.vmem [shape: f32[1,128], index: 6, kind: input, shape index: {}]   ;;  %s5820_s7 = inlined_call_operand.hbm [shape: bf16[128,128], index: 7, kind: input, shape index: {}]   ;;  %s5821_s8 = inlined_call_operand.vmem [shape: f32[1,128], index: 8, kind: input, shape index: {}]   ;;  %s5822_s9 = inlined_call_operand.vmem [shape: f32[1,128], index: 9, kind: input, shape index: {}]   ;;  %s5823_s10 = inlined_call_operand.hbm [shape: f32[512,128], index: 10, kind: output, shape index: {}]  }
   0x1   :  { %5828 = sst [smem:[#allocation43_spill]] %s5814_s1 }
   0x2   :  { %5829 = sst [smem:[#allocation44_spill]] %s5817_s4 }
   0x3   :  { %5830 = sst [smem:[#allocation45_spill]] %s5820_s7 }
   0x4   :  { %15 = vsyncpa [#allocation4], 0 }
   0x5   :  { %17 = vsyncpa [#allocation4 + $0x1], 0 }
   0x6   :  { %18 = vsyncpa [#allocation7], 0 }
   0x7   :  { %19 = vsyncpa [#allocation10], 0 }
   0x8   :  { %20 = vsyncpa [#allocation5], 0 }
   0x9   :  { %22 = vsyncpa [#allocation5 + $0x1], 0  ;;  %s4598_s13 = smov 0   ;;  %s4600_s14 = smov 0  }
   0xa   :  { %s4602_s15 = smov 0   ;;  %s4604_s16 = smov 0  }
   0xb LB: > { %s4619_s17 = sadd.s32 4294967295, %s4528_s16   ;;  %s3381_s18 = sadd.s32 4294967294, %s4528_s16   ;;  %s4528_s16 = sphi %s4604_s16, %s5907_s16   ;;  %s4524_s15 = sphi %s4602_s15, %s5906_s15   ;;  %s4520_s14 = sphi %s4600_s14, %s5905_s14   ;;  %s4516_s13 = sphi %s4598_s13, %s5904_s13  }
   0xc   : > { %p48_p0 = scmp.ne.s32.totalorder %s4520_s14, %s4516_s13  ;;  %p5824_p1 = scmp.eq.s32.totalorder %s4619_s17, 0 }
   0xd   : > { %p267_p3 = scmp.eq.s32.totalorder %s3381_s18, 1  ;;  %p3382_p5 = scmp.ge.s32.totalorder %s4528_s16, 1 }
   0xe   : > { %p4628_p4 = por %p5824_p1, %p48_p0  ;;  %p274_p7 = scmp.lt.s32.totalorder %s4528_s16, 3 }
   0xf   : > { %p4633_p6 = por %p267_p3, %p48_p0  ;;  %s4530_s22 = smov [#allocation6]  }
  0x10   : > { %s5831_s19 = scalar_select %p4628_p4, 1, 0 }
  0x11   : > { %s5832_s20 = scalar_select %p4633_p6, 1, 0 }
  0x12   : > { %p4638_p8 = pnand %p3382_p5, %p274_p7  ;;  %s286_s23 = sshll.u32 %s4530_s22, 4  ;;  %s287_s23 = int_to_ptr.vmem [resolvable:$true] %s286_s23 }
  0x13   : > { %s4531_s25 = smov [#allocation8]   ;;  %s4532_s27 = smov [#allocation9]  }
  0x14   : > { %s5833_s21 = scalar_select %p4638_p8, 1, 0 }
  0x15   : > { %p4193_p9 = pneg %p4638_p8  ;;  %s305_s26 = sshll.u32 %s4531_s25, 4  ;;  %s306_s26 = int_to_ptr.vmem [resolvable:$true] %s305_s26 }
  0x16   : > { %s324_s28 = sshll.u32 %s4532_s27, 4  ;;  %s4361_s29 = scalar_lea.vmem %s287_s23, 1024  ;;  %s325_s28 = int_to_ptr.vmem [resolvable:$true] %s324_s28 }
  0x17   : > { %p4647_p11 = pnand %p4193_p9, %p5824_p1  ;;  %p4362_p13 = scmp.ne.s32.totalorder %s287_s23, %s4361_s29 }
  0x18   : > { %p4369_p5 = scmp.lt.s32.totalorder %s287_s23, %s287_s23  ;;  %p4370_p7 = scmp.lt.s32.totalorder %s4361_s29, %s4361_s29 }
  0x19   : > { %p4352_p12 = pneg %p4647_p11 }
  0x1a   : > { %p4371_p9 = por %p4370_p7, %p4369_p5 }
  0x1b   : > { %p4364_p0 = pnand %p4362_p13, %p4352_p12 }
  0x1d   : > { %p4365_p3 = pneg %p4364_p0 }
  0x1f   : > { %p4372_p10 = pnand %p4371_p9, %p4365_p3 }
  0x21   : > { %4375 = shalt.err (!%p4372_p10)
}
  0x22   : > { %s4533_s30 = smov 64   ;;  %s4534_s11 = smov 4  }
  0x23   : > { %s5835_s1 = sld [smem:[#allocation43_spill]]  ;;  %s4387_s22 = scalar_lea.vmem %s306_s26, 9216 }
  0x24   : > { %p4388_p1 = scmp.ne.s32.totalorder %s306_s26, %s4387_s22  ;;  %p4395_p2 = scmp.lt.s32.totalorder %s306_s26, %s306_s26 }
  0x25   : > { %p4396_p6 = scmp.lt.s32.totalorder %s4387_s22, %s4387_s22 }
  0x26   : > { %p4390_p13 = pnand %p4388_p1, %p4352_p12 }
  0x27   : > { %p4397_p5 = por %p4396_p6, %p4395_p2 }
  0x28   : > { %p4391_p0 = pneg %p4390_p13 }
  0x29   : > { %4196 = dma.hbm_to_vmem [thread:$0]  (!%p4647_p11), %s5835_s1, 1024, %s287_s23, [#allocation7], %s4533_s30, %s4533_s30, %s4534_s11  }
  0x2a   : > { %p4398_p3 = pnand %p4397_p5, %p4391_p0 }
  0x2c   : > { %4401 = shalt.err (!%p4398_p3)
}
  0x2d   : > { %s5836_s4 = sld [smem:[#allocation44_spill]]  ;;  %s4413_s23 = scalar_lea.vmem %s325_s28, 1024 }
  0x2e   : > { %p4414_p10 = scmp.ne.s32.totalorder %s325_s28, %s4413_s23  ;;  %p4421_p9 = scmp.lt.s32.totalorder %s325_s28, %s325_s28 }
  0x2f   : > { %p4422_p13 = scmp.lt.s32.totalorder %s4413_s23, %s4413_s23 }
  0x30   : > { %p4416_p7 = pnand %p4414_p10, %p4352_p12 }
  0x31   : > { %p4423_p4 = por %p4422_p13, %p4421_p9 }
  0x32   : > { %p4417_p1 = pneg %p4416_p7 }
  0x33   : > { %4199 = dma.hbm_to_vmem [thread:$0]  (!%p4647_p11), %s5836_s4, 9216, %s306_s26, [#allocation7], %s4533_s30, %s4533_s30, %s4534_s11  }
  0x34   : > { %p4424_p2 = pnand %p4423_p4, %p4417_p1 }
  0x36   : > { %4427 = shalt.err (!%p4424_p2)
}
  0x37   : > { %s5837_s7 = sld [smem:[#allocation45_spill]]  ;;  %s4678_s26 = sadd.s32 1, %s4528_s16  }
  0x38   : > { %s32_s18 = ssub.s32 %s4528_s16, %s4678_s26  ;;  %s35_s24 = sadd.s32 1, %s4524_s15 }
  0x39   : > { %p33_p4 = scmp.eq.s32.totalorder %s32_s18, 0  ;;  %p42_p6 = scmp.ne.s32.totalorder %s4524_s15, %s4520_s14 }
  0x3a   : > { %p43_p12 = scmp.eq.s32.totalorder %s4528_s16, 0  ;;  %p4214_p0 = scmp.lt.s32.totalorder %s4528_s16, 2 }
  0x3b   : > { %s4688_s22 = scalar_select %p33_p4, %s4524_s15, %s35_s24  }
  0x3c   : > { %p44_p5 = por %p43_p12, %p42_p6  ;;  %p5839_p3 = scmp.eq.s32.totalorder %s4619_s17, 1 }
  0x3d   : > { %4202 = dma.hbm_to_vmem [thread:$0]  (!%p4647_p11), %s5837_s7, 1024, %s325_s28, [#allocation10], %s4533_s30, %s4533_s30, %s4534_s11  }
  0x3e   : > { %5838 = sst [smem:[#allocation16_spill]] %s4688_s22  ;;  %p4692_p10 = por %p5839_p3, %p42_p6 }
  0x3f   : > { %s344_s27 = sand.u32 1, %s4524_s15   ;;  %s3495_s23 = sshll.u32 %s4528_s16, 12 }
  0x40   : > { %s5840_s25 = scalar_select %p4692_p10, 1, 0 }
  0x41   : > { %s3387_s28 = sshll.u32 %s344_s27, 8  ;;  %s4701_s29 = scalar_lea.hbm %s5813_s0, %s3495_s23 }
  0x42   : > { %s348_s12 = scalar_lea.vmem [#allocation3], %s3387_s28  ;;  %p4703_p11 = pnand %p4214_p0, %p44_p5 }
  0x43   : > { %s355_s18 = sshll.u32 %s348_s12, 4  ;;  %s4709_s1 = scalar_lea.sflag [#allocation4], %s344_s27  ;;  %s4707_s18 = int_to_ptr.vmem [resolvable:$true] %s355_s18 }
  0x44   : > { %s4428_s4 = scalar_lea.hbm %s4701_s29, 4096  ;;  %p4430_p1 = pneg %p4703_p11 }
  0x45   : > { %p4429_p7 = scmp.ne.s32.totalorder %s4701_s29, %s4428_s4  ;;  %s4433_s28 = scalar_lea.hbm %s5813_s0, 8192 }
  0x46   : > { %p4434_p2 = scmp.lt.s32.totalorder %s4701_s29, %s5813_s0  ;;  %p4435_p4 = scmp.lt.s32.totalorder %s4433_s28, %s4428_s4 }
  0x47   : > { %p4431_p9 = pnand %p4430_p1, %p4429_p7 }
  0x48   : > { %p4436_p6 = por %p4435_p4, %p4434_p2 }
  0x49   : > { %p4432_p13 = pneg %p4431_p9 }
  0x4b   : > { %p4437_p12 = pnand %p4436_p6, %p4432_p13 }
  0x4d   : > { %4440 = shalt.err (!%p4437_p12)
}
  0x4e   : > { %s4441_s27 = scalar_lea.vmem %s4707_s18, 4096  ;;  %s4535_s7 = smov [#allocation3]  }
  0x4f   : > { %p4442_p0 = scmp.ne.s32.totalorder %s4707_s18, %s4441_s27  ;;  %s4446_s22 = sshll.u32 %s4535_s7, 4  ;;  %s4447_s22 = int_to_ptr.vmem [resolvable:$false] %s4446_s22 }
  0x50   : > { %s4448_s23 = scalar_lea.vmem %s4447_s22, 8192  ;;  %p4449_p7 = scmp.lt.s32.totalorder %s4707_s18, %s4447_s22 }
  0x51   : > { %p4444_p5 = pnand %p4442_p0, %p4430_p1  ;;  %p4450_p9 = scmp.lt.s32.totalorder %s4448_s23, %s4441_s27 }
  0x53   : > { %p4445_p3 = pneg %p4444_p5  ;;  %p4451_p10 = por %p4450_p9, %p4449_p7 }
  0x55   : > { %p4452_p8 = pnand %p4451_p10, %p4445_p3 }
  0x57   : > { %4455 = shalt.err (!%p4452_p8)
}
  0x58   : > { %s4536_s4 = smov 128   ;;  %s4537_s30 = smov 8  }
  0x59   : > { %4206 = dma.hbm_to_vmem [thread:$0]  (!%p4703_p11), %s4701_s29, 4096, %s4707_s18, %s4709_s1, %s4536_s4, %s4536_s4, %s4537_s30  }
  0x5a   : > { %p5842_p1 = scmp.ne.s32.totalorder %s5833_s21, 0 }
  0x5c   : > { %367 = sbr.rel (%p5842_p1) target bundleno = 1090 (0x442), region = 60 }
  0x61   : > { %s4733_s7 = sand.u32 1, %s4520_s14   ;;  %p5843_p8 = scmp.ne.s32.totalorder %s5831_s19, 0 }
  0x62   : > { %s3391_s22 = sshll.u32 %s4733_s7, 8  ;;  %s370_s28 = scalar_lea.sflag [#allocation4], %s4733_s7 }
  0x63   : > { %s4739_s11 = scalar_lea.vmem [#allocation3], %s3391_s22 }
  0x64   : > { %4499 = dma.done.wait (%p5843_p8), %s370_s28, 4096  }
  0x65   : > { %4501 = vsyncadd (%p5843_p8), %s370_s28, 4294963200  ;;  %p5844_p10 = scmp.eq.s32.totalorder %s4619_s17, 0 }
  0x67   : > { %4503 = dma.done.wait (%p5844_p10), [#allocation7], 10240   ;;  %p5845_p11 = pmov %p5844_p10 }
  0x68   : > { %p5846_p13 = pmov %p5844_p10 }
  0x69   : > { %4505 = vsyncadd (%p5845_p11), [#allocation7], 4294957056 }
  0x6a   : > { %4507 = dma.done.wait (%p5846_p13), [#allocation10], 1024   ;;  %p5847_p2 = pmov %p5844_p10 }
  0x6b   : > { %v4538_v0 = vmov 0.0   ;;  %v4261_v1 = vld [vmem:[#allocation6 + $0x38] sm:$0xff]   ;;  %v4262_v2 = vld [vmem:[#allocation6 + $0x30] sm:$0xff]   ;;  %v4263_v3 = vld [vmem:[#allocation6 + $0x28] sm:$0xff]   ;;  %s5644_s1 = scalar_lea.vmem [#allocation11], %s3391_s22  ;;  %s3496_s22 = sshll.u32 %s4619_s17, 12 }
  0x6c   : > { %4509 = vsyncadd (%p5847_p2), [#allocation10], 4294966272  ;;  %430 = vst [vmem:[#allocation2 + $0x30] sm:$0xff] %v4538_v0  ;;  %4017 = vmatprep.subr.bf16.mxu0 %v4261_v1  ;;  %4161 = vmatprep.subr.bf16.mxu1 %v4261_v1  ;;  %v4264_v4 = vld [vmem:[#allocation6 + $0x20] sm:$0xff]   ;;  %v479_v6 = vld [vmem:[%s4739_s11 + $0x8] sm:$0xff]  ;;  %s3279_s19 = sshll.u32 %s5644_s1, 4  ;;  %s5766_s18 = scalar_lea.hbm %s5823_s10, %s3496_s22  ;;  %s5768_s19 = int_to_ptr.vmem [resolvable:$true] %s3279_s19 }
  0x6d   : > { %431 = vst [vmem:[#allocation2 + $0x38] sm:$0xff] %v4538_v0  ;;  %424 = vst [vmem:[#allocation2] sm:$0xff] %v4538_v0  ;;  %4018 = vmatpush3.bf16.msra.mxu0 %v4261_v1  ;;  %4169 = vmatpush3.bf16.msra.mxu1 %v4261_v1  ;;  %v478_v5 = vld [vmem:[%s4739_s11] sm:$0xff]  ;;  %v4265_v8 = vld [vmem:[#allocation6 + $0x18] sm:$0xff]   ;;  %s4456_s24 = scalar_lea.vmem %s5768_s19, 4096  ;;  %p5900_p6 = scmp.ne.s32.totalorder %s5840_s25, 0 }
  0x6e   : > { %425 = vst [vmem:[#allocation2 + $0x8] sm:$0xff] %v4538_v0  ;;  %426 = vst [vmem:[#allocation2 + $0x10] sm:$0x3] %v4538_v0  ;;  %4019 = vmatprep.subr.bf16.mxu0 %v4262_v2  ;;  %4162 = vmatprep.subr.bf16.mxu1 %v4262_v2  ;;  %v510_v7 = vpack.c.bf16 %v479_v6, %v478_v5  ;;  %v494_v9 = vld [vmem:[%s4739_s11 + $0x80] sm:$0xff]  ;;  %v495_v10 = vld [vmem:[%s4739_s11 + $0x88] sm:$0xff]  ;;  %p4457_p4 = scmp.ne.s32.totalorder %s5768_s19, %s4456_s24  ;;  %s4540_s17 = smov [#allocation11]  }
  0x6f   : > { %427 = vst [vmem:[#allocation2 + $0x18] sm:$0xff] %v4538_v0  ;;  %428 = vst [vmem:[#allocation2 + $0x20] sm:$0xff] %v4538_v0  ;;  %v518_v11 = vpack.c.bf16 %v495_v10, %v494_v9  ;;  %v4266_v12 = vld [vmem:[#allocation6 + $0x10] sm:$0xff]   ;;  %v4267_v13 = vld [vmem:[#allocation6 + $0x8] sm:$0xff]   ;;  %s4460_s12 = sshll.u32 %s4540_s17, 4  ;;  %s4461_s12 = int_to_ptr.vmem [resolvable:$false] %s4460_s12 }
  0x70   : > { %429 = vst [vmem:[#allocation2 + $0x28] sm:$0x3] %v4538_v0  ;;  %432 = vst [vmem:[#allocation2 + $0x40] sm:$0x3] %v4538_v0  ;;  %4033 = vmatprep.mubr.bf16.mxu0 %v510_v7  ;;  %v4268_v14 = vld [vmem:[#allocation6] sm:$0xff]   ;;  %v480_v15 = vld [vmem:[%s4739_s11 + $0x10] sm:$0xff]  ;;  %p4458_p12 = pnand %p4457_p4, %p5900_p6  ;;  %p4463_p5 = scmp.lt.s32.totalorder %s5768_s19, %s4461_s12 }
  0x71   : > { %433 = vst [vmem:[#allocation2 + $0x48] sm:$0xff] %v4538_v0  ;;  %434 = vst [vmem:[#allocation2 + $0x50] sm:$0xff] %v4538_v0  ;;  %4020 = vmatpush3.bf16.msra.mxu0 %v4262_v2  ;;  %4170 = vmatpush3.bf16.msra.mxu1 %v4262_v2  ;;  %v481_v16 = vld [vmem:[%s4739_s11 + $0x18] sm:$0xff]  ;;  %v482_v17 = vld [vmem:[%s4739_s11 + $0x20] sm:$0xff]  ;;  %s4462_s27 = scalar_lea.vmem %s4461_s12, 8192 }
  0x72   : > { %435 = vst [vmem:[#allocation2 + $0x58] sm:$0x3] %v4538_v0  ;;  %436 = vst [vmem:[#allocation2 + $0x60] sm:$0xff] %v4538_v0  ;;  %4021 = vmatprep.subr.bf16.mxu0 %v4263_v3  ;;  %4163 = vmatprep.subr.bf16.mxu1 %v4263_v3  ;;  %v483_v18 = vld [vmem:[%s4739_s11 + $0x28] sm:$0xff]  ;;  %v496_v19 = vld [vmem:[%s4739_s11 + $0x90] sm:$0xff]  ;;  %v511_v25 = vpack.c.bf16 %v481_v16, %v480_v15  ;;  %p4459_p0 = pneg %p4458_p12  ;;  %p4464_p3 = scmp.lt.s32.totalorder %s4462_s27, %s4456_s24 }
  0x73   : > { %437 = vst [vmem:[#allocation2 + $0x68] sm:$0xff] %v4538_v0  ;;  %438 = vst [vmem:[#allocation2 + $0x70] sm:$0x3] %v4538_v0  ;;  %4049 = vmatprep.mubr.bf16.mxu1 %v518_v11  ;;  %v497_v20 = vld [vmem:[%s4739_s11 + $0x98] sm:$0xff]  ;;  %v498_v21 = vld [vmem:[%s4739_s11 + $0xa0] sm:$0xff]  ;;  %v512_v26 = vpack.c.bf16 %v483_v18, %v482_v17 }
  0x74   : > { %439 = vst [vmem:[#allocation2 + $0x78] sm:$0xff] %v4538_v0  ;;  %440 = vst [vmem:[#allocation2 + $0x80] sm:$0xff] %v4538_v0  ;;  %v499_v22 = vld [vmem:[%s4739_s11 + $0xa8] sm:$0xff]  ;;  %v4277_v23 = vld [vmem:[#allocation8 + $0xf8] sm:$0xff]   ;;  %v519_v27 = vpack.c.bf16 %v497_v20, %v496_v19  ;;  %p4465_p7 = por %p4464_p3, %p4463_p5 }
  0x75   : > { %441 = vst [vmem:[#allocation2 + $0x88] sm:$0x3] %v4538_v0  ;;  %442 = vst [vmem:[#allocation2 + $0x90] sm:$0xff] %v4538_v0  ;;  %4022 = vmatpush3.bf16.msra.mxu0 %v4263_v3  ;;  %4171 = vmatpush3.bf16.msra.mxu1 %v4263_v3  ;;  %v4269_v24 = vld [vmem:[#allocation8 + $0x78] sm:$0xff]   ;;  %v520_v29 = vpack.c.bf16 %v499_v22, %v498_v21  ;;  %v4271_v30 = vld [vmem:[#allocation8 + $0x70] sm:$0xff]   ;;  %v4539_v22 = vmov 0.0|0.0  }
  0x76   : > { %443 = vst [vmem:[#allocation2 + $0x98] sm:$0xff] %v4538_v0  ;;  %444 = vst [vmem:[#allocation2 + $0xa0] sm:$0x3] %v4538_v0  ;;  %4023 = vmatprep.subr.bf16.mxu0 %v4264_v4  ;;  %4164 = vmatprep.subr.bf16.mxu1 %v4264_v4  ;;  %v4270_v28 = vld [vmem:[#allocation8 + $0x38] sm:$0xff]   ;;  %v484_v31 = vld [vmem:[%s4739_s11 + $0x30] sm:$0xff]  ;;  %p4466_p9 = pnand %p4465_p7, %p4459_p0 }
  0x77   : > { %445 = vst [vmem:[#allocation2 + $0xa8] sm:$0xff] %v4538_v0  ;;  %446 = vst [vmem:[#allocation2 + $0xb0] sm:$0xff] %v4538_v0  ;;  %v485_v32 = vld [vmem:[%s4739_s11 + $0x38] sm:$0xff]  ;;  %v486_v34 = vld [vmem:[%s4739_s11 + $0x40] sm:$0xff] }
  0x78   : > { %447 = vst [vmem:[#allocation2 + $0xb8] sm:$0x3] %v4538_v0  ;;  %448 = vst [vmem:[#allocation2 + $0xc0] sm:$0xff] %v4538_v0  ;;  %v4278_v33 = vld [vmem:[#allocation8 + $0xb8] sm:$0xff]   ;;  %v487_v35 = vld [vmem:[%s4739_s11 + $0x48] sm:$0xff]  ;;  %v513_v44 = vpack.c.bf16 %v485_v32, %v484_v31 }
  0x79   : > { %449 = vst [vmem:[#allocation2 + $0xc8] sm:$0xff] %v4538_v0  ;;  %450 = vst [vmem:[#allocation2 + $0xd0] sm:$0x3] %v4538_v0  ;;  %4024 = vmatpush3.bf16.msra.mxu0 %v4264_v4  ;;  %4172 = vmatpush3.bf16.msra.mxu1 %v4264_v4  ;;  %v500_v36 = vld [vmem:[%s4739_s11 + $0xb0] sm:$0xff]  ;;  %v501_v37 = vld [vmem:[%s4739_s11 + $0xb8] sm:$0xff]  ;;  %v514_v46 = vpack.c.bf16 %v487_v35, %v486_v34 }
  0x7a   : > { %451 = vst [vmem:[#allocation2 + $0xd8] sm:$0xff] %v4538_v0  ;;  %452 = vst [vmem:[#allocation2 + $0xe0] sm:$0xff] %v4538_v0  ;;  %4025 = vmatprep.subr.bf16.mxu0 %v4265_v8  ;;  %4165 = vmatprep.subr.bf16.mxu1 %v4265_v8  ;;  %v4272_v38 = vld [vmem:[#allocation8 + $0x30] sm:$0xff]   ;;  %v502_v40 = vld [vmem:[%s4739_s11 + $0xc0] sm:$0xff]  ;;  %v521_v47 = vpack.c.bf16 %v501_v37, %v500_v36 }
  0x7b   : > { %453 = vst [vmem:[#allocation2 + $0xe8] sm:$0x3] %v4538_v0  ;;  %454 = vst [vmem:[#allocation2 + $0xf0] sm:$0xff] %v4538_v0  ;;  %v4281_v39 = vld [vmem:[#allocation8 + $0xf0] sm:$0xff]   ;;  %v503_v41 = vld [vmem:[%s4739_s11 + $0xc8] sm:$0xff] }
  0x7c   : > { %455 = vst [vmem:[#allocation2 + $0xf8] sm:$0xff] %v4538_v0  ;;  %456 = vst [vmem:[#allocation2 + $0x100] sm:$0x3] %v4538_v0  ;;  %v4273_v42 = vld [vmem:[#allocation8 + $0x68] sm:$0xff]   ;;  %v4282_v43 = vld [vmem:[#allocation8 + $0xb0] sm:$0xff]   ;;  %v522_v49 = vpack.c.bf16 %v503_v41, %v502_v40 }
  0x7d   : > { %457 = vst [vmem:[#allocation2 + $0x108] sm:$0xff] %v4538_v0  ;;  %458 = vst [vmem:[#allocation2 + $0x110] sm:$0xff] %v4538_v0  ;;  %4026 = vmatpush3.bf16.msra.mxu0 %v4265_v8  ;;  %4173 = vmatpush3.bf16.msra.mxu1 %v4265_v8  ;;  %v4274_v45 = vld [vmem:[#allocation8 + $0x28] sm:$0xff]   ;;  %v4275_v48 = vld [vmem:[#allocation8 + $0x60] sm:$0xff]  }
  0x7e   : > { %459 = vst [vmem:[#allocation2 + $0x118] sm:$0x3] %v4538_v0  ;;  %460 = vst [vmem:[#allocation2 + $0x120] sm:$0xff] %v4538_v0  ;;  %4027 = vmatprep.subr.bf16.mxu0 %v4266_v12  ;;  %4166 = vmatprep.subr.bf16.mxu1 %v4266_v12  ;;  %v488_v50 = vld [vmem:[%s4739_s11 + $0x50] sm:$0xff]  ;;  %v489_v51 = vld [vmem:[%s4739_s11 + $0x58] sm:$0xff] }
  0x7f   : > { %461 = vst [vmem:[#allocation2 + $0x128] sm:$0xff] %v4538_v0  ;;  %462 = vst [vmem:[#allocation2 + $0x130] sm:$0x3] %v4538_v0  ;;  %v490_v52 = vld [vmem:[%s4739_s11 + $0x60] sm:$0xff]  ;;  %v491_v53 = vld [vmem:[%s4739_s11 + $0x68] sm:$0xff]  ;;  %v515_v60 = vpack.c.bf16 %v489_v51, %v488_v50 }
  0x80   : > { %463 = vst [vmem:[#allocation2 + $0x138] sm:$0xff] %v4538_v0  ;;  %464 = vst [vmem:[#allocation2 + $0x140] sm:$0xff] %v4538_v0  ;;  %v504_v54 = vld [vmem:[%s4739_s11 + $0xd0] sm:$0xff]  ;;  %v505_v55 = vld [vmem:[%s4739_s11 + $0xd8] sm:$0xff]  ;;  %v516_v62 = vpack.c.bf16 %v491_v53, %v490_v52 }
  0x81   : > { %465 = vst [vmem:[#allocation2 + $0x148] sm:$0x3] %v4538_v0  ;;  %466 = vst [vmem:[#allocation2 + $0x150] sm:$0xff] %v4538_v0  ;;  %4028 = vmatpush3.bf16.msra.mxu0 %v4266_v12  ;;  %4174 = vmatpush3.bf16.msra.mxu1 %v4266_v12  ;;  %v4276_v56 = vld [vmem:[#allocation8 + $0x20] sm:$0xff]   ;;  %v507_v58 = vld [vmem:[%s4739_s11 + $0xe8] sm:$0xff]  ;;  %v523_v63 = vpack.c.bf16 %v505_v55, %v504_v54 }
  0x82   : > { %467 = vst [vmem:[#allocation2 + $0x158] sm:$0xff] %v4538_v0  ;;  %468 = vst [vmem:[#allocation2 + $0x160] sm:$0x3] %v4538_v0  ;;  %4029 = vmatprep.subr.bf16.mxu0 %v4267_v13  ;;  %4167 = vmatprep.subr.bf16.mxu1 %v4267_v13  ;;  %v506_v57 = vld [vmem:[%s4739_s11 + $0xe0] sm:$0xff]  ;;  %v4279_v59 = vld [vmem:[#allocation8 + $0x58] sm:$0xff]  }
  0x83   : > { %469 = vst [vmem:[#allocation2 + $0x168] sm:$0xff] %v4538_v0  ;;  %470 = vst [vmem:[#allocation2 + $0x170] sm:$0xff] %v4538_v0  ;;  %v4280_v61 = vld [vmem:[#allocation8 + $0x18] sm:$0xff]   ;;  %v524_v1 = vpack.c.bf16 %v507_v58, %v506_v57  ;;  %v492_v2 = vld [vmem:[%s4739_s11 + $0x70] sm:$0xff] }
  0x84   : > { %471 = vst [vmem:[#allocation2 + $0x178] sm:$0x3] %v4538_v0  ;;  %472 = vst [vmem:[#allocation2 + $0x180] sm:$0xff] %v4538_v0  ;;  %v493_v3 = vld [vmem:[%s4739_s11 + $0x78] sm:$0xff]  ;;  %v508_v4 = vld [vmem:[%s4739_s11 + $0xf0] sm:$0xff] }
  0x85   : > { %473 = vst [vmem:[#allocation2 + $0x188] sm:$0xff] %v4538_v0  ;;  %474 = vst [vmem:[#allocation2 + $0x190] sm:$0x3] %v4538_v0  ;;  %4030 = vmatpush3.bf16.msra.mxu0 %v4267_v13  ;;  %4175 = vmatpush3.bf16.msra.mxu1 %v4267_v13  ;;  %v509_v5 = vld [vmem:[%s4739_s11 + $0xf8] sm:$0xff]  ;;  %v4284_v6 = vld [vmem:[#allocation8 + $0x10] sm:$0xff]   ;;  %v517_v7 = vpack.c.bf16 %v493_v3, %v492_v2 }
  0x86   : > { %475 = vst [vmem:[#allocation2 + $0x198] sm:$0xff] %v4538_v0  ;;  %476 = vst [vmem:[#allocation2 + $0x1a0] sm:$0xff] %v4538_v0  ;;  %4031 = vmatprep.subr.bf16.mxu0 %v4268_v14  ;;  %4168 = vmatprep.subr.bf16.mxu1 %v4268_v14  ;;  %v525_v8 = vpack.c.bf16 %v509_v5, %v508_v4  ;;  %v4285_v9 = vld [vmem:[#allocation8 + $0xe8] sm:$0xff]   ;;  %v4289_v13 = vld [vmem:[#allocation8 + $0xe0] sm:$0xff]  }
  0x87   : > { %477 = vst [vmem:[#allocation2 + $0x1a8] sm:$0x3] %v4538_v0  ;;  %v4283_v0 = vld [vmem:[#allocation8 + $0x50] sm:$0xff]   ;;  %v4286_v10 = vld [vmem:[#allocation8 + $0xa8] sm:$0xff]   ;;  %v4291_v15 = vld [vmem:[#allocation8 + $0x40] sm:$0xff]  }
  0x88   : > { %v4287_v11 = vld [vmem:[#allocation8 + $0x48] sm:$0xff]   ;;  %v4292_v16 = vld [vmem:[#allocation8] sm:$0xff]   ;;  %v942_v17 = vld [vmem:[#allocation2 + $0x1] sm:$0xff] }
  0x89   : > { %4032 = vmatpush3.bf16.msra.mxu0 %v4268_v14  ;;  %4176 = vmatpush3.bf16.msra.mxu1 %v4268_v14  ;;  %v4288_v12 = vld [vmem:[#allocation8 + $0x8] sm:$0xff]   ;;  %v4290_v14 = vld [vmem:[#allocation8 + $0xa0] sm:$0xff]   ;;  %v4293_v19 = vld [vmem:[#allocation8 + $0xd8] sm:$0xff]  }
  0x8a   : > { %3633 = vmatprep.subr.bf16.mxu0 %v4277_v23  ;;  %3521 = vmatprep.subr.bf16.mxu1 %v4269_v24  ;;  %v943_v18 = vld [vmem:[#allocation2 + $0x9] sm:$0xff]  ;;  %v4295_v23 = vld [vmem:[#allocation8 + $0xd0] sm:$0xff]   ;;  %v4306_v34 = vld [vmem:[#allocation8 + $0x128] sm:$0xff]  }
  0x8b   : > { %v974_v20 = vpack.c.bf16 %v943_v18, %v942_v17  ;;  %v4294_v21 = vld [vmem:[#allocation8 + $0x98] sm:$0xff]   ;;  %v4296_v24 = vld [vmem:[#allocation8 + $0x90] sm:$0xff]   ;;  %v4307_v35 = vld [vmem:[#allocation8 + $0x160] sm:$0xff]  }
  0x8c   : > { %4034 = vmatmul.mubr.bf16.vlgmr.msra.gmra.mxu0 %v511_v25  ;;  %4050 = vmatmul.mubr.bf16.vlgmr.msra.gmra.mxu1 %v519_v27  ;;  %v4298_v25 = vld [vmem:[#allocation8 + $0xc8] sm:$0xff]   ;;  %v4301_v27 = vld [vmem:[#allocation8 + $0xc0] sm:$0xff]   ;;  %v4303_v31 = vld [vmem:[#allocation8 + $0x170] sm:$0xff]  }
  0x8d   : > { %4037 = vmatprep.mubr.bf16.mxu0 %v512_v26  ;;  %4053 = vmatprep.mubr.bf16.mxu1 %v520_v29  ;;  %v4300_v26 = vld [vmem:[#allocation8 + $0x88] sm:$0xff]   ;;  %v4302_v29 = vld [vmem:[#allocation8 + $0x80] sm:$0xff]   ;;  %v4304_v32 = vld [vmem:[#allocation8 + $0x130] sm:$0xff]  }
  0x8e   : > { %3522 = vmatpush3.bf16.msra.mxu1 %v4270_v28  ;;  %3634 = vmatpush3.bf16.msra.mxu0 %v4278_v33  ;;  %v4297_v28 = vld [vmem:[#allocation8 + $0x178] sm:$0xff]   ;;  %v4305_v33 = vld [vmem:[#allocation8 + $0x168] sm:$0xff]   ;;  %v4308_v36 = vld [vmem:[#allocation8 + $0x120] sm:$0xff]  }
  0x8f   : > { %3523 = vmatprep.subr.bf16.mxu1 %v4271_v30  ;;  %3635 = vmatprep.subr.bf16.mxu0 %v4281_v39  ;;  %v4299_v30 = vld [vmem:[#allocation8 + $0x138] sm:$0xff]   ;;  %v4315_v40 = vld [vmem:[#allocation8 + $0x150] sm:$0xff]  }
  0x90   : > { %v4309_v37 = vld [vmem:[#allocation8 + $0x1f8] sm:$0xff]   ;;  %v4316_v41 = vld [vmem:[#allocation8 + $0x110] sm:$0xff]  }
  0x91   : > { %v4312_v39 = vld [vmem:[#allocation8 + $0x118] sm:$0xff]  }
  0x92   : > { %3524 = vmatpush3.bf16.msra.mxu1 %v4272_v38  ;;  %3636 = vmatpush3.bf16.msra.mxu0 %v4282_v43  ;;  %v4311_v38 = vld [vmem:[#allocation8 + $0x158] sm:$0xff]   ;;  %v4320_v43 = vld [vmem:[#allocation8 + $0x108] sm:$0xff]  }
  0x93   : > { %3525 = vmatprep.subr.bf16.mxu1 %v4273_v42  ;;  %3637 = vmatprep.subr.bf16.mxu0 %v4285_v9  ;;  %v4319_v42 = vld [vmem:[#allocation8 + $0x148] sm:$0xff]  }
  0x94   : > { %4038 = vmatmul.mubr.bf16.gmra.mxu0 %v513_v44  ;;  %4054 = vmatmul.mubr.bf16.gmra.mxu1 %v521_v47  ;;  %v4323_v44 = vld [vmem:[#allocation8 + $0x140] sm:$0xff]   ;;  %v4793_v47 = vld [vmem:[%s5816_s3] ss:$0 sm:$0xff] }
  0x95   : > { %4041 = vmatprep.mubr.bf16.mxu0 %v514_v46  ;;  %4057 = vmatprep.mubr.bf16.mxu1 %v522_v49 }
  0x96   : > { %3526 = vmatpush3.bf16.msra.mxu1 %v4274_v45  ;;  %3638 = vmatpush3.bf16.msra.mxu0 %v4286_v10  ;;  %v4788_v45 = vld [vmem:[%s5815_s2] ss:$0 sm:$0xff] }
  0x97   : > { %3527 = vmatprep.subr.bf16.mxu1 %v4275_v48  ;;  %3639 = vmatprep.subr.bf16.mxu0 %v4289_v13  ;;  %v4324_v48 = vld [vmem:[#allocation8 + $0x100] sm:$0xff]  }
  0x9a   : > { %3528 = vmatpush3.bf16.msra.mxu1 %v4276_v56  ;;  %3640 = vmatpush3.bf16.msra.mxu0 %v4290_v14 }
  0x9b   : > { %3529 = vmatprep.subr.bf16.mxu1 %v4279_v59  ;;  %3641 = vmatprep.subr.bf16.mxu0 %v4293_v19 }
  0x9c   : > { %4042 = vmatmul.mubr.bf16.gmra.mxu0 %v515_v60  ;;  %4058 = vmatmul.mubr.bf16.gmra.mxu1 %v523_v63 }
  0x9d   : > { %4045 = vmatprep.mubr.bf16.mxu0 %v516_v62  ;;  %4061 = vmatprep.mubr.bf16.mxu1 %v524_v1 }
  0x9e   : > { %3530 = vmatpush3.bf16.msra.mxu1 %v4280_v61  ;;  %3642 = vmatpush3.bf16.msra.mxu0 %v4294_v21 }
  0x9f   : > { %3531 = vmatprep.subr.bf16.mxu1 %v4283_v0  ;;  %3643 = vmatprep.subr.bf16.mxu0 %v4295_v23 }
  0xa2   : > { %3532 = vmatpush3.bf16.msra.mxu1 %v4284_v6  ;;  %3644 = vmatpush3.bf16.msra.mxu0 %v4296_v24 }
  0xa3   : > { %3533 = vmatprep.subr.bf16.mxu1 %v4287_v11  ;;  %3645 = vmatprep.subr.bf16.mxu0 %v4298_v25 }
  0xa4   : > { %4046 = vmatmul.mubr.bf16.gmra.mxu0 %v517_v7  ;;  %4062 = vmatmul.mubr.bf16.gmra.mxu1 %v525_v8 }
  0xa5   : > { %1935 = vmatprep.mubr.bf16.mxu1 %v974_v20 }
  0xa6   : > { %3534 = vmatpush3.bf16.msra.mxu1 %v4288_v12  ;;  %3646 = vmatpush3.bf16.msra.mxu0 %v4300_v26 }
  0xa7   : > { %3535 = vmatprep.subr.bf16.mxu1 %v4291_v15  ;;  %3647 = vmatprep.subr.bf16.mxu0 %v4301_v27  ;;  %v4819_v15 = vld [vmem:[#allocation8 + $0x238] sm:$0xff]  }
  0xaa   : > { %3536 = vmatpush3.bf16.msra.mxu1 %v4292_v16  ;;  %3648 = vmatpush3.bf16.msra.mxu0 %v4302_v29 }
  0xab   : > { %3745 = vmatprep.subr.bf16.mxu1 %v4297_v28  ;;  %3857 = vmatprep.subr.bf16.mxu0 %v4309_v37 }
  0xad   : > { %1936 = vmatmul.mubr.bf16.vlgmr.msra.gmra.mxu1 %v4539_v22 }
  0xae   : > { %3746 = vmatpush3.bf16.msra.mxu1 %v4299_v30 }
  0xaf   : > { %3747 = vmatprep.subr.bf16.mxu1 %v4303_v31 }
  0xb2   : > { %3748 = vmatpush3.bf16.msra.mxu1 %v4304_v32 }
  0xb3   : > { %3749 = vmatprep.subr.bf16.mxu1 %v4305_v33 }
  0xb6   : > { %3750 = vmatpush3.bf16.msra.mxu1 %v4306_v34 }
  0xb7   : > { %3751 = vmatprep.subr.bf16.mxu1 %v4307_v35 }
  0xba   : > { %3752 = vmatpush3.bf16.msra.mxu1 %v4308_v36 }
  0xbb   : > { %3753 = vmatprep.subr.bf16.mxu1 %v4311_v38 }
  0xbe   : > { %3754 = vmatpush3.bf16.msra.mxu1 %v4312_v39 }
  0xbf   : > { %3755 = vmatprep.subr.bf16.mxu1 %v4315_v40 }
  0xc2   : > { %3756 = vmatpush3.bf16.msra.mxu1 %v4316_v41 }
  0xc3   : > { %3757 = vmatprep.subr.bf16.mxu1 %v4319_v42 }
  0xc6   : > { %3758 = vmatpush3.bf16.msra.mxu1 %v4320_v43 }
  0xc7   : > { %3759 = vmatprep.subr.bf16.mxu1 %v4323_v44 }
  0xca   : > { %3760 = vmatpush3.bf16.msra.mxu1 %v4324_v48 }
  0xcb   : > { %4065 = vmatprep.subr.bf16.mxu1 %v4819_v15 }
 0x14c   : > { %v4035_v46 = vpop.f32.mrf.mxu0  ;;  %v4051_v50 = vpop.f32.mrf.mxu1 }
 0x14d   : > { %v760_v49 = vmul.f32 %v4035_v46, %v4788_v45  ;;  %v776_v52 = vmul.f32 %v4051_v50, %v4788_v45 }
 0x14e   : > { %v624_v51 = vpop.f32.mrf.mxu0  ;;  %v688_v55 = vpop.f32.mrf.mxu1 }
 0x14f   : > { %v4798_v53 = vadd.f32 %v4793_v47, %v760_v49  ;;  %v758_v54 = vmul.f32 %v4788_v45, %v624_v51  ;;  %v815_v57 = vadd.f32 %v4793_v47, %v776_v52  ;;  %v774_v58 = vmul.f32 %v4788_v45, %v688_v55  ;;  %v990_v51 = vld [vmem:[#allocation2 + $0x2] sm:$0xff]  ;;  %v991_v52 = vld [vmem:[#allocation2 + $0xa] sm:$0xff] }
 0x150   : > { %v4036_v56 = vpop.f32.mrf.mxu0  ;;  %v4052_v62 = vpop.f32.mrf.mxu1 }
 0x151   : > { %v831_v59 = vmax.f32 %v4798_v53, 0.0  ;;  %v797_v60 = vadd.f32 %v4793_v47, %v758_v54  ;;  %v761_v61 = vmul.f32 %v4036_v56, %v4788_v45  ;;  %v847_v0 = vmax.f32 %v815_v57, 0.0 }
 0x152   : > { %v627_v63 = vpop.f32.mrf.mxu0  ;;  %v813_v1 = vadd.f32 %v4793_v47, %v774_v58  ;;  %v777_v2 = vmul.f32 %v4052_v62, %v4788_v45  ;;  %v691_v6 = vpop.f32.mrf.mxu1 }
 0x153   : > { %864 = vst [vmem:[#allocation2 + $0x31] sm:$0xff] %v831_v59  ;;  %v829_v3 = vmax.f32 %v797_v60, 0.0  ;;  %v4811_v4 = vadd.f32 %v4793_v47, %v761_v61  ;;  %v759_v5 = vmul.f32 %v4788_v45, %v627_v63  ;;  %880 = vst [vmem:[#allocation2 + $0xf1] sm:$0xff] %v847_v0  ;;  %v775_v10 = vmul.f32 %v4788_v45, %v691_v6 }
 0x154   : > { %v4039_v7 = vpop.f32.mrf.mxu0  ;;  %v845_v8 = vmax.f32 %v813_v1, 0.0  ;;  %v816_v9 = vadd.f32 %v4793_v47, %v777_v2  ;;  %v4055_v14 = vpop.f32.mrf.mxu1 }
 0x155   : > { %862 = vst [vmem:[#allocation2 + $0x19] sm:$0xff] %v829_v3  ;;  %v832_v11 = vmax.f32 %v4811_v4, 0.0  ;;  %v798_v12 = vadd.f32 %v4793_v47, %v759_v5  ;;  %v764_v13 = vmul.f32 %v4039_v7, %v4788_v45  ;;  %v814_v18 = vadd.f32 %v4793_v47, %v775_v10 }
 0x156   : > { %v640_v16 = vpop.f32.mrf.mxu0  ;;  %878 = vst [vmem:[#allocation2 + $0xd9] sm:$0xff] %v845_v8  ;;  %v4821_v17 = vmax.f32 %v816_v9, 0.0  ;;  %v780_v19 = vmul.f32 %v4055_v14, %v4788_v45  ;;  %v704_v23 = vpop.f32.mrf.mxu1  ;;  %v1022_v5 = vpack.c.bf16 %v991_v52, %v990_v51  ;;  %v4310_v14 = vld [vmem:[#allocation8 + $0x1b8] sm:$0xff]  }
 0x157   : > { %865 = vst [vmem:[#allocation2 + $0x39] sm:$0xff] %v832_v11  ;;  %v830_v20 = vmax.f32 %v798_v12, 0.0  ;;  %v4828_v21 = vadd.f32 %v4793_v47, %v764_v13  ;;  %v762_v22 = vmul.f32 %v4788_v45, %v640_v16  ;;  %v846_v25 = vmax.f32 %v814_v18, 0.0 }
 0x158   : > { %v4040_v24 = vpop.f32.mrf.mxu0  ;;  %881 = vst [vmem:[#allocation2 + $0xf9] sm:$0xff] %v4821_v17  ;;  %v4834_v26 = vadd.f32 %v4793_v47, %v780_v19  ;;  %v778_v27 = vmul.f32 %v4788_v45, %v704_v23  ;;  %v4838_v28 = vpack.c.bf16 %v4821_v17, %v847_v0  ;;  %v4056_v33 = vpop.f32.mrf.mxu1  ;;  %v976_v18 = vpack.c.bf16 %v832_v11, %v831_v59  ;;  %v4313_v23 = vld [vmem:[#allocation8 + $0x1f0] sm:$0xff]  }
 0x159   : > { %863 = vst [vmem:[#allocation2 + $0x21] sm:$0xff] %v830_v20  ;;  %v835_v29 = vmax.f32 %v4828_v21, 0.0  ;;  %v4842_v30 = vadd.f32 %v4793_v47, %v762_v22  ;;  %v765_v31 = vmul.f32 %v4040_v24, %v4788_v45  ;;  %v975_v32 = vpack.c.bf16 %v830_v20, %v829_v3  ;;  %879 = vst [vmem:[#allocation2 + $0xe1] sm:$0xff] %v846_v25 }
 0x15a   : > { %v643_v34 = vpop.f32.mrf.mxu0  ;;  %v851_v35 = vmax.f32 %v4834_v26, 0.0  ;;  %v4847_v36 = vadd.f32 %v4793_v47, %v778_v27  ;;  %v781_v37 = vmul.f32 %v4056_v33, %v4788_v45  ;;  %v4850_v38 = vpack.c.bf16 %v846_v25, %v845_v8  ;;  %v707_v42 = vpop.f32.mrf.mxu1  ;;  %v1040_v9 = vld [vmem:[#allocation2 + $0x30] sm:$0xff] }
 0x15b   : > { %868 = vst [vmem:[#allocation2 + $0x61] sm:$0xff] %v835_v29  ;;  %v833_v39 = vmax.f32 %v4842_v30, 0.0  ;;  %v4856_v40 = vadd.f32 %v4793_v47, %v765_v31  ;;  %v763_v41 = vmul.f32 %v4788_v45, %v643_v34  ;;  %1943 = vmatprep.mubr.bf16.mxu1 %v975_v32  ;;  %v779_v48 = vmul.f32 %v4788_v45, %v707_v42  ;;  %v4314_v42 = vld [vmem:[#allocation8 + $0x1b0] sm:$0xff]  }
 0x15c   : > { %v4043_v43 = vpop.f32.mrf.mxu0  ;;  %884 = vst [vmem:[#allocation2 + $0x121] sm:$0xff] %v851_v35  ;;  %v849_v44 = vmax.f32 %v4847_v36, 0.0  ;;  %v820_v46 = vadd.f32 %v4793_v47, %v781_v37  ;;  %v4059_v55 = vpop.f32.mrf.mxu1  ;;  %v1038_v2 = vld [vmem:[#allocation2 + $0x18] sm:$0xff] }
 0x15d   : > { %866 = vst [vmem:[#allocation2 + $0x49] sm:$0xff] %v833_v39  ;;  %v836_v49 = vmax.f32 %v4856_v40, 0.0  ;;  %v4868_v50 = vadd.f32 %v4793_v47, %v763_v41  ;;  %v768_v54 = vmul.f32 %v4043_v43, %v4788_v45  ;;  %v818_v58 = vadd.f32 %v4793_v47, %v779_v48 }
 0x15e   : > { %v656_v56 = vpop.f32.mrf.mxu0  ;;  %882 = vst [vmem:[#allocation2 + $0x109] sm:$0xff] %v849_v44  ;;  %v4873_v57 = vmax.f32 %v820_v46, 0.0  ;;  %v784_v60 = vmul.f32 %v4059_v55, %v4788_v45  ;;  %v1041_v62 = vld [vmem:[#allocation2 + $0x38] sm:$0xff]  ;;  %v720_v1 = vpop.f32.mrf.mxu1 }
 0x15f   : > { %869 = vst [vmem:[#allocation2 + $0x69] sm:$0xff] %v836_v49  ;;  %v834_v61 = vmax.f32 %v4868_v50, 0.0  ;;  %v4881_v63 = vadd.f32 %v4793_v47, %v768_v54  ;;  %v766_v0 = vmul.f32 %v4788_v45, %v656_v56  ;;  %v850_v7 = vmax.f32 %v818_v58, 0.0  ;;  %v4317_v55 = vld [vmem:[#allocation8 + $0x1e8] sm:$0xff]  }
 0x160   : > { %v1039_v3 = vld [vmem:[#allocation2 + $0x20] sm:$0xff]  ;;  %v4044_v6 = vpop.f32.mrf.mxu0  ;;  %885 = vst [vmem:[#allocation2 + $0x129] sm:$0xff] %v4873_v57  ;;  %v4060_v16 = vpop.f32.mrf.mxu1  ;;  %v4896_v19 = vpack.c.bf16 %v1041_v62, %v1040_v9  ;;  %v4899_v22 = vadd.f32 %v4793_v47, %v784_v60  ;;  %v782_v4 = vmul.f32 %v4788_v45, %v720_v1  ;;  %v4318_v9 = vld [vmem:[#allocation8 + $0x1a8] sm:$0xff]  }
 0x161   : > { %867 = vst [vmem:[#allocation2 + $0x51] sm:$0xff] %v834_v61  ;;  %v1070_v8 = vpack.c.bf16 %v1039_v3, %v1038_v2  ;;  %v839_v10 = vmax.f32 %v4881_v63, 0.0  ;;  %v4889_v12 = vadd.f32 %v4793_v47, %v766_v0  ;;  %v769_v13 = vmul.f32 %v4044_v6, %v4788_v45  ;;  %883 = vst [vmem:[#allocation2 + $0x111] sm:$0xff] %v850_v7  ;;  %v992_v58 = vld [vmem:[#allocation2 + $0x1a] sm:$0xff]  ;;  %v993_v60 = vld [vmem:[#allocation2 + $0x22] sm:$0xff] }
 0x162   : > { %v659_v20 = vpop.f32.mrf.mxu0  ;;  %v723_v11 = vpop.f32.mrf.mxu1  ;;  %v855_v27 = vmax.f32 %v4899_v22, 0.0  ;;  %v785_v31 = vmul.f32 %v4060_v16, %v4788_v45  ;;  %v4919_v41 = vadd.f32 %v4793_v47, %v782_v4  ;;  %v4927_v54 = vpack.c.bf16 %v850_v7, %v849_v44  ;;  %v4330_v22 = vld [vmem:[#allocation8 + $0x1c8] sm:$0xff]  }
 0x163   : > { %2096 = vmatprep.mubr.bf16.mxu0 %v1070_v8  ;;  %1944 = vmatmul.mubr.bf16.gmra.mxu1 %v1070_v8  ;;  %872 = vst [vmem:[#allocation2 + $0x91] sm:$0xff] %v839_v10  ;;  %v837_v24 = vmax.f32 %v4889_v12, 0.0  ;;  %v4905_v53 = vadd.f32 %v4793_v47, %v769_v13  ;;  %v767_v59 = vmul.f32 %v4788_v45, %v659_v20 }
 0x164   : > { %2097 = vmatmul.mubr.bf16.vlgmr.msra.gmra.mxu0 %v1022_v5  ;;  %1951 = vmatprep.mubr.bf16.mxu1 %v976_v18  ;;  %v4047_v25 = vpop.f32.mrf.mxu0  ;;  %v783_v32 = vmul.f32 %v4788_v45, %v723_v11  ;;  %v4063_v43 = vpop.f32.mrf.mxu1  ;;  %v1042_v46 = vld [vmem:[#allocation2 + $0x48] sm:$0xff]  ;;  %888 = vst [vmem:[#allocation2 + $0x151] sm:$0xff] %v855_v27  ;;  %v824_v51 = vadd.f32 %v4793_v47, %v785_v31  ;;  %v853_v36 = vmax.f32 %v4919_v41, 0.0 }
 0x165   : > { %2104 = vmatprep.mubr.bf16.mxu0 %v4896_v19  ;;  %870 = vst [vmem:[#allocation2 + $0x79] sm:$0xff] %v837_v24  ;;  %v840_v33 = vmax.f32 %v4905_v53, 0.0  ;;  %v806_v34 = vadd.f32 %v4793_v47, %v767_v59  ;;  %v772_v37 = vmul.f32 %v4047_v25, %v4788_v45  ;;  %3858 = vmatpush3.bf16.msra.mxu0 %v4310_v14 }
 0x166   : > { %v672_v48 = vpop.f32.mrf.mxu0  ;;  %3859 = vmatprep.subr.bf16.mxu0 %v4313_v23  ;;  %v822_v52 = vadd.f32 %v4793_v47, %v783_v32  ;;  %v736_v1 = vpop.f32.mrf.mxu1  ;;  %v4938_v44 = vmax.f32 %v824_v51, 0.0  ;;  %v4948_v14 = vpack.c.bf16 %v993_v60, %v992_v58  ;;  %v977_v16 = vpack.c.bf16 %v834_v61, %v833_v39  ;;  %886 = vst [vmem:[#allocation2 + $0x139] sm:$0xff] %v853_v36  ;;  %v4321_v23 = vld [vmem:[#allocation8 + $0x1e0] sm:$0xff]   ;;  %v1044_v51 = vld [vmem:[#allocation2 + $0x60] sm:$0xff] }
 0x167   : > { %873 = vst [vmem:[#allocation2 + $0x99] sm:$0xff] %v840_v33  ;;  %v4931_v56 = vmax.f32 %v806_v34, 0.0  ;;  %v4934_v62 = vadd.f32 %v4793_v47, %v772_v37  ;;  %v770_v0 = vmul.f32 %v4788_v45, %v672_v48  ;;  %v4966_v39 = vpack.c.bf16 %v4873_v57, %v851_v35  ;;  %v4322_v32 = vld [vmem:[#allocation8 + $0x1a0] sm:$0xff]   ;;  %v995_v37 = vld [vmem:[#allocation2 + $0x3a] sm:$0xff] }
 0x168   : > { %v1043_v2 = vld [vmem:[#allocation2 + $0x50] sm:$0xff]  ;;  %v4048_v3 = vpop.f32.mrf.mxu0  ;;  %v4064_v13 = vpop.f32.mrf.mxu1  ;;  %889 = vst [vmem:[#allocation2 + $0x159] sm:$0xff] %v4938_v44  ;;  %v854_v20 = vmax.f32 %v822_v52, 0.0  ;;  %v788_v61 = vmul.f32 %v4063_v43, %v4788_v45  ;;  %v786_v11 = vmul.f32 %v4788_v45, %v736_v1  ;;  %v1045_v52 = vld [vmem:[#allocation2 + $0x68] sm:$0xff] }
 0x169   : > { %871 = vst [vmem:[#allocation2 + $0x81] sm:$0xff] %v4931_v56  ;;  %v4941_v5 = vpack.c.bf16 %v1043_v2, %v1042_v46  ;;  %v843_v6 = vmax.f32 %v4934_v62, 0.0  ;;  %v4945_v7 = vadd.f32 %v4793_v47, %v770_v0  ;;  %v773_v8 = vmul.f32 %v4048_v3, %v4788_v45  ;;  %3860 = vmatpush3.bf16.msra.mxu0 %v4314_v42  ;;  %v994_v34 = vld [vmem:[#allocation2 + $0x32] sm:$0xff]  ;;  %v4325_v46 = vld [vmem:[#allocation8 + $0x1d8] sm:$0xff]  }
 0x16a   : > { %v675_v18 = vpop.f32.mrf.mxu0  ;;  %3861 = vmatprep.subr.bf16.mxu0 %v4317_v55  ;;  %v739_v50 = vpop.f32.mrf.mxu1  ;;  %887 = vst [vmem:[#allocation2 + $0x141] sm:$0xff] %v854_v20  ;;  %v789_v35 = vmul.f32 %v4064_v13, %v4788_v45  ;;  %v827_v41 = vadd.f32 %v4793_v47, %v788_v61  ;;  %v825_v42 = vadd.f32 %v4793_v47, %v786_v11  ;;  %v4326_v1 = vld [vmem:[#allocation8 + $0x198] sm:$0xff]   ;;  %v4333_v61 = vld [vmem:[#allocation8 + $0x180] sm:$0xff]  }
 0x16b   : > { %1952 = vmatmul.mubr.bf16.gmra.mxu1 %v4896_v19  ;;  %876 = vst [vmem:[#allocation2 + $0xc1] sm:$0xff] %v843_v6  ;;  %v841_v59 = vmax.f32 %v4945_v7, 0.0  ;;  %v4960_v4 = vadd.f32 %v4793_v47, %v773_v8  ;;  %v771_v30 = vmul.f32 %v4788_v45, %v675_v18  ;;  %v787_v31 = vmul.f32 %v4788_v45, %v739_v50  ;;  %v4327_v8 = vld [vmem:[#allocation8 + $0x1d0] sm:$0xff]   ;;  %v996_v13 = vld [vmem:[#allocation2 + $0x4a] sm:$0xff] }
 0x16c   : > { %2105 = vmatmul.mubr.bf16.gmra.mxu0 %v4948_v14  ;;  %1959 = vmatprep.mubr.bf16.mxu1 %v977_v16  ;;  %v4982_v43 = vpack.c.bf16 %v854_v20, %v853_v36  ;;  %v859_v55 = vmax.f32 %v827_v41, 0.0  ;;  %v857_v45 = vmax.f32 %v825_v42, 0.0  ;;  %v828_v58 = vadd.f32 %v4793_v47, %v789_v35  ;;  %v1046_v40 = vld [vmem:[#allocation2 + $0x78] sm:$0xff]  ;;  %v4332_v50 = vld [vmem:[#allocation8 + $0x1c0] sm:$0xff]   ;;  %v998_v11 = vld [vmem:[#allocation2 + $0x62] sm:$0xff] }
 0x16d   : > { %2112 = vmatprep.mubr.bf16.mxu0 %v4941_v5  ;;  %874 = vst [vmem:[#allocation2 + $0xa9] sm:$0xff] %v841_v59  ;;  %v844_v25 = vmax.f32 %v4960_v4, 0.0  ;;  %v4976_v26 = vadd.f32 %v4793_v47, %v771_v30  ;;  %3862 = vmatpush3.bf16.msra.mxu0 %v4318_v9  ;;  %v826_v60 = vadd.f32 %v4793_v47, %v787_v31  ;;  %v997_v16 = vld [vmem:[#allocation2 + $0x52] sm:$0xff]  ;;  %v999_v35 = vld [vmem:[#allocation2 + $0x6a] sm:$0xff] }
 0x16e   : > { %3863 = vmatprep.subr.bf16.mxu0 %v4321_v23  ;;  %v4989_v0 = vpack.c.bf16 %v995_v37, %v994_v34  ;;  %v978_v2 = vpack.c.bf16 %v836_v49, %v835_v29  ;;  %892 = vst [vmem:[#allocation2 + $0x181] sm:$0xff] %v859_v55  ;;  %890 = vst [vmem:[#allocation2 + $0x169] sm:$0xff] %v857_v45  ;;  %v4997_v3 = vmax.f32 %v828_v58, 0.0  ;;  %v4328_v29 = vld [vmem:[#allocation8 + $0x190] sm:$0xff]   ;;  %v4331_v20 = vld [vmem:[#allocation8 + $0x188] sm:$0xff]  }
 0x16f   : > { %877 = vst [vmem:[#allocation2 + $0xc9] sm:$0xff] %v844_v25  ;;  %v842_v48 = vmax.f32 %v4976_v26, 0.0  ;;  %v858_v36 = vmax.f32 %v826_v60, 0.0  ;;  %v5002_v47 = vpack.c.bf16 %v4938_v44, %v855_v27  ;;  %v5005_v9 = vpack.c.bf16 %v1045_v52, %v1044_v51  ;;  %v1048_v31 = vld [vmem:[#allocation2 + $0x90] sm:$0xff]  ;;  %v1003_v53 = vld [vmem:[#allocation2 + $0x9a] sm:$0xff]  ;;  %v3537_v26 = vpop.f32.mrf.mxu1 }
 0x170   : > { %893 = vst [vmem:[#allocation2 + $0x189] sm:$0xff] %v4997_v3  ;;  %v1047_v49 = vld [vmem:[#allocation2 + $0x80] sm:$0xff]  ;;  %v5013_v27 = vpack.c.bf16 %v4997_v3, %v859_v55  ;;  %v5017_v23 = vpack.c.bf16 %v997_v16, %v996_v13  ;;  %v979_v30 = vpack.c.bf16 %v4931_v56, %v837_v24  ;;  %v5025_v12 = vpack.c.bf16 %v999_v35, %v998_v11  ;;  %v1059_v13 = vld [vmem:[#allocation2 + $0x110] sm:$0xff] }
 0x171   : > { %875 = vst [vmem:[#allocation2 + $0xb1] sm:$0xff] %v842_v48  ;;  %3864 = vmatpush3.bf16.msra.mxu0 %v4322_v32  ;;  %891 = vst [vmem:[#allocation2 + $0x171] sm:$0xff] %v858_v36  ;;  %v5009_v21 = vpack.c.bf16 %v858_v36, %v857_v45  ;;  %v5015_v18 = vpack.c.bf16 %v1047_v49, %v1046_v40  ;;  %v1049_v32 = vld [vmem:[#allocation2 + $0x98] sm:$0xff]  ;;  %v980_v24 = vpack.c.bf16 %v840_v33, %v839_v10  ;;  %v1055_v58 = vld [vmem:[#allocation2 + $0xe0] sm:$0xff] }
 0x172   : > { %3865 = vmatprep.subr.bf16.mxu0 %v4325_v46  ;;  %v5032_v34 = vpack.c.bf16 %v1049_v32, %v1048_v31  ;;  %v1000_v42 = vld [vmem:[#allocation2 + $0x7a] sm:$0xff]  ;;  %v1001_v46 = vld [vmem:[#allocation2 + $0x82] sm:$0xff]  ;;  %v5044_v63 = vpack.c.bf16 %v842_v48, %v841_v59  ;;  %v1002_v10 = vld [vmem:[#allocation2 + $0x92] sm:$0xff]  ;;  %v982_v7 = vpack.c.bf16 %v844_v25, %v843_v6 }
 0x173   : > { %1960 = vmatmul.mubr.bf16.gmra.mxu1 %v4941_v5  ;;  %v5038_v52 = vpack.c.bf16 %v1001_v46, %v1000_v42  ;;  %v1052_v33 = vld [vmem:[#allocation2 + $0xc0] sm:$0xff]  ;;  %v5050_v45 = vpack.c.bf16 %v1003_v53, %v1002_v10  ;;  %v1054_v48 = vld [vmem:[#allocation2 + $0xd8] sm:$0xff]  ;;  %v1061_v31 = vld [vmem:[#allocation2 + $0x128] sm:$0xff] }
 0x174   : > { %2113 = vmatmul.mubr.bf16.gmra.mxu0 %v4989_v0  ;;  %1967 = vmatprep.mubr.bf16.mxu1 %v978_v2  ;;  %v1050_v37 = vld [vmem:[#allocation2 + $0xa8] sm:$0xff]  ;;  %v3538_v2 = vpop.f32.mrf.mxu1  ;;  %v5063_v62 = vpack.c.bf16 %v1055_v58, %v1054_v48  ;;  %v1008_v16 = vld [vmem:[#allocation2 + $0xda] sm:$0xff]  ;;  %v1013_v46 = vld [vmem:[#allocation2 + $0x112] sm:$0xff] }
 0x175   : > { %2120 = vmatprep.mubr.bf16.mxu0 %v5005_v9  ;;  %3866 = vmatpush3.bf16.msra.mxu0 %v4326_v1  ;;  %v5061_v36 = vadd.f32 %v3538_v2, %v3537_v26  ;;  %v1011_v11 = vld [vmem:[#allocation2 + $0xfa] sm:$0xff]  ;;  %v1012_v42 = vld [vmem:[#allocation2 + $0x10a] sm:$0xff] }
 0x176   : > { %3867 = vmatprep.subr.bf16.mxu0 %v4327_v8  ;;  %v1053_v55 = vld [vmem:[#allocation2 + $0xc8] sm:$0xff]  ;;  %v1056_v8 = vld [vmem:[#allocation2 + $0xf0] sm:$0xff]  ;;  %v1060_v35 = vld [vmem:[#allocation2 + $0x120] sm:$0xff]  ;;  %v5097_v53 = vpack.c.bf16 %v1013_v46, %v1012_v42 }
 0x177   : > { %v5057_v59 = vpack.c.bf16 %v1053_v55, %v1052_v33  ;;  %v1006_v4 = vld [vmem:[#allocation2 + $0xc2] sm:$0xff]  ;;  %v1007_v25 = vld [vmem:[#allocation2 + $0xca] sm:$0xff]  ;;  %v1065_v26 = vld [vmem:[#allocation2 + $0x158] sm:$0xff] }
 0x178   : > { %v1051_v41 = vld [vmem:[#allocation2 + $0xb0] sm:$0xff]  ;;  %v5071_v40 = vpack.c.bf16 %v1007_v25, %v1006_v4  ;;  %v1014_v33 = vld [vmem:[#allocation2 + $0x122] sm:$0xff]  ;;  %v1016_v2 = vld [vmem:[#allocation2 + $0x13a] sm:$0xff] }
 0x179   : > { %3868 = vmatpush3.bf16.msra.mxu0 %v4328_v29  ;;  %v5036_v51 = vpack.c.bf16 %v1051_v41, %v1050_v37  ;;  %v1004_v60 = vld [vmem:[#allocation2 + $0xaa] sm:$0xff]  ;;  %v1005_v1 = vld [vmem:[#allocation2 + $0xb2] sm:$0xff]  ;;  %v1063_v41 = vld [vmem:[#allocation2 + $0x140] sm:$0xff] }
 0x17a   : > { %3869 = vmatprep.subr.bf16.mxu0 %v4330_v22  ;;  %v5065_v6 = vpack.c.bf16 %v1005_v1, %v1004_v60  ;;  %v1057_v29 = vld [vmem:[#allocation2 + $0xf8] sm:$0xff]  ;;  %v1058_v22 = vld [vmem:[#allocation2 + $0x108] sm:$0xff]  ;;  %v1067_v1 = vld [vmem:[#allocation2 + $0x170] sm:$0xff] }
 0x17b   : > { %1968 = vmatmul.mubr.bf16.gmra.mxu1 %v5005_v9  ;;  %v5074_v49 = vpack.c.bf16 %v1057_v29, %v1056_v8  ;;  %v1062_v37 = vld [vmem:[#allocation2 + $0x138] sm:$0xff]  ;;  %v1015_v55 = vld [vmem:[#allocation2 + $0x12a] sm:$0xff]  ;;  %v1017_v4 = vld [vmem:[#allocation2 + $0x142] sm:$0xff] }
 0x17c   : > { %2121 = vmatmul.mubr.bf16.gmra.mxu0 %v5017_v23  ;;  %1975 = vmatprep.mubr.bf16.mxu1 %v979_v30  ;;  %v5079_v30 = vpack.c.bf16 %v1059_v13, %v1058_v22  ;;  %v5095_v10 = vpack.c.bf16 %v1063_v41, %v1062_v37  ;;  %v5103_v48 = vpack.c.bf16 %v1015_v55, %v1014_v33  ;;  %v1066_v60 = vld [vmem:[#allocation2 + $0x168] sm:$0xff]  ;;  %v1018_v29 = vld [vmem:[#allocation2 + $0x152] sm:$0xff]  ;;  %v1019_v22 = vld [vmem:[#allocation2 + $0x15a] sm:$0xff] }
 0x17d   : > { %2128 = vmatprep.mubr.bf16.mxu0 %v5015_v18  ;;  %3870 = vmatpush3.bf16.msra.mxu0 %v4331_v20  ;;  %v1009_v20 = vld [vmem:[#allocation2 + $0xe2] sm:$0xff]  ;;  %v5111_v25 = vpack.c.bf16 %v1067_v1, %v1066_v60  ;;  %v5113_v8 = vpack.c.bf16 %v1017_v4, %v1016_v2  ;;  %v1086_v37 = vld [vmem:[#allocation2 + $0x19] sm:$0xff]  ;;  %v1231_v33 = vld [vmem:[#allocation2 + $0x31] sm:$0xff] }
 0x17e   : > { %3871 = vmatprep.subr.bf16.mxu0 %v4332_v50  ;;  %v5081_v50 = vpack.c.bf16 %v1009_v20, %v1008_v16  ;;  %v1068_v13 = vld [vmem:[#allocation2 + $0x180] sm:$0xff]  ;;  %v1069_v16 = vld [vmem:[#allocation2 + $0x188] sm:$0xff]  ;;  %v5119_v20 = vpack.c.bf16 %v1019_v22, %v1018_v29  ;;  %v1234_v60 = vld [vmem:[#allocation2 + $0x51] sm:$0xff] }
 0x17f   : > { %v1232_v41 = vld [vmem:[#allocation2 + $0x39] sm:$0xff]  ;;  %v4336_v1 = vld [vmem:[#allocation8 + $0x220] sm:$0xff]   ;;  %v1235_v4 = vld [vmem:[#allocation2 + $0x61] sm:$0xff] }
 0x180   : > { %v4334_v55 = vld [vmem:[#allocation8 + $0x230] sm:$0xff]  }
 0x181   : > { %3872 = vmatpush3.bf16.msra.mxu0 %v4333_v61  ;;  %v1010_v61 = vld [vmem:[#allocation2 + $0xf2] sm:$0xff]  ;;  %v4338_v29 = vld [vmem:[#allocation8 + $0x210] sm:$0xff]  }
 0x182   : > { %v5087_v32 = vpack.c.bf16 %v1011_v11, %v1010_v61  ;;  %v5122_v61 = vpack.c.bf16 %v1069_v16, %v1068_v13  ;;  %v1087_v11 = vld [vmem:[#allocation2 + $0x21] sm:$0xff]  ;;  %v4340_v13 = vld [vmem:[#allocation8 + $0x200] sm:$0xff]  }
 0x183   : > { %1976 = vmatmul.mubr.bf16.gmra.mxu1 %v5015_v18  ;;  %v1118_v42 = vpack.c.bf16 %v1087_v11, %v1086_v37  ;;  %v1240_v11 = vld [vmem:[#allocation2 + $0x99] sm:$0xff] }
 0x184   : > { %2129 = vmatmul.mubr.bf16.gmra.mxu0 %v5025_v12  ;;  %1983 = vmatprep.mubr.bf16.mxu1 %v980_v24  ;;  %v5090_v24 = vpack.c.bf16 %v1061_v31, %v1060_v35  ;;  %v1020_v35 = vld [vmem:[#allocation2 + $0x16a] sm:$0xff]  ;;  %v1021_v31 = vld [vmem:[#allocation2 + $0x172] sm:$0xff] }
 0x185   : > { %2136 = vmatprep.mubr.bf16.mxu0 %v5032_v34  ;;  %v5127_v46 = vpack.c.bf16 %v1021_v31, %v1020_v35 }
 0x18b   : > { %1984 = vmatmul.mubr.bf16.gmra.mxu1 %v5032_v34 }
 0x18c   : > { %2137 = vmatmul.mubr.bf16.gmra.mxu0 %v5038_v52  ;;  %1991 = vmatprep.mubr.bf16.mxu1 %v5044_v63 }
 0x18d   : > { %2144 = vmatprep.mubr.bf16.mxu0 %v5036_v51 }
 0x193   : > { %1992 = vmatmul.mubr.bf16.gmra.mxu1 %v5036_v51 }
 0x194   : > { %2145 = vmatmul.mubr.bf16.gmra.mxu0 %v5050_v45  ;;  %1999 = vmatprep.mubr.bf16.mxu1 %v982_v7  ;;  %v1064_v7 = vld [vmem:[#allocation2 + $0x150] sm:$0xff] }
 0x195   : > { %2152 = vmatprep.mubr.bf16.mxu0 %v5057_v59  ;;  %v5106_v58 = vpack.c.bf16 %v1065_v26, %v1064_v7  ;;  %v1263_v7 = vpack.c.bf16 %v1232_v41, %v1231_v33  ;;  %v1233_v26 = vld [vmem:[#allocation2 + $0x49] sm:$0xff] }
 0x196   : > { %v1264_v2 = vpack.c.bf16 %v1234_v60, %v1233_v26  ;;  %v1108_v60 = vld [vmem:[#allocation2 + $0x121] sm:$0xff] }
 0x19b   : > { %2000 = vmatmul.mubr.bf16.gmra.mxu1 %v5057_v59 }
 0x19c   : > { %2153 = vmatmul.mubr.bf16.gmra.mxu0 %v5065_v6  ;;  %2007 = vmatprep.mubr.bf16.mxu1 %v4850_v38 }
 0x19d   : > { %2160 = vmatprep.mubr.bf16.mxu0 %v5063_v62 }
 0x1a3   : > { %2008 = vmatmul.mubr.bf16.gmra.mxu1 %v5063_v62 }
 0x1a4   : > { %2161 = vmatmul.mubr.bf16.gmra.mxu0 %v5071_v40  ;;  %2015 = vmatprep.mubr.bf16.mxu1 %v4838_v28 }
 0x1a5   : > { %2168 = vmatprep.mubr.bf16.mxu0 %v5074_v49 }
 0x1ab   : > { %2016 = vmatmul.mubr.bf16.gmra.mxu1 %v5074_v49 }
 0x1ac   : > { %2169 = vmatmul.mubr.bf16.gmra.mxu0 %v5081_v50  ;;  %2023 = vmatprep.mubr.bf16.mxu1 %v4927_v54 }
 0x1ad   : > { %2176 = vmatprep.mubr.bf16.mxu0 %v5079_v30 }
 0x1b3   : > { %2024 = vmatmul.mubr.bf16.gmra.mxu1 %v5079_v30 }
 0x1b4   : > { %2177 = vmatmul.mubr.bf16.gmra.mxu0 %v5087_v32  ;;  %2031 = vmatprep.mubr.bf16.mxu1 %v4966_v39 }
 0x1b5   : > { %2184 = vmatprep.mubr.bf16.mxu0 %v5090_v24 }
 0x1bb   : > { %2032 = vmatmul.mubr.bf16.gmra.mxu1 %v5090_v24 }
 0x1bc   : > { %2185 = vmatmul.mubr.bf16.gmra.mxu0 %v5097_v53  ;;  %2039 = vmatprep.mubr.bf16.mxu1 %v4982_v43 }
 0x1bd   : > { %2192 = vmatprep.mubr.bf16.mxu0 %v5095_v10 }
 0x1c3   : > { %2040 = vmatmul.mubr.bf16.gmra.mxu1 %v5095_v10 }
 0x1c4   : > { %2193 = vmatmul.mubr.bf16.gmra.mxu0 %v5103_v48  ;;  %2047 = vmatprep.mubr.bf16.mxu1 %v5002_v47 }
 0x1c5   : > { %2200 = vmatprep.mubr.bf16.mxu0 %v5106_v58 }
 0x1cb   : > { %2048 = vmatmul.mubr.bf16.gmra.mxu1 %v5106_v58 }
 0x1cc   : > { %2201 = vmatmul.mubr.bf16.gmra.mxu0 %v5113_v8  ;;  %2055 = vmatprep.mubr.bf16.mxu1 %v5009_v21 }
 0x1cd   : > { %2208 = vmatprep.mubr.bf16.mxu0 %v5111_v25 }
 0x1d3   : > { %2056 = vmatmul.mubr.bf16.gmra.mxu1 %v5111_v25 }
 0x1d4   : > { %2209 = vmatmul.mubr.bf16.gmra.mxu0 %v5119_v20  ;;  %2257 = vmatprep.mubr.bf16.mxu1 %v4948_v14  ;;  %v4335_v14 = vld [vmem:[#allocation8 + $0x228] sm:$0xff]  }
 0x1d5   : > { %2216 = vmatprep.mubr.bf16.mxu0 %v5122_v61 }
 0x1db   : > { %2258 = vmatmul.mubr.bf16.vlgmr.msra.gmra.mxu1 %v1118_v42 }
 0x1dc   : > { %2217 = vmatmul.mubr.bf16.gmra.mxu0 %v5127_v46  ;;  %4066 = vmatpush3.bf16.msra.mxu1 %v4819_v15  ;;  %v4337_v15 = vld [vmem:[#allocation8 + $0x218] sm:$0xff]  }
 0x1dd   : > { %2265 = vmatprep.mubr.bf16.mxu1 %v4989_v0  ;;  %2418 = vmatprep.mubr.bf16.mxu0 %v1263_v7  ;;  %v1236_v0 = vld [vmem:[#allocation2 + $0x69] sm:$0xff] }
 0x1de   : > { %4067 = vmatprep.subr.bf16.mxu1 %v4334_v55  ;;  %v1265_v22 = vpack.c.bf16 %v1236_v0, %v1235_v4 }
 0x1e0   : > { %4068 = vmatpush3.bf16.msra.mxu1 %v4334_v55 }
 0x1e1   : > { %4069 = vmatprep.subr.bf16.mxu1 %v4335_v14 }
 0x1e3   : > { %2266 = vmatmul.mubr.bf16.gmra.mxu1 %v1263_v7 }
 0x1e4   : > { %2419 = vmatmul.mubr.bf16.vlgmr.msra.gmra.mxu0 %v4896_v19  ;;  %2273 = vmatprep.mubr.bf16.mxu1 %v5017_v23  ;;  %v4339_v19 = vld [vmem:[#allocation8 + $0x208] sm:$0xff]  }
 0x1e5   : > { %2426 = vmatprep.mubr.bf16.mxu0 %v1264_v2  ;;  %4070 = vmatpush3.bf16.msra.mxu1 %v4335_v14  ;;  %v1237_v23 = vld [vmem:[#allocation2 + $0x79] sm:$0xff] }
 0x1e6   : > { %4071 = vmatprep.subr.bf16.mxu1 %v4336_v1  ;;  %v1266_v16 = vpack.c.bf16 %v4931_v56, %v1237_v23  ;;  %v1243_v56 = vld [vmem:[#allocation2 + $0xc1] sm:$0xff] }
 0x1e9   : > { %4072 = vmatpush3.bf16.msra.mxu1 %v4336_v1 }
 0x1ea   : > { %4073 = vmatprep.subr.bf16.mxu1 %v4337_v15 }
 0x1eb   : > { %2274 = vmatmul.mubr.bf16.gmra.mxu1 %v1264_v2 }
 0x1ec   : > { %2427 = vmatmul.mubr.bf16.gmra.mxu0 %v4941_v5  ;;  %2281 = vmatprep.mubr.bf16.mxu1 %v5025_v12  ;;  %v1095_v5 = vld [vmem:[#allocation2 + $0x81] sm:$0xff]  ;;  %v1239_v12 = vld [vmem:[#allocation2 + $0x91] sm:$0xff] }
 0x1ed   : > { %2434 = vmatprep.mubr.bf16.mxu0 %v1265_v22  ;;  %4074 = vmatpush3.bf16.msra.mxu1 %v4337_v15  ;;  %v1122_v35 = vpack.c.bf16 %v1095_v5, %v1237_v23  ;;  %v1267_v31 = vpack.c.bf16 %v1240_v11, %v1239_v12 }
 0x1ee   : > { %4075 = vmatprep.subr.bf16.mxu1 %v4338_v29 }
 0x1f1   : > { %4076 = vmatpush3.bf16.msra.mxu1 %v4338_v29 }
 0x1f2   : > { %4077 = vmatprep.subr.bf16.mxu1 %v4339_v19 }
 0x1f3   : > { %2282 = vmatmul.mubr.bf16.gmra.mxu1 %v1265_v22 }
 0x1f4   : > { %2435 = vmatmul.mubr.bf16.gmra.mxu0 %v5005_v9  ;;  %2289 = vmatprep.mubr.bf16.mxu1 %v5038_v52  ;;  %v1244_v9 = vld [vmem:[#allocation2 + $0xc9] sm:$0xff] }
 0x1f5   : > { %2442 = vmatprep.mubr.bf16.mxu0 %v1266_v16  ;;  %4078 = vmatpush3.bf16.msra.mxu1 %v4339_v19  ;;  %v1269_v52 = vpack.c.bf16 %v1244_v9, %v1243_v56 }
 0x1f6   : > { %4079 = vmatprep.subr.bf16.mxu1 %v4340_v13 }
 0x1f9   : > { %4080 = vmatpush3.bf16.msra.mxu1 %v4340_v13 }
 0x1fb   : > { %2290 = vmatmul.mubr.bf16.gmra.mxu1 %v1122_v35 }
 0x1fc   : > { %2443 = vmatmul.mubr.bf16.gmra.mxu0 %v5015_v18  ;;  %2297 = vmatprep.mubr.bf16.mxu1 %v5050_v45  ;;  %v3540_v18 = vpop.f32.mrf.mxu1 }
 0x1fd   : > { %2450 = vmatprep.mubr.bf16.mxu0 %v1267_v31 }
 0x203   : > { %2298 = vmatmul.mubr.bf16.gmra.mxu1 %v1267_v31 }
 0x204   : > { %2451 = vmatmul.mubr.bf16.gmra.mxu0 %v5032_v34  ;;  %2305 = vmatprep.mubr.bf16.mxu1 %v5065_v6  ;;  %v1104_v34 = vld [vmem:[#allocation2 + $0xf1] sm:$0xff] }
 0x205   : > { %2458 = vmatprep.mubr.bf16.mxu0 %v5044_v63 }
 0x20b   : > { %2306 = vmatmul.mubr.bf16.gmra.mxu1 %v5044_v63  ;;  %v1127_v63 = vpack.c.bf16 %v4821_v17, %v1104_v34 }
 0x20c   : > { %2459 = vmatmul.mubr.bf16.gmra.mxu0 %v5036_v51  ;;  %2313 = vmatprep.mubr.bf16.mxu1 %v5071_v40  ;;  %v3541_v51 = vpop.f32.mrf.mxu1 }
 0x20d   : > { %2466 = vmatprep.mubr.bf16.mxu0 %v1269_v52  ;;  %v3542_v42 = vadd.f32 %v3541_v51, %v3540_v18 }
 0x213   : > { %2314 = vmatmul.mubr.bf16.gmra.mxu1 %v1269_v52 }
 0x214   : > { %2467 = vmatmul.mubr.bf16.gmra.mxu0 %v5057_v59  ;;  %2321 = vmatprep.mubr.bf16.mxu1 %v5081_v50 }
 0x215   : > { %2474 = vmatprep.mubr.bf16.mxu0 %v4850_v38 }
 0x21b   : > { %2322 = vmatmul.mubr.bf16.gmra.mxu1 %v4850_v38 }
 0x21c   : > { %2475 = vmatmul.mubr.bf16.gmra.mxu0 %v5063_v62  ;;  %2329 = vmatprep.mubr.bf16.mxu1 %v5087_v32 }
 0x21d   : > { %2482 = vmatprep.mubr.bf16.mxu0 %v4838_v28 }
 0x223   : > { %v3543_v45 = vpop.f32.mrf.mxu1  ;;  %2330 = vmatmul.mubr.bf16.gmra.mxu1 %v1127_v63 }
 0x224   : > { %v3649_v59 = vpop.f32.mrf.mxu0  ;;  %2483 = vmatmul.mubr.bf16.gmra.mxu0 %v5074_v49  ;;  %2337 = vmatprep.mubr.bf16.mxu1 %v5097_v53  ;;  %v4341_v53 = vld [vmem:[#allocation9 + $0x38] sm:$0xff]  }
 0x225   : > { %2490 = vmatprep.mubr.bf16.mxu0 %v4927_v54  ;;  %v3544_v38 = vpop.f32.mrf.mxu1  ;;  %4113 = vmatprep.subr.bf16.mxu0 %v4341_v53 }
 0x226   : > { %v3545_v62 = vadd.f32 %v3544_v38, %v3543_v45  ;;  %v3650_v6 = vpop.f32.mrf.mxu0  ;;  %4114 = vmatpush3.bf16.msra.mxu0 %v4341_v53  ;;  %v1112_v45 = vld [vmem:[#allocation2 + $0x151] sm:$0xff] }
 0x227   : > { %v3651_v40 = vadd.f32 %v3650_v6, %v3649_v59  ;;  %v3546_v50 = vpop.f32.mrf.mxu1 }
 0x228   : > { %v3652_v32 = vpop.f32.mrf.mxu0 }
 0x229   : > { %v5159_v28 = vadd.f32 %v3651_v40, %v5061_v36  ;;  %v3547_v37 = vpop.f32.mrf.mxu1 }
 0x22a   : > { %v3548_v17 = vadd.f32 %v3547_v37, %v3546_v50  ;;  %v3653_v41 = vpop.f32.mrf.mxu0 }
 0x22b   : > { %v3654_v33 = vadd.f32 %v3653_v41, %v3652_v32  ;;  %v3549_v55 = vpop.f32.mrf.mxu1  ;;  %2338 = vmatmul.mubr.bf16.gmra.mxu1 %v4927_v54 }
 0x22c   : > { %v3655_v49 = vpop.f32.mrf.mxu0  ;;  %2491 = vmatmul.mubr.bf16.gmra.mxu0 %v5079_v30  ;;  %2345 = vmatprep.mubr.bf16.mxu1 %v5103_v48  ;;  %v1129_v30 = vpack.c.bf16 %v4873_v57, %v1108_v60 }
 0x22d   : > { %v5164_v7 = vadd.f32 %v3654_v33, %v3542_v42  ;;  %2498 = vmatprep.mubr.bf16.mxu0 %v4966_v39  ;;  %v3550_v36 = vpop.f32.mrf.mxu1 }
 0x22e   : > { %v3551_v14 = vadd.f32 %v3550_v36, %v3549_v55  ;;  %v3656_v26 = vpop.f32.mrf.mxu0 }
 0x22f   : > { %v3657_v1 = vadd.f32 %v3656_v26, %v3655_v49  ;;  %v3552_v2 = vpop.f32.mrf.mxu1  ;;  %v1165_v49 = vld [vmem:[#allocation2 + $0x18a] sm:$0xff] }
 0x230   : > { %v3658_v15 = vpop.f32.mrf.mxu0 }
 0x231   : > { %v5167_v54 = vadd.f32 %v3657_v1, %v3545_v62  ;;  %v3553_v4 = vpop.f32.mrf.mxu1 }
 0x232   : > { %v3554_v48 = vadd.f32 %v3553_v4, %v3552_v2  ;;  %v3659_v0 = vpop.f32.mrf.mxu0 }
 0x233   : > { %v3660_v29 = vadd.f32 %v3659_v0, %v3658_v15  ;;  %v3555_v22 = vpop.f32.mrf.mxu1  ;;  %2346 = vmatmul.mubr.bf16.gmra.mxu1 %v1129_v30  ;;  %v4343_v15 = vld [vmem:[#allocation9 + $0x28] sm:$0xff]  }
 0x234   : > { %v3661_v39 = vpop.f32.mrf.mxu0  ;;  %2499 = vmatmul.mubr.bf16.gmra.mxu0 %v5090_v24  ;;  %2353 = vmatprep.mubr.bf16.mxu1 %v5113_v8  ;;  %v4342_v8 = vld [vmem:[#allocation9 + $0x30] sm:$0xff]  }
 0x235   : > { %v5172_v19 = vadd.f32 %v3660_v29, %v3548_v17  ;;  %2506 = vmatprep.mubr.bf16.mxu0 %v4982_v43  ;;  %v3556_v23 = vpop.f32.mrf.mxu1  ;;  %4115 = vmatprep.subr.bf16.mxu0 %v4342_v8  ;;  %v1116_v29 = vld [vmem:[#allocation2 + $0x181] sm:$0xff] }
 0x236   : > { %v3557_v13 = vadd.f32 %v3556_v23, %v3555_v22  ;;  %v3662_v16 = vpop.f32.mrf.mxu0  ;;  %4116 = vmatpush3.bf16.msra.mxu0 %v4342_v8  ;;  %v1261_v22 = vld [vmem:[#allocation2 + $0x199] sm:$0xff] }
 0x237   : > { %v3663_v5 = vadd.f32 %v3662_v16, %v3661_v39  ;;  %v3558_v12 = vpop.f32.mrf.mxu1  ;;  %v1262_v39 = vld [vmem:[#allocation2 + $0x1a1] sm:$0xff]  ;;  %4117 = vmatprep.subr.bf16.mxu0 %v4343_v15 }
 0x238   : > { %v3664_v57 = vpop.f32.mrf.mxu0  ;;  %v1280_v16 = vld [vmem:[#allocation2 + $0x3a] sm:$0xff] }
 0x239   : > { %v5175_v11 = vadd.f32 %v3663_v5, %v3551_v14  ;;  %v3559_v35 = vpop.f32.mrf.mxu1 }
 0x23a   : > { %v3560_v31 = vadd.f32 %v3559_v35, %v3558_v12  ;;  %v3665_v56 = vpop.f32.mrf.mxu0  ;;  %4118 = vmatpush3.bf16.msra.mxu0 %v4343_v15  ;;  %v1278_v35 = vpack.c.bf16 %v1262_v39, %v1261_v22  ;;  %v1287_v15 = vld [vmem:[#allocation2 + $0x92] sm:$0xff] }
 0x23b   : > { %v3666_v9 = vadd.f32 %v3665_v56, %v3664_v57  ;;  %v3561_v52 = vpop.f32.mrf.mxu1  ;;  %2354 = vmatmul.mubr.bf16.gmra.mxu1 %v4982_v43  ;;  %v1133_v57 = vpack.c.bf16 %v4997_v3, %v1116_v29 }
 0x23c   : > { %v3667_v24 = vpop.f32.mrf.mxu0  ;;  %2507 = vmatmul.mubr.bf16.gmra.mxu0 %v5095_v10  ;;  %2361 = vmatprep.mubr.bf16.mxu1 %v5119_v20  ;;  %v1131_v10 = vpack.c.bf16 %v4938_v44, %v1112_v45  ;;  %v1164_v44 = vld [vmem:[#allocation2 + $0x182] sm:$0xff]  ;;  %v1281_v45 = vld [vmem:[#allocation2 + $0x4a] sm:$0xff] }
 0x23d   : > { %v5180_v18 = vadd.f32 %v3666_v9, %v3554_v48  ;;  %2514 = vmatprep.mubr.bf16.mxu0 %v5002_v47  ;;  %v3562_v34 = vpop.f32.mrf.mxu1 }
 0x23e   : > { %v3563_v51 = vadd.f32 %v3562_v34, %v3561_v52  ;;  %v3668_v63 = vpop.f32.mrf.mxu0 }
 0x23f   : > { %v3669_v59 = vadd.f32 %v3668_v63, %v3667_v24  ;;  %v3564_v38 = vpop.f32.mrf.mxu1 }
 0x240   : > { %v3670_v62 = vpop.f32.mrf.mxu0 }
 0x241   : > { %v5183_v43 = vadd.f32 %v3669_v59, %v3557_v13  ;;  %v3565_v6 = vpop.f32.mrf.mxu1  ;;  %v1282_v59 = vld [vmem:[#allocation2 + $0x52] sm:$0xff] }
 0x242   : > { %v3566_v20 = vadd.f32 %v3565_v6, %v3564_v38  ;;  %v3671_v40 = vpop.f32.mrf.mxu0  ;;  %v1284_v6 = vld [vmem:[#allocation2 + $0x6a] sm:$0xff] }
 0x243   : > { %v3672_v50 = vadd.f32 %v3671_v40, %v3670_v62  ;;  %v3567_v32 = vpop.f32.mrf.mxu1  ;;  %2362 = vmatmul.mubr.bf16.gmra.mxu1 %v1131_v10  ;;  %v1283_v62 = vld [vmem:[#allocation2 + $0x62] sm:$0xff] }
 0x244   : > { %v3673_v47 = vpop.f32.mrf.mxu0  ;;  %2515 = vmatmul.mubr.bf16.gmra.mxu0 %v5106_v58  ;;  %2369 = vmatprep.mubr.bf16.mxu1 %v5127_v46  ;;  %v5193_v58 = vpack.c.bf16 %v1165_v49, %v1164_v44  ;;  %v4344_v44 = vld [vmem:[#allocation9 + $0x20] sm:$0xff]  }
 0x245   : > { %v5188_v37 = vadd.f32 %v3672_v50, %v3560_v31  ;;  %2522 = vmatprep.mubr.bf16.mxu0 %v5009_v21  ;;  %v3568_v17 = vpop.f32.mrf.mxu1  ;;  %4119 = vmatprep.subr.bf16.mxu0 %v4344_v44 }
 0x246   : > { %v3569_v41 = vadd.f32 %v3568_v17, %v3567_v32  ;;  %v3674_v42 = vpop.f32.mrf.mxu0  ;;  %4120 = vmatpush3.bf16.msra.mxu0 %v4344_v44  ;;  %v1295_v44 = vld [vmem:[#allocation2 + $0xf2] sm:$0xff] }
 0x247   : > { %v3675_v33 = vadd.f32 %v3674_v42, %v3673_v47  ;;  %v3570_v55 = vpop.f32.mrf.mxu1 }
 0x248   : > { %v3676_v53 = vpop.f32.mrf.mxu0 }
 0x249   : > { %v5191_v36 = vadd.f32 %v3675_v33, %v3563_v51  ;;  %v3571_v14 = vpop.f32.mrf.mxu1 }
 0x24a   : > { %v3572_v26 = vadd.f32 %v3571_v14, %v3570_v55  ;;  %v3677_v60 = vpop.f32.mrf.mxu0 }
 0x24b   : > { %v3678_v46 = vadd.f32 %v3677_v60, %v3676_v53  ;;  %v3573_v1 = vpop.f32.mrf.mxu1  ;;  %2370 = vmatmul.mubr.bf16.gmra.mxu1 %v5009_v21  ;;  %v1279_v21 = vld [vmem:[#allocation2 + $0x32] sm:$0xff]  ;;  %v1285_v60 = vld [vmem:[#allocation2 + $0x7a] sm:$0xff] }
 0x24c   : > { %v3679_v2 = vpop.f32.mrf.mxu0  ;;  %2523 = vmatmul.mubr.bf16.gmra.mxu0 %v5111_v25  ;;  %2377 = vmatprep.mubr.bf16.mxu1 %v5193_v58  ;;  %v1311_v56 = vpack.c.bf16 %v1280_v16, %v1279_v21 }
 0x24d   : > { %v5198_v4 = vadd.f32 %v3678_v46, %v3566_v20  ;;  %2530 = vmatprep.mubr.bf16.mxu0 %v5013_v27  ;;  %v3574_v30 = vpop.f32.mrf.mxu1  ;;  %v4349_v20 = vld [vmem:[#allocation2] sm:$0xff] }
 0x24e   : > { %v3575_v48 = vadd.f32 %v3574_v30, %v3573_v1  ;;  %v3680_v0 = vpop.f32.mrf.mxu0  ;;  %v1230_v40 = vpack.c.bf16 %v4349_v20, %v4349_v20  ;;  %v1286_v46 = vld [vmem:[#allocation2 + $0x82] sm:$0xff]  ;;  %v1288_v30 = vld [vmem:[#allocation2 + $0x9a] sm:$0xff] }
 0x24f   : > { %v3681_v23 = vadd.f32 %v3680_v0, %v3679_v2  ;;  %v3576_v13 = vpop.f32.mrf.mxu1  ;;  %v1314_v22 = vpack.c.bf16 %v1286_v46, %v1285_v60 }
 0x250   : > { %v3682_v25 = vpop.f32.mrf.mxu0 }
 0x251   : > { %v5201_v5 = vadd.f32 %v3681_v23, %v3569_v41  ;;  %v3577_v12 = vpop.f32.mrf.mxu1  ;;  %v1313_v41 = vpack.c.bf16 %v1284_v6, %v1283_v62 }
 0x252   : > { %v3578_v27 = vadd.f32 %v3577_v12, %v3576_v13  ;;  %v3683_v31 = vpop.f32.mrf.mxu0  ;;  %v1315_v13 = vpack.c.bf16 %v1288_v30, %v1287_v15 }
 0x253   : > { %v3684_v9 = vadd.f32 %v3683_v31, %v3682_v25  ;;  %v3579_v52 = vpop.f32.mrf.mxu1  ;;  %2378 = vmatmul.mubr.bf16.gmra.mxu1 %v1133_v57  ;;  %v1289_v31 = vld [vmem:[#allocation2 + $0xaa] sm:$0xff] }
 0x254   : > { %v3685_v24 = vpop.f32.mrf.mxu0  ;;  %2531 = vmatmul.mubr.bf16.gmra.mxu0 %v5122_v61  ;;  %4081 = vmatprep.mubr.bf16.mxu1 %v1311_v56  ;;  %v1312_v61 = vpack.c.bf16 %v1282_v59, %v1281_v45  ;;  %v1290_v56 = vld [vmem:[#allocation2 + $0xb2] sm:$0xff] }
 0x255   : > { %v5205_v8 = vadd.f32 %v3684_v9, %v3572_v26  ;;  %v3580_v34 = vpop.f32.mrf.mxu1  ;;  %2538 = vmatprep.mubr.bf16.mxu0 %v1278_v35  ;;  %v1316_v59 = vpack.c.bf16 %v1290_v56, %v1289_v31 }
 0x256   : > { %v3581_v51 = vadd.f32 %v3580_v34, %v3579_v52  ;;  %v3686_v63 = vpop.f32.mrf.mxu0  ;;  %v1292_v34 = vld [vmem:[#allocation2 + $0xca] sm:$0xff] }
 0x257   : > { %v3687_v3 = vadd.f32 %v3686_v63, %v3685_v24  ;;  %v3582_v38 = vpop.f32.mrf.mxu1  ;;  %v1291_v24 = vld [vmem:[#allocation2 + $0xc2] sm:$0xff] }
 0x258   : > { %v3688_v10 = vpop.f32.mrf.mxu0  ;;  %v1317_v62 = vpack.c.bf16 %v1292_v34, %v1291_v24 }
 0x259   : > { %v5207_v50 = vadd.f32 %v3687_v3, %v3575_v48  ;;  %v3583_v32 = vpop.f32.mrf.mxu1 }
 0x25a   : > { %v3584_v47 = vadd.f32 %v3583_v32, %v3582_v38  ;;  %v3689_v17 = vpop.f32.mrf.mxu0 }
 0x25b   : > { %v3690_v42 = vadd.f32 %v3689_v17, %v3688_v10  ;;  %v3585_v33 = vpop.f32.mrf.mxu1  ;;  %4082 = vmatmul.mubr.bf16.vlgmr.msra.gmra.mxu1 %v1312_v61 }
 0x25c   : > { %v3691_v55 = vpop.f32.mrf.mxu0  ;;  %2539 = vmatmul.mubr.bf16.gmra.mxu0 %v1230_v40  ;;  %4085 = vmatprep.mubr.bf16.mxu1 %v1313_v41  ;;  %v4345_v40 = vld [vmem:[#allocation9 + $0x18] sm:$0xff]   ;;  %v1293_v41 = vld [vmem:[#allocation2 + $0xda] sm:$0xff] }
 0x25d   : > { %v5209_v49 = vadd.f32 %v3690_v42, %v3578_v27  ;;  %v3586_v53 = vpop.f32.mrf.mxu1  ;;  %v1294_v42 = vld [vmem:[#allocation2 + $0xe2] sm:$0xff]  ;;  %4121 = vmatprep.subr.bf16.mxu0 %v4345_v40 }
 0x25e   : > { %v3587_v14 = vadd.f32 %v3586_v53, %v3585_v33  ;;  %v3692_v26 = vpop.f32.mrf.mxu0  ;;  %v1296_v53 = vld [vmem:[#allocation2 + $0xfa] sm:$0xff]  ;;  %4122 = vmatpush3.bf16.msra.mxu0 %v4345_v40  ;;  %v1318_v46 = vpack.c.bf16 %v1294_v42, %v1293_v41  ;;  %v1303_v41 = vld [vmem:[#allocation2 + $0x152] sm:$0xff] }
 0x25f   : > { %v3693_v1 = vadd.f32 %v3692_v26, %v3691_v55  ;;  %v3588_v2 = vpop.f32.mrf.mxu1  ;;  %v1319_v15 = vpack.c.bf16 %v1296_v53, %v1295_v44  ;;  %v1301_v40 = vld [vmem:[#allocation2 + $0x13a] sm:$0xff] }
 0x260   : > { %v3694_v48 = vpop.f32.mrf.mxu0  ;;  %v1304_v42 = vld [vmem:[#allocation2 + $0x15a] sm:$0xff] }
 0x261   : > { %v5211_v0 = vadd.f32 %v3693_v1, %v3581_v51  ;;  %v3589_v29 = vpop.f32.mrf.mxu1 }
 0x262   : > { %v3590_v39 = vadd.f32 %v3589_v29, %v3588_v2  ;;  %v3695_v23 = vpop.f32.mrf.mxu0 }
 0x263   : > { %v3696_v21 = vadd.f32 %v3695_v23, %v3694_v48  ;;  %v3591_v16 = vpop.f32.mrf.mxu1  ;;  %4086 = vmatmul.mubr.bf16.gmra.mxu1 %v1314_v22 }
 0x264   : > { %v3697_v25 = vpop.f32.mrf.mxu0  ;;  %4089 = vmatprep.mubr.bf16.mxu1 %v1315_v13 }
 0x265   : > { %v5213_v12 = vadd.f32 %v3696_v21, %v3584_v47  ;;  %v3592_v57 = vpop.f32.mrf.mxu1  ;;  %v1297_v21 = vld [vmem:[#allocation2 + $0x10a] sm:$0xff] }
 0x266   : > { %v3593_v35 = vadd.f32 %v3592_v57, %v3591_v16  ;;  %v3698_v27 = vpop.f32.mrf.mxu0  ;;  %v1298_v16 = vld [vmem:[#allocation2 + $0x112] sm:$0xff] }
 0x267   : > { %v3699_v9 = vadd.f32 %v3698_v27, %v3697_v25  ;;  %v3594_v52 = vpop.f32.mrf.mxu1  ;;  %v1300_v27 = vld [vmem:[#allocation2 + $0x12a] sm:$0xff] }
 0x268   : > { %v3700_v51 = vpop.f32.mrf.mxu0 }
 0x269   : > { %v5215_v63 = vadd.f32 %v3699_v9, %v3587_v14  ;;  %v3595_v45 = vpop.f32.mrf.mxu1 }
 0x26a   : > { %v3596_v3 = vadd.f32 %v3595_v45, %v3594_v52  ;;  %v3701_v38 = vpop.f32.mrf.mxu0  ;;  %v1320_v52 = vpack.c.bf16 %v1298_v16, %v1297_v21  ;;  %v1306_v21 = vld [vmem:[#allocation2 + $0x172] sm:$0xff] }
 0x26b   : > { %v3702_v6 = vadd.f32 %v3701_v38, %v3700_v51  ;;  %v3597_v10 = vpop.f32.mrf.mxu1  ;;  %4090 = vmatmul.mubr.bf16.gmra.mxu1 %v1316_v59  ;;  %v4346_v38 = vld [vmem:[#allocation9 + $0x10] sm:$0xff]  }
 0x26c   : > { %v3703_v20 = vpop.f32.mrf.mxu0  ;;  %4093 = vmatprep.mubr.bf16.mxu1 %v1317_v62  ;;  %4123 = vmatprep.subr.bf16.mxu0 %v4346_v38 }
 0x26d   : > { %v5217_v32 = vadd.f32 %v3702_v6, %v3590_v39  ;;  %v3598_v61 = vpop.f32.mrf.mxu1  ;;  %4124 = vmatpush3.bf16.msra.mxu0 %v4346_v38 }
 0x26e   : > { %v3599_v47 = vadd.f32 %v3598_v61, %v3597_v10  ;;  %v3704_v17 = vpop.f32.mrf.mxu0  ;;  %v1302_v61 = vld [vmem:[#allocation2 + $0x142] sm:$0xff] }
 0x26f   : > { %v3705_v33 = vadd.f32 %v3704_v17, %v3703_v20  ;;  %v3600_v55 = vpop.f32.mrf.mxu1  ;;  %v1322_v53 = vpack.c.bf16 %v1302_v61, %v1301_v40 }
 0x270   : > { %v3706_v14 = vpop.f32.mrf.mxu0 }
 0x271   : > { %v5219_v26 = vadd.f32 %v3705_v33, %v3593_v35  ;;  %v3601_v60 = vpop.f32.mrf.mxu1  ;;  %v1299_v35 = vld [vmem:[#allocation2 + $0x122] sm:$0xff] }
 0x272   : > { %v3602_v1 = vadd.f32 %v3601_v60, %v3600_v55  ;;  %v3707_v2 = vpop.f32.mrf.mxu0  ;;  %v1321_v51 = vpack.c.bf16 %v1300_v27, %v1299_v35 }
 0x273   : > { %v3708_v30 = vadd.f32 %v3707_v2, %v3706_v14  ;;  %v3603_v48 = vpop.f32.mrf.mxu1  ;;  %4094 = vmatmul.mubr.bf16.gmra.mxu1 %v1318_v46  ;;  %v1323_v46 = vpack.c.bf16 %v1304_v42, %v1303_v41 }
 0x274   : > { %v3709_v29 = vpop.f32.mrf.mxu0  ;;  %4097 = vmatprep.mubr.bf16.mxu1 %v1319_v15 }
 0x275   : > { %v5221_v22 = vadd.f32 %v3708_v30, %v3596_v3  ;;  %v3604_v39 = vpop.f32.mrf.mxu1 }
 0x276   : > { %v3605_v23 = vadd.f32 %v3604_v39, %v3603_v48  ;;  %v3710_v13 = vpop.f32.mrf.mxu0 }
 0x277   : > { %v3711_v25 = vadd.f32 %v3710_v13, %v3709_v29  ;;  %v3606_v57 = vpop.f32.mrf.mxu1  ;;  %v1305_v13 = vld [vmem:[#allocation2 + $0x16a] sm:$0xff] }
 0x278   : > { %v3712_v31 = vpop.f32.mrf.mxu0  ;;  %v1324_v27 = vpack.c.bf16 %v1306_v21, %v1305_v13 }
 0x279   : > { %v5223_v56 = vadd.f32 %v3711_v25, %v3599_v47  ;;  %v3607_v9 = vpop.f32.mrf.mxu1 }
 0x27a   : > { %v3608_v24 = vadd.f32 %v3607_v9, %v3606_v57  ;;  %v3713_v34 = vpop.f32.mrf.mxu0 }
 0x27b   : > { %v3714_v45 = vadd.f32 %v3713_v34, %v3712_v31  ;;  %v3609_v59 = vpop.f32.mrf.mxu1  ;;  %4098 = vmatmul.mubr.bf16.gmra.mxu1 %v1320_v52 }
 0x27c   : > { %v3715_v3 = vpop.f32.mrf.mxu0  ;;  %4101 = vmatprep.mubr.bf16.mxu1 %v1321_v51 }
 0x27d   : > { %v5225_v62 = vadd.f32 %v3714_v45, %v3602_v1  ;;  %v3610_v6 = vpop.f32.mrf.mxu1  ;;  %v1310_v45 = vld [vmem:[#allocation2 + $0x1a2] sm:$0xff] }
 0x27e   : > { %v3611_v10 = vadd.f32 %v3610_v6, %v3609_v59  ;;  %v3716_v20 = vpop.f32.mrf.mxu0  ;;  %v4347_v59 = vld [vmem:[#allocation9 + $0x8] sm:$0xff]  }
 0x27f   : > { %v3717_v47 = vadd.f32 %v3716_v20, %v3715_v3  ;;  %v3612_v17 = vpop.f32.mrf.mxu1  ;;  %4125 = vmatprep.subr.bf16.mxu0 %v4347_v59 }
 0x280   : > { %v3718_v33 = vpop.f32.mrf.mxu0  ;;  %4126 = vmatpush3.bf16.msra.mxu0 %v4347_v59 }
 0x281   : > { %v5227_v55 = vadd.f32 %v3717_v47, %v3605_v23  ;;  %v3613_v44 = vpop.f32.mrf.mxu1 }
 0x282   : > { %v3614_v14 = vadd.f32 %v3613_v44, %v3612_v17  ;;  %v3719_v60 = vpop.f32.mrf.mxu0 }
 0x283   : > { %v3720_v1 = vadd.f32 %v3719_v60, %v3718_v33  ;;  %v3615_v2 = vpop.f32.mrf.mxu1  ;;  %4102 = vmatmul.mubr.bf16.gmra.mxu1 %v1322_v53 }
 0x284   : > { %v3721_v15 = vpop.f32.mrf.mxu0  ;;  %4105 = vmatprep.mubr.bf16.mxu1 %v1323_v46 }
 0x285   : > { %v5229_v30 = vadd.f32 %v3720_v1, %v3608_v24  ;;  %v3616_v48 = vpop.f32.mrf.mxu1  ;;  %v1309_v24 = vld [vmem:[#allocation2 + $0x19a] sm:$0xff] }
 0x286   : > { %v3617_v29 = vadd.f32 %v3616_v48, %v3615_v2  ;;  %v3722_v39 = vpop.f32.mrf.mxu0  ;;  %v1326_v61 = vpack.c.bf16 %v1310_v45, %v1309_v24 }
 0x287   : > { %v3723_v16 = vadd.f32 %v3722_v39, %v3721_v15  ;;  %v3618_v23 = vpop.f32.mrf.mxu1 }
 0x288   : > { %v3724_v25 = vpop.f32.mrf.mxu0 }
 0x289   : > { %v5231_v57 = vadd.f32 %v3723_v16, %v3611_v10  ;;  %v3619_v35 = vpop.f32.mrf.mxu1 }
 0x28a   : > { %v3620_v31 = vadd.f32 %v3619_v35, %v3618_v23  ;;  %v3725_v9 = vpop.f32.mrf.mxu0 }
 0x28b   : > { %v3726_v52 = vadd.f32 %v3725_v9, %v3724_v25  ;;  %v3621_v34 = vpop.f32.mrf.mxu1  ;;  %4106 = vmatmul.mubr.bf16.gmra.mxu1 %v1324_v27 }
 0x28c   : > { %v3727_v51 = vpop.f32.mrf.mxu0  ;;  %4109 = vmatprep.mubr.bf16.mxu1 %v5193_v58 }
 0x28d   : > { %v5234_v3 = vadd.f32 %v3726_v52, %v3614_v14  ;;  %v3622_v38 = vpop.f32.mrf.mxu1 }
 0x28e   : > { %v3623_v6 = vadd.f32 %v3622_v38, %v3621_v34  ;;  %v3728_v20 = vpop.f32.mrf.mxu0 }
 0x28f   : > { %v3729_v10 = vadd.f32 %v3728_v20, %v3727_v51  ;;  %v3624_v40 = vpop.f32.mrf.mxu1  ;;  %v4348_v20 = vld [vmem:[#allocation9] sm:$0xff]  }
 0x290   : > { %v3730_v47 = vpop.f32.mrf.mxu0  ;;  %4127 = vmatprep.subr.bf16.mxu0 %v4348_v20 }
 0x291   : > { %v5236_v17 = vadd.f32 %v3729_v10, %v3617_v29  ;;  %v3625_v41 = vpop.f32.mrf.mxu1  ;;  %4128 = vmatpush3.bf16.msra.mxu0 %v4348_v20 }
 0x292   : > { %v3626_v42 = vadd.f32 %v3625_v41, %v3624_v40  ;;  %v3731_v33 = vpop.f32.mrf.mxu0 }
 0x293   : > { %v3732_v58 = vadd.f32 %v3731_v33, %v3730_v47  ;;  %v3627_v44 = vpop.f32.mrf.mxu1  ;;  %4110 = vmatmul.mubr.bf16.gmra.mxu1 %v1326_v61 }
 0x294   : > { %v3733_v53 = vpop.f32.mrf.mxu0 }
 0x295   : > { %v5238_v14 = vadd.f32 %v3732_v58, %v3620_v31  ;;  %v3628_v60 = vpop.f32.mrf.mxu1 }
 0x296   : > { %v3629_v46 = vadd.f32 %v3628_v60, %v3627_v44  ;;  %v3734_v1 = vpop.f32.mrf.mxu0 }
 0x297   : > { %v3735_v2 = vadd.f32 %v3734_v1, %v3733_v53  ;;  %v3630_v15 = vpop.f32.mrf.mxu1 }
 0x298   : > { %v3736_v48 = vpop.f32.mrf.mxu0 }
 0x299   : > { %v5240_v39 = vadd.f32 %v3735_v2, %v3623_v6  ;;  %v3631_v13 = vpop.f32.mrf.mxu1 }
 0x29a   : > { %v3632_v29 = vadd.f32 %v3631_v13, %v3630_v15  ;;  %v3737_v21 = vpop.f32.mrf.mxu0 }
 0x29b   : > { %v3738_v16 = vadd.f32 %v3737_v21, %v3736_v48  ;;  %v3761_v23 = vpop.f32.mrf.mxu1 }
 0x29c   : > { %v3739_v25 = vpop.f32.mrf.mxu0 }
 0x29d   : > { %v5242_v35 = vadd.f32 %v3738_v16, %v3626_v42  ;;  %v3762_v27 = vpop.f32.mrf.mxu1 }
 0x29e   : > { %v3740_v9 = vpop.f32.mrf.mxu0  ;;  %v3763_v31 = vadd.f32 %v3762_v27, %v3761_v23 }
 0x29f   : > { %v3741_v52 = vadd.f32 %v3740_v9, %v3739_v25  ;;  %v3764_v34 = vpop.f32.mrf.mxu1 }
 0x2a0   : > { %v2260_v51 = vadd.f32 %v3763_v31, %v5159_v28  ;;  %v3742_v24 = vpop.f32.mrf.mxu0 }
 0x2a1   : > { %v5245_v45 = vadd.f32 %v3741_v52, %v3629_v46  ;;  %v3765_v59 = vpop.f32.mrf.mxu1 }
 0x2a2   : > { %v3743_v38 = vpop.f32.mrf.mxu0  ;;  %v3766_v6 = vadd.f32 %v3765_v59, %v3764_v34 }
 0x2a3   : > { %v3744_v10 = vadd.f32 %v3743_v38, %v3742_v24  ;;  %v3767_v40 = vpop.f32.mrf.mxu1 }
 0x2a4   : > { %v2263_v61 = vadd.f32 %v3766_v6, %v5164_v7  ;;  %v3873_v47 = vpop.f32.mrf.mxu0 }
 0x2a5   : > { %v5248_v41 = vadd.f32 %v3744_v10, %v3632_v29  ;;  %v3768_v42 = vpop.f32.mrf.mxu1 }
 0x2a6   : > { %v3769_v33 = vadd.f32 %v3768_v42, %v3767_v40  ;;  %v3874_v58 = vpop.f32.mrf.mxu0 }
 0x2a7   : > { %5848 = vst [vmem:[#allocation17_spill] sm:$0xff] %v5248_v41  ;;  %v3875_v28 = vadd.f32 %v3874_v58, %v3873_v47  ;;  %v3770_v44 = vpop.f32.mrf.mxu1 }
 0x2a8   : > { %v5251_v53 = vadd.f32 %v3769_v33, %v5167_v54  ;;  %v3876_v60 = vpop.f32.mrf.mxu0 }
 0x2a9   : > { %v3771_v46 = vpop.f32.mrf.mxu1  ;;  %v5253_v1 = vadd.f32 %v3875_v28, %v2260_v51 }
 0x2aa   : > { %v3772_v2 = vadd.f32 %v3771_v46, %v3770_v44  ;;  %v3877_v15 = vpop.f32.mrf.mxu0 }
 0x2ab   : > { %v3878_v7 = vadd.f32 %v3877_v15, %v3876_v60  ;;  %v3773_v48 = vpop.f32.mrf.mxu1 }
 0x2ac   : > { %v5256_v13 = vadd.f32 %v3772_v2, %v5172_v19  ;;  %v5258_v29 = vpop.f32.mrf.mxu0 }
 0x2ad   : > { %v3774_v21 = vpop.f32.mrf.mxu1  ;;  %v5260_v16 = vadd.f32 %v3878_v7, %v2263_v61 }
 0x2ae   : > { %v3775_v23 = vadd.f32 %v3774_v21, %v3773_v48  ;;  %v5262_v25 = vpop.f32.mrf.mxu0 }
 0x2af   : > { %v3776_v54 = vpop.f32.mrf.mxu1 }
 0x2b0   : > { %v5265_v27 = vadd.f32 %v3775_v23, %v5175_v11  ;;  %v5267_v9 = vpop.f32.mrf.mxu0 }
 0x2b1   : > { %v3777_v31 = vpop.f32.mrf.mxu1 }
 0x2b2   : > { %v3778_v52 = vadd.f32 %v3777_v31, %v3776_v54  ;;  %v5269_v34 = vpop.f32.mrf.mxu0 }
 0x2b3   : > { %v3779_v19 = vpop.f32.mrf.mxu1 }
 0x2b4   : > { %v5272_v51 = vadd.f32 %v3778_v52, %v5180_v18  ;;  %v5274_v24 = vpop.f32.mrf.mxu0 }
 0x2b5   : > { %v3780_v59 = vpop.f32.mrf.mxu1 }
 0x2b6   : > { %v3781_v38 = vadd.f32 %v3780_v59, %v3779_v19  ;;  %v5276_v6 = vpop.f32.mrf.mxu0 }
 0x2b7   : > { %v3782_v20 = vpop.f32.mrf.mxu1 }
 0x2b8   : > { %v5279_v11 = vadd.f32 %v3781_v38, %v5183_v43  ;;  %v5281_v10 = vpop.f32.mrf.mxu0 }
 0x2b9   : > { %v3783_v40 = vpop.f32.mrf.mxu1 }
 0x2ba   : > { %v3784_v61 = vadd.f32 %v3783_v40, %v3782_v20  ;;  %v5283_v47 = vpop.f32.mrf.mxu0 }
 0x2bb   : > { %v3785_v42 = vpop.f32.mrf.mxu1 }
 0x2bc   : > { %v5286_v18 = vadd.f32 %v3784_v61, %v5188_v37  ;;  %v5288_v33 = vpop.f32.mrf.mxu0 }
 0x2bd   : > { %v3786_v58 = vpop.f32.mrf.mxu1 }
 0x2be   : > { %v3787_v28 = vadd.f32 %v3786_v58, %v3785_v42  ;;  %v5290_v44 = vpop.f32.mrf.mxu0 }
 0x2bf   : > { %v3788_v60 = vpop.f32.mrf.mxu1 }
 0x2c0   : > { %v5293_v43 = vadd.f32 %v3787_v28, %v5191_v36  ;;  %v5295_v46 = vpop.f32.mrf.mxu0 }
 0x2c1   : > { %v3789_v2 = vpop.f32.mrf.mxu1 }
 0x2c2   : > { %v3790_v15 = vadd.f32 %v3789_v2, %v3788_v60  ;;  %v5297_v7 = vpop.f32.mrf.mxu0 }
 0x2c3   : > { %v3791_v48 = vpop.f32.mrf.mxu1 }
 0x2c4   : > { %v5300_v37 = vadd.f32 %v3790_v15, %v5198_v4  ;;  %v5302_v21 = vpop.f32.mrf.mxu0 }
 0x2c5   : > { %v3792_v23 = vpop.f32.mrf.mxu1 }
 0x2c6   : > { %5849 = vst [vmem:[#allocation18_spill] sm:$0xff] %v5300_v37  ;;  %v3793_v54 = vadd.f32 %v3792_v23, %v3791_v48  ;;  %v5304_v31 = vpop.f32.mrf.mxu0 }
 0x2c7   : > { %v3794_v52 = vpop.f32.mrf.mxu1 }
 0x2c8   : > { %v5307_v36 = vadd.f32 %v3793_v54, %v5201_v5  ;;  %v5309_v19 = vpop.f32.mrf.mxu0 }
 0x2c9   : > { %v3795_v59 = vpop.f32.mrf.mxu1 }
 0x2ca   : > { %v3796_v38 = vadd.f32 %v3795_v59, %v3794_v52  ;;  %v5311_v20 = vpop.f32.mrf.mxu0 }
 0x2cb   : > { %v3797_v40 = vpop.f32.mrf.mxu1 }
 0x2cc   : > { %v5314_v4 = vadd.f32 %v3796_v38, %v5205_v8  ;;  %v5316_v61 = vpop.f32.mrf.mxu0 }
 0x2cd   : > { %v3798_v42 = vpop.f32.mrf.mxu1 }
 0x2ce   : > { %v3799_v58 = vadd.f32 %v3798_v42, %v3797_v40  ;;  %v5318_v28 = vpop.f32.mrf.mxu0 }
 0x2cf   : > { %v3800_v60 = vpop.f32.mrf.mxu1 }
 0x2d0   : > { %v5321_v5 = vadd.f32 %v3799_v58, %v5207_v50  ;;  %v5323_v2 = vpop.f32.mrf.mxu0 }
 0x2d1   : > { %v3801_v15 = vpop.f32.mrf.mxu1 }
 0x2d2   : > { %5850 = vst [vmem:[#allocation19_spill] sm:$0xff] %v5321_v5  ;;  %v3802_v48 = vadd.f32 %v3801_v15, %v3800_v60  ;;  %v5325_v23 = vpop.f32.mrf.mxu0 }
 0x2d3   : > { %v3803_v54 = vpop.f32.mrf.mxu1 }
 0x2d4   : > { %v5328_v8 = vadd.f32 %v3802_v48, %v5209_v49  ;;  %v5330_v52 = vpop.f32.mrf.mxu0 }
 0x2d5   : > { %v3804_v59 = vpop.f32.mrf.mxu1 }
 0x2d6   : > { %5851 = vst [vmem:[#allocation20_spill] sm:$0xff] %v5328_v8  ;;  %v3805_v38 = vadd.f32 %v3804_v59, %v3803_v54  ;;  %v5332_v40 = vpop.f32.mrf.mxu0 }
 0x2d7   : > { %v3806_v42 = vpop.f32.mrf.mxu1 }
 0x2d8   : > { %v5335_v50 = vadd.f32 %v3805_v38, %v5211_v0  ;;  %v5337_v58 = vpop.f32.mrf.mxu0 }
 0x2d9   : > { %5853 = vst [vmem:[#allocation22_spill] sm:$0xff] %v5337_v58  ;;  %v3807_v41 = vpop.f32.mrf.mxu1 }
 0x2da   : > { %5852 = vst [vmem:[#allocation21_spill] sm:$0xff] %v5335_v50  ;;  %v3808_v60 = vadd.f32 %v3807_v41, %v3806_v42  ;;  %v5339_v15 = vpop.f32.mrf.mxu0 }
 0x2db   : > { %5854 = vst [vmem:[#allocation23_spill] sm:$0xff] %v5339_v15  ;;  %v3809_v5 = vpop.f32.mrf.mxu1 }
 0x2dc   : > { %v5342_v49 = vadd.f32 %v3808_v60, %v5213_v12  ;;  %v5344_v48 = vpop.f32.mrf.mxu0 }
 0x2dd   : > { %v3810_v8 = vpop.f32.mrf.mxu1 }
 0x2de   : > { %5855 = vst [vmem:[#allocation24_spill] sm:$0xff] %v5342_v49  ;;  %v3811_v54 = vadd.f32 %v3810_v8, %v3809_v5  ;;  %v5346_v59 = vpop.f32.mrf.mxu0 }
 0x2df   : > { %v3812_v37 = vpop.f32.mrf.mxu1 }
 0x2e0   : > { %v5349_v0 = vadd.f32 %v3811_v54, %v5215_v63  ;;  %v5351_v38 = vpop.f32.mrf.mxu0 }
 0x2e1   : > { %v3813_v58 = vpop.f32.mrf.mxu1 }
 0x2e2   : > { %5856 = vst [vmem:[#allocation25_spill] sm:$0xff] %v5349_v0  ;;  %v3814_v41 = vadd.f32 %v3813_v58, %v3812_v37  ;;  %v5353_v42 = vpop.f32.mrf.mxu0 }
 0x2e3   : > { %5857 = vst [vmem:[#allocation26_spill] sm:$0xff] %v5353_v42  ;;  %v3815_v15 = vpop.f32.mrf.mxu1 }
 0x2e4   : > { %v5356_v12 = vadd.f32 %v3814_v41, %v5217_v32  ;;  %v5358_v60 = vpop.f32.mrf.mxu0 }
 0x2e5   : > { %v3816_v49 = vpop.f32.mrf.mxu1 }
 0x2e6   : > { %5858 = vst [vmem:[#allocation27_spill] sm:$0xff] %v5356_v12  ;;  %v3817_v5 = vadd.f32 %v3816_v49, %v3815_v15  ;;  %v5360_v8 = vpop.f32.mrf.mxu0 }
 0x2e7   : > { %5859 = vst [vmem:[#allocation28_spill] sm:$0xff] %v5360_v8  ;;  %v3818_v50 = vpop.f32.mrf.mxu1 }
 0x2e8   : > { %v5363_v63 = vadd.f32 %v3817_v5, %v5219_v26  ;;  %v5365_v54 = vpop.f32.mrf.mxu0 }
 0x2e9   : > { %5861 = vst [vmem:[#allocation30_spill] sm:$0xff] %v5365_v54  ;;  %v3819_v0 = vpop.f32.mrf.mxu1 }
 0x2ea   : > { %5860 = vst [vmem:[#allocation29_spill] sm:$0xff] %v5363_v63  ;;  %v3820_v37 = vadd.f32 %v3819_v0, %v3818_v50  ;;  %v5367_v58 = vpop.f32.mrf.mxu0 }
 0x2eb   : > { %5862 = vst [vmem:[#allocation31_spill] sm:$0xff] %v5367_v58  ;;  %v3821_v42 = vpop.f32.mrf.mxu1 }
 0x2ec   : > { %v5370_v32 = vadd.f32 %v3820_v37, %v5221_v22  ;;  %v5372_v41 = vpop.f32.mrf.mxu0 }
 0x2ed   : > { %v3822_v12 = vpop.f32.mrf.mxu1 }
 0x2ee   : > { %5863 = vst [vmem:[#allocation32_spill] sm:$0xff] %v5370_v32  ;;  %v3823_v15 = vadd.f32 %v3822_v12, %v3821_v42  ;;  %v5374_v49 = vpop.f32.mrf.mxu0 }
 0x2ef   : > { %v3824_v8 = vpop.f32.mrf.mxu1 }
 0x2f0   : > { %v5377_v26 = vadd.f32 %v3823_v15, %v5223_v56  ;;  %v5379_v5 = vpop.f32.mrf.mxu0 }
 0x2f1   : > { %5865 = vst [vmem:[#allocation34_spill] sm:$0xff] %v5379_v5  ;;  %v3825_v54 = vpop.f32.mrf.mxu1 }
 0x2f2   : > { %5864 = vst [vmem:[#allocation33_spill] sm:$0xff] %v5377_v26  ;;  %v3826_v50 = vadd.f32 %v3825_v54, %v3824_v8  ;;  %v5381_v0 = vpop.f32.mrf.mxu0 }
 0x2f3   : > { %v3827_v58 = vpop.f32.mrf.mxu1 }
 0x2f4   : > { %v5384_v22 = vadd.f32 %v3826_v50, %v5225_v62  ;;  %v5386_v37 = vpop.f32.mrf.mxu0 }
 0x2f5   : > { %5867 = vst [vmem:[#allocation36_spill] sm:$0xff] %v5386_v37  ;;  %v3828_v32 = vpop.f32.mrf.mxu1 }
 0x2f6   : > { %5866 = vst [vmem:[#allocation35_spill] sm:$0xff] %v5384_v22  ;;  %v3829_v42 = vadd.f32 %v3828_v32, %v3827_v58  ;;  %v5391_v56 = vpop.f32.mrf.mxu0 }
 0x2f7   : > { %v3830_v12 = vpop.f32.mrf.mxu1 }
 0x2f8   : > { %v5389_v63 = vadd.f32 %v3829_v42, %v5227_v55  ;;  %v5393_v8 = vpop.f32.mrf.mxu0 }
 0x2f9   : > { %v3831_v15 = vpop.f32.mrf.mxu1  ;;  %5869 = vst [vmem:[#allocation38_spill] sm:$0xff] %v5393_v8 }
 0x2fa   : > { %5868 = vst [vmem:[#allocation37_spill] sm:$0xff] %v5389_v63  ;;  %v3832_v26 = vadd.f32 %v3831_v15, %v3830_v12  ;;  %v5398_v37 = vpop.f32.mrf.mxu0 }
 0x2fb   : > { %v3833_v5 = vpop.f32.mrf.mxu1 }
 0x2fc   : > { %v5396_v54 = vadd.f32 %v3832_v26, %v5229_v30  ;;  %v5403_v63 = vpop.f32.mrf.mxu0 }
 0x2fd   : > { %v3834_v62 = vpop.f32.mrf.mxu1 }
 0x2fe   : > { %5870 = vst [vmem:[#allocation39_spill] sm:$0xff] %v5396_v54  ;;  %v3835_v50 = vadd.f32 %v3834_v62, %v3833_v5  ;;  %v5408_v26 = vpop.f32.mrf.mxu0 }
 0x2ff   : > { %v3836_v22 = vpop.f32.mrf.mxu1 }
 0x300   : > { %v5401_v58 = vadd.f32 %v3835_v50, %v5231_v57  ;;  %v5413_v50 = vpop.f32.mrf.mxu0 }
 0x301   : > { %v3837_v55 = vpop.f32.mrf.mxu1 }
 0x302   : > { %5871 = vst [vmem:[#allocation40_spill] sm:$0xff] %v5401_v58  ;;  %v3838_v32 = vadd.f32 %v3837_v55, %v3836_v22 }
 0x303   : > { %v3839_v42 = vpop.f32.mrf.mxu1 }
 0x304   : > { %v5406_v12 = vadd.f32 %v3838_v32, %v5234_v3  ;;  %v5418_v32 = vpop.f32.mrf.mxu0 }
 0x305   : > { %v3840_v15 = vpop.f32.mrf.mxu1 }
 0x306   : > { %5872 = vst [vmem:[#allocation41_spill] sm:$0xff] %v5406_v12  ;;  %v3841_v8 = vadd.f32 %v3840_v15, %v3839_v42 }
 0x307   : > { %v3842_v30 = vpop.f32.mrf.mxu1 }
 0x308   : > { %v5411_v5 = vadd.f32 %v3841_v8, %v5236_v17  ;;  %v5423_v8 = vpop.f32.mrf.mxu0 }
 0x309   : > { %v3843_v62 = vpop.f32.mrf.mxu1 }
 0x30a   : > { %v3844_v54 = vadd.f32 %v3843_v62, %v3842_v30 }
 0x30b   : > { %v3845_v57 = vpop.f32.mrf.mxu1 }
 0x30c   : > { %v5416_v22 = vadd.f32 %v3844_v54, %v5238_v14  ;;  %v3881_v14 = vadd.f32 %v5262_v25, %v5258_v29  ;;  %v5445_v29 = vld [vmem:[%s5818_s5] ss:$0 sm:$0xff] }
 0x30d   : > { %v3846_v55 = vpop.f32.mrf.mxu1 }
 0x30e   : > { %v3847_v58 = vadd.f32 %v3846_v55, %v3845_v57  ;;  %v5432_v55 = vpop.f32.mrf.mxu0 }
 0x30f   : > { %v3848_v3 = vpop.f32.mrf.mxu1 }
 0x310   : > { %v5421_v42 = vadd.f32 %v3847_v58, %v5240_v39  ;;  %v5447_v25 = vpop.f32.mrf.mxu0 }
 0x311   : > { %v3849_v15 = vpop.f32.mrf.mxu1 }
 0x312   : > { %v3850_v12 = vadd.f32 %v3849_v15, %v3848_v3  ;;  %v3884_v3 = vadd.f32 %v5269_v34, %v5267_v9  ;;  %v5459_v34 = vld [vmem:[%s5819_s6] ss:$0 sm:$0xff] }
 0x313   : > { %v3851_v17 = vpop.f32.mrf.mxu1 }
 0x314   : > { %v5426_v30 = vadd.f32 %v3850_v12, %v5242_v35  ;;  %v2429_v35 = vadd.f32 %v3881_v14, %v5251_v53  ;;  %v2432_v9 = vadd.f32 %v3884_v3, %v5256_v13  ;;  %v3887_v53 = vadd.f32 %v5276_v6, %v5274_v24 }
 0x315   : > { %v3852_v62 = vpop.f32.mrf.mxu1  ;;  %v3890_v6 = vadd.f32 %v5283_v47, %v5281_v10  ;;  %v3896_v3 = vadd.f32 %v5297_v7, %v5295_v46 }
 0x316   : > { %5873 = vst [vmem:[#allocation42_spill] sm:$0xff] %v5426_v30  ;;  %v3853_v54 = vadd.f32 %v3852_v62, %v3851_v17  ;;  %v2437_v30 = vadd.f32 %v3887_v53, %v5265_v27 }
 0x317   : > { %v5430_v57 = vpop.f32.mrf.mxu1  ;;  %v2448_v53 = vadd.f32 %v3896_v3, %v5286_v18 }
 0x318   : > { %v5435_v39 = vadd.f32 %v3853_v54, %v5245_v45  ;;  %v3893_v45 = vadd.f32 %v5290_v44, %v5288_v33 }
 0x319   : > { %v5437_v58 = vpop.f32.mrf.mxu1 }
 0x31a   : > { %v2445_v24 = vadd.f32 %v3893_v45, %v5279_v11  ;;  %v3905_v11 = vadd.f32 %v5318_v28, %v5316_v61 }
 0x31b   : > { %v4083_v12 = vpop.f32.mrf.mxu1 }
 0x31c   : > { %v2590_v15 = vadd.f32 %v4083_v12, %v2429_v35  ;;  %v5461_v35 = vpop.f32.mrf.mxu0  ;;  %v2461_v18 = vadd.f32 %v3905_v11, %v5307_v36 }
 0x31d   : > { %v2581_v17 = vpop.f32.mrf.mxu1 }
 0x31e   : > { %v2717_v62 = vmul.f32 %v5445_v29, %v2590_v15  ;;  %v2582_v54 = vadd.f32 %v2581_v17, %v5253_v1 }
 0x31f   : > { %v4084_v14 = vpop.f32.mrf.mxu1 }
 0x320   : > { %v2715_v12 = vmul.f32 %v5445_v29, %v2582_v54  ;;  %v2593_v33 = vadd.f32 %v4084_v14, %v2432_v9  ;;  %v2756_v15 = vadd.f32 %v5459_v34, %v2717_v62  ;;  %v5473_v54 = vpop.f32.mrf.mxu0 }
 0x321   : > { %v2584_v44 = vpop.f32.mrf.mxu1 }
 0x322   : > { %v2718_v1 = vmul.f32 %v5445_v29, %v2593_v33  ;;  %v2585_v13 = vadd.f32 %v2584_v44, %v5260_v16  ;;  %v2754_v9 = vadd.f32 %v5459_v34, %v2715_v12  ;;  %v2788_v10 = vmax.f32 %v2756_v15, 0.0 }
 0x323   : > { %v4087_v17 = vpop.f32.mrf.mxu1  ;;  %v2440_v12 = vadd.f32 %v3890_v6, %v5272_v51  ;;  %v3899_v44 = vadd.f32 %v5304_v31, %v5302_v21  ;;  %v3908_v15 = vadd.f32 %v5325_v23, %v5323_v2  ;;  %v3902_v6 = vadd.f32 %v5311_v20, %v5309_v19 }
 0x324   : > { %v2757_v62 = vadd.f32 %v5459_v34, %v2718_v1  ;;  %v2716_v14 = vmul.f32 %v5445_v29, %v2585_v13  ;;  %v2606_v16 = vadd.f32 %v4087_v17, %v2445_v24  ;;  %v5486_v1 = vpop.f32.mrf.mxu0  ;;  %v2786_v13 = vmax.f32 %v2754_v9, 0.0 }
 0x325   : > { %v2597_v45 = vpop.f32.mrf.mxu1 }
 0x326   : > { %v2789_v47 = vmax.f32 %v2757_v62, 0.0  ;;  %v2755_v46 = vadd.f32 %v5459_v34, %v2716_v14  ;;  %v2598_v7 = vadd.f32 %v2597_v45, %v2437_v30  ;;  %v2721_v27 = vmul.f32 %v5445_v29, %v2606_v16  ;;  %v5496_v9 = vpop.f32.mrf.mxu0 }
 0x327   : > { %v4088_v33 = vpop.f32.mrf.mxu1  ;;  %v2453_v14 = vadd.f32 %v3899_v44, %v5293_v43  ;;  %v2464_v45 = vadd.f32 %v3908_v15, %v5314_v4  ;;  %v5874_v44 = vld [vmem:[#allocation18_spill] sm:$0xff] }
 0x328   : > { %v2819_v61 = vpack.c.bf16 %v2789_v47, %v2788_v10  ;;  %v2787_v28 = vmax.f32 %v2755_v46, 0.0  ;;  %v2719_v30 = vmul.f32 %v5445_v29, %v2598_v7  ;;  %v2609_v24 = vadd.f32 %v4088_v33, %v2448_v53  ;;  %v5509_v53 = vpop.f32.mrf.mxu0 }
 0x329   : > { %v2600_v17 = vpop.f32.mrf.mxu1  ;;  %v2760_v51 = vadd.f32 %v5459_v34, %v2721_v27  ;;  %v3917_v10 = vadd.f32 %v5346_v59, %v5344_v48  ;;  %v3911_v46 = vadd.f32 %v5332_v40, %v5330_v52  ;;  %v5875_v52 = vld [vmem:[#allocation21_spill] sm:$0xff] }
 0x32a   : > { %v2601_v62 = vadd.f32 %v2600_v17, %v2440_v12  ;;  %v2818_v3 = vpack.c.bf16 %v2787_v28, %v2786_v13  ;;  %v2722_v21 = vmul.f32 %v5445_v29, %v2609_v24  ;;  %v2758_v16 = vadd.f32 %v5459_v34, %v2719_v30  ;;  %v5876_v24 = vld [vmem:[#allocation22_spill] sm:$0xff]  ;;  %v5877_v17 = vld [vmem:[#allocation23_spill] sm:$0xff] }
 0x32b   : > { %v4091_v31 = vpop.f32.mrf.mxu1  ;;  %v2792_v43 = vmax.f32 %v2760_v51, 0.0  ;;  %v2456_v13 = vadd.f32 %v3902_v6, %v5874_v44  ;;  %v2477_v40 = vadd.f32 %v3917_v10, %v5875_v52  ;;  %v5884_v52 = vld [vmem:[#allocation29_spill] sm:$0xff] }
 0x32c   : > { %v2720_v2 = vmul.f32 %v5445_v29, %v2601_v62  ;;  %v2622_v23 = vadd.f32 %v4091_v31, %v2461_v18  ;;  %4129 = vmatprep.mubr.bf16.mxu0 %v2818_v3  ;;  %v2761_v36 = vadd.f32 %v5459_v34, %v2722_v21  ;;  %v2790_v48 = vmax.f32 %v2758_v16, 0.0  ;;  %v5878_v18 = vld [vmem:[#allocation26_spill] sm:$0xff]  ;;  %v5879_v31 = vld [vmem:[#allocation19_spill] sm:$0xff] }
 0x32d   : > { %v2613_v11 = vpop.f32.mrf.mxu1  ;;  %4130 = vmatmul.mubr.bf16.vlgmr.msra.gmra.mxu0 %v2819_v61  ;;  %v3914_v62 = vadd.f32 %v5877_v17, %v5876_v24  ;;  %v3920_v3 = vadd.f32 %v5878_v18, %v5351_v38  ;;  %v2469_v6 = vadd.f32 %v3911_v46, %v5879_v31  ;;  %v5880_v46 = vld [vmem:[#allocation24_spill] sm:$0xff]  ;;  %v5885_v18 = vld [vmem:[#allocation30_spill] sm:$0xff] }
 0x32e   : > { %v2759_v19 = vadd.f32 %v5459_v34, %v2720_v2  ;;  %v2725_v20 = vmul.f32 %v5445_v29, %v2622_v23  ;;  %v2614_v47 = vadd.f32 %v2613_v11, %v2453_v14  ;;  %v2793_v7 = vmax.f32 %v2761_v36, 0.0  ;;  %v5521_v2 = vpop.f32.mrf.mxu0 }
 0x32f   : > { %v4092_v27 = vpop.f32.mrf.mxu1  ;;  %v3929_v11 = vadd.f32 %v5374_v49, %v5372_v41 }
 0x330   : > { %v2791_v33 = vmax.f32 %v2759_v19, 0.0  ;;  %v2723_v12 = vmul.f32 %v5445_v29, %v2614_v47  ;;  %v2625_v4 = vadd.f32 %v4092_v27, %v2464_v45  ;;  %v2821_v59 = vpack.c.bf16 %v2793_v7, %v2792_v43  ;;  %v5881_v27 = vld [vmem:[#allocation20_spill] sm:$0xff]  ;;  %v5534_v44 = vpop.f32.mrf.mxu0 }
 0x331   : > { %v2616_v61 = vpop.f32.mrf.mxu1  ;;  %v2764_v28 = vadd.f32 %v5459_v34, %v2725_v20  ;;  %v2480_v43 = vadd.f32 %v3920_v3, %v5880_v46  ;;  %v5886_v3 = vld [vmem:[#allocation31_spill] sm:$0xff] }
 0x332   : > { %v2726_v15 = vmul.f32 %v5445_v29, %v2625_v4  ;;  %v2617_v30 = vadd.f32 %v2616_v61, %v2456_v13  ;;  %v2820_v21 = vpack.c.bf16 %v2791_v33, %v2790_v48  ;;  %v2762_v23 = vadd.f32 %v5459_v34, %v2723_v12  ;;  %v5882_v12 = vld [vmem:[#allocation28_spill] sm:$0xff]  ;;  %v5883_v48 = vld [vmem:[#allocation34_spill] sm:$0xff] }
 0x333   : > { %v4095_v51 = vpop.f32.mrf.mxu1  ;;  %v2796_v10 = vmax.f32 %v2764_v28, 0.0  ;;  %v2472_v33 = vadd.f32 %v3914_v62, %v5881_v27  ;;  %v3923_v4 = vadd.f32 %v5882_v12, %v5358_v60  ;;  %v3932_v61 = vadd.f32 %v5381_v0, %v5883_v48 }
 0x334   : > { %v2765_v14 = vadd.f32 %v5459_v34, %v2726_v15  ;;  %v2724_v16 = vmul.f32 %v5445_v29, %v2617_v30  ;;  %v2638_v36 = vadd.f32 %v4095_v51, %v2477_v40  ;;  %4133 = vmatprep.mubr.bf16.mxu0 %v2820_v21  ;;  %v2794_v41 = vmax.f32 %v2762_v23, 0.0  ;;  %v5544_v21 = vpop.f32.mrf.mxu0 }
 0x335   : > { %v2629_v45 = vpop.f32.mrf.mxu1  ;;  %4134 = vmatmul.mubr.bf16.gmra.mxu0 %v2821_v59  ;;  %v2493_v40 = vadd.f32 %v3929_v11, %v5884_v52  ;;  %v3926_v51 = vadd.f32 %v5886_v3, %v5885_v18  ;;  %v5888_v11 = vld [vmem:[#allocation32_spill] sm:$0xff] }
 0x336   : > { %v2797_v38 = vmax.f32 %v2765_v14, 0.0  ;;  %v2763_v19 = vadd.f32 %v5459_v34, %v2724_v16  ;;  %v2630_v20 = vadd.f32 %v2629_v45, %v2469_v6  ;;  %v2729_v47 = vmul.f32 %v5445_v29, %v2638_v36  ;;  %v5887_v6 = vld [vmem:[#allocation25_spill] sm:$0xff] }
 0x337   : > { %v4096_v7 = vpop.f32.mrf.mxu1  ;;  %v2485_v23 = vadd.f32 %v3923_v4, %v5887_v6  ;;  %v2496_v45 = vadd.f32 %v3932_v61, %v5888_v11  ;;  %v3953_v6 = vadd.f32 %v5486_v1, %v5473_v54 }
 0x338   : > { %v2823_v49 = vpack.c.bf16 %v2797_v38, %v2796_v10  ;;  %v2795_v13 = vmax.f32 %v2763_v19, 0.0  ;;  %v2727_v59 = vmul.f32 %v5445_v29, %v2630_v20  ;;  %v2641_v28 = vadd.f32 %v4096_v7, %v2480_v43 }
 0x339   : > { %v2632_v15 = vpop.f32.mrf.mxu1  ;;  %v2768_v17 = vadd.f32 %v5459_v34, %v2729_v47  ;;  %v3941_v10 = vadd.f32 %v5408_v26, %v5403_v63  ;;  %v5889_v47 = vld [vmem:[#allocation36_spill] sm:$0xff] }
 0x33a   : > { %v2633_v30 = vadd.f32 %v2632_v15, %v2472_v33  ;;  %v2822_v24 = vpack.c.bf16 %v2795_v13, %v2794_v41  ;;  %v2730_v60 = vmul.f32 %v5445_v29, %v2641_v28  ;;  %v2766_v14 = vadd.f32 %v5459_v34, %v2727_v59  ;;  %v5557_v33 = vpop.f32.mrf.mxu0  ;;  %v5890_v13 = vld [vmem:[#allocation27_spill] sm:$0xff] }
 0x33b   : > { %v4099_v62 = vpop.f32.mrf.mxu1  ;;  %v3935_v46 = vadd.f32 %v5391_v56, %v5889_v47  ;;  %v2800_v43 = vmax.f32 %v2768_v17, 0.0  ;;  %v2488_v63 = vadd.f32 %v3926_v51, %v5890_v13  ;;  %v5891_v56 = vld [vmem:[#allocation37_spill] sm:$0xff] }
 0x33c   : > { %v2728_v0 = vmul.f32 %v5445_v29, %v2633_v30  ;;  %v2654_v31 = vadd.f32 %v4099_v62, %v2493_v40  ;;  %4137 = vmatprep.mubr.bf16.mxu0 %v2822_v24  ;;  %v2769_v16 = vadd.f32 %v5459_v34, %v2730_v60  ;;  %v2798_v26 = vmax.f32 %v2766_v14, 0.0  ;;  %v5892_v30 = vld [vmem:[#allocation38_spill] sm:$0xff]  ;;  %v5893_v60 = vld [vmem:[#allocation33_spill] sm:$0xff]  ;;  %v3963_v18 = vpop.f32.mrf.mxu0 }
 0x33d   : > { %v2645_v36 = vpop.f32.mrf.mxu1  ;;  %4138 = vmatmul.mubr.bf16.gmra.mxu0 %v2823_v49  ;;  %v2509_v15 = vadd.f32 %v3941_v10, %v5891_v56  ;;  %v3938_v52 = vadd.f32 %v5398_v37, %v5892_v30  ;;  %v3944_v40 = vadd.f32 %v5418_v32, %v5413_v50  ;;  %v2501_v62 = vadd.f32 %v3935_v46, %v5893_v60  ;;  %v5895_v10 = vld [vmem:[#allocation35_spill] sm:$0xff] }
 0x33e   : > { %v2767_v38 = vadd.f32 %v5459_v34, %v2728_v0  ;;  %v2733_v19 = vmul.f32 %v5445_v29, %v2654_v31  ;;  %v2646_v20 = vadd.f32 %v2645_v36, %v2485_v23  ;;  %v2801_v7 = vmax.f32 %v2769_v16, 0.0  ;;  %v5894_v36 = vld [vmem:[#allocation39_spill] sm:$0xff] }
 0x33f   : > { %v4100_v27 = vpop.f32.mrf.mxu1  ;;  %v2512_v11 = vadd.f32 %v3944_v40, %v5894_v36  ;;  %v3956_v46 = vadd.f32 %v5509_v53, %v5496_v9  ;;  %v5896_v53 = vld [vmem:[#allocation40_spill] sm:$0xff] }
 0x340   : > { %v2799_v12 = vmax.f32 %v2767_v38, 0.0  ;;  %v2731_v4 = vmul.f32 %v5445_v29, %v2646_v20  ;;  %v2657_v41 = vadd.f32 %v4100_v27, %v2496_v45  ;;  %v2825_v48 = vpack.c.bf16 %v2801_v7, %v2800_v43  ;;  %v3964_v20 = vpop.f32.mrf.mxu0 }
 0x341   : > { %v2648_v61 = vpop.f32.mrf.mxu1  ;;  %v2772_v59 = vadd.f32 %v5459_v34, %v2733_v19  ;;  %v2504_v38 = vadd.f32 %v3938_v52, %v5895_v10  ;;  %v3947_v19 = vadd.f32 %v5432_v55, %v5423_v8  ;;  %v3950_v55 = vadd.f32 %v5461_v35, %v5447_v25  ;;  %v5898_v10 = vld [vmem:[#allocation17_spill] sm:$0xff] }
 0x342   : > { %v2734_v49 = vmul.f32 %v5445_v29, %v2657_v41  ;;  %v2649_v28 = vadd.f32 %v2648_v61, %v2488_v63  ;;  %v2824_v17 = vpack.c.bf16 %v2799_v12, %v2798_v26  ;;  %v2770_v3 = vadd.f32 %v5459_v34, %v2731_v4  ;;  %v3966_v26 = vpop.f32.mrf.mxu0 }
 0x343   : > { %v4103_v24 = vpop.f32.mrf.mxu1  ;;  %v2804_v23 = vmax.f32 %v2772_v59, 0.0  ;;  %v2525_v4 = vadd.f32 %v3953_v6, %v5411_v5  ;;  %v2517_v61 = vadd.f32 %v3947_v19, %v5896_v53  ;;  %v3965_v56 = vadd.f32 %v3964_v20, %v3963_v18 }
 0x344   : > { %v2773_v51 = vadd.f32 %v5459_v34, %v2734_v49  ;;  %v2732_v0 = vmul.f32 %v5445_v29, %v2649_v28  ;;  %v2670_v31 = vadd.f32 %v4103_v24, %v2509_v15  ;;  %4141 = vmatprep.mubr.bf16.mxu0 %v2824_v17  ;;  %v2802_v54 = vmax.f32 %v2770_v3, 0.0  ;;  %v3967_v17 = vpop.f32.mrf.mxu0 }
 0x345   : > { %v2661_v37 = vpop.f32.mrf.mxu1  ;;  %4142 = vmatmul.mubr.bf16.gmra.mxu0 %v2825_v48  ;;  %v2528_v28 = vadd.f32 %v3956_v46, %v5416_v22  ;;  %v3959_v35 = vadd.f32 %v5534_v44, %v5521_v2  ;;  %v3856_v18 = vadd.f32 %v5437_v58, %v5430_v57 }
 0x346   : > { %v2805_v14 = vmax.f32 %v2773_v51, 0.0  ;;  %v2771_v50 = vadd.f32 %v5459_v34, %v2732_v0  ;;  %v2662_v32 = vadd.f32 %v2661_v37, %v2501_v62  ;;  %v2737_v16 = vmul.f32 %v5445_v29, %v2670_v31  ;;  %v5897_v51 = vld [vmem:[#allocation41_spill] sm:$0xff] }
 0x347   : > { %v4104_v45 = vpop.f32.mrf.mxu1  ;;  %v2520_v22 = vadd.f32 %v3950_v55, %v5897_v51  ;;  %v2533_v36 = vadd.f32 %v3959_v35, %v5421_v42  ;;  %v3140_v51 = vld [vmem:[%s4739_s11 + $0x18] sm:$0xff] }
 0x348   : > { %v2827_v1 = vpack.c.bf16 %v2805_v14, %v2804_v23  ;;  %v2803_v47 = vmax.f32 %v2771_v50, 0.0  ;;  %v2735_v43 = vmul.f32 %v5445_v29, %v2662_v32  ;;  %v2673_v7 = vadd.f32 %v4104_v45, %v2512_v11 }
 0x349   : > { %v2664_v27 = vpop.f32.mrf.mxu1  ;;  %v2776_v13 = vadd.f32 %v5459_v34, %v2737_v16  ;;  %v2541_v23 = vadd.f32 %v3965_v56, %v5435_v39  ;;  %v3962_v14 = vadd.f32 %v5557_v33, %v5544_v21  ;;  %v3968_v50 = vadd.f32 %v3967_v17, %v3966_v26 }
 0x34a   : > { %v2665_v12 = vadd.f32 %v2664_v27, %v2504_v38  ;;  %v2826_v41 = vpack.c.bf16 %v2803_v47, %v2802_v54  ;;  %v2738_v63 = vmul.f32 %v5445_v29, %v2673_v7  ;;  %v2774_v59 = vadd.f32 %v5459_v34, %v2735_v43  ;;  %v5899_v47 = vld [vmem:[#allocation42_spill] sm:$0xff] }
 0x34b   : > { %v4107_v8 = vpop.f32.mrf.mxu1  ;;  %v2808_v52 = vmax.f32 %v2776_v13, 0.0  ;;  %v2383_v38 = vadd.f32 %v3856_v18, %v5898_v10  ;;  %v2536_v46 = vadd.f32 %v3962_v14, %v5899_v47  ;;  %v3141_v10 = vld [vmem:[%s4739_s11 + $0x20] sm:$0xff] }
 0x34c   : > { %v2736_v48 = vmul.f32 %v5445_v29, %v2665_v12  ;;  %v2686_v9 = vadd.f32 %v4107_v8, %v2525_v4  ;;  %4145 = vmatprep.mubr.bf16.mxu0 %v2826_v41  ;;  %v2777_v5 = vadd.f32 %v5459_v34, %v2738_v63  ;;  %v2806_v0 = vmax.f32 %v2774_v59, 0.0 }
 0x34d   : > { %v2677_v49 = vpop.f32.mrf.mxu1  ;;  %4146 = vmatmul.mubr.bf16.gmra.mxu0 %v2827_v1  ;;  %v2544_v42 = vadd.f32 %v3968_v50, %v2383_v38 }
 0x34e   : > { %v2775_v15 = vadd.f32 %v5459_v34, %v2736_v48  ;;  %v2741_v30 = vmul.f32 %v5445_v29, %v2686_v9  ;;  %v2678_v25 = vadd.f32 %v2677_v49, %v2517_v61  ;;  %v2809_v40 = vmax.f32 %v2777_v5, 0.0 }
 0x34f   : > { %v4108_v24 = vpop.f32.mrf.mxu1 }
 0x350   : > { %v2807_v60 = vmax.f32 %v2775_v15, 0.0  ;;  %v2739_v62 = vmul.f32 %v5445_v29, %v2678_v25  ;;  %v2689_v3 = vadd.f32 %v4108_v24, %v2528_v28  ;;  %v2829_v31 = vpack.c.bf16 %v2809_v40, %v2808_v52  ;;  %v3139_v25 = vld [vmem:[%s4739_s11 + $0x10] sm:$0xff]  ;;  %v3137_v24 = vld [vmem:[%s4739_s11] sm:$0xff] }
 0x351   : > { %v2680_v6 = vpop.f32.mrf.mxu1  ;;  %v2780_v37 = vadd.f32 %v5459_v34, %v2741_v30 }
 0x352   : > { %v2742_v2 = vmul.f32 %v5445_v29, %v2689_v3  ;;  %v2681_v44 = vadd.f32 %v2680_v6, %v2520_v22  ;;  %v2828_v16 = vpack.c.bf16 %v2807_v60, %v2806_v0  ;;  %v2778_v57 = vadd.f32 %v5459_v34, %v2739_v62 }
 0x353   : > { %v4111_v32 = vpop.f32.mrf.mxu1  ;;  %v2812_v39 = vmax.f32 %v2780_v37, 0.0  ;;  %v3138_v37 = vld [vmem:[%s4739_s11 + $0x8] sm:$0xff] }
 0x354   : > { %v2781_v58 = vadd.f32 %v5459_v34, %v2742_v2  ;;  %v2740_v11 = vmul.f32 %v5445_v29, %v2681_v44  ;;  %v2702_v45 = vadd.f32 %v4111_v32, %v2541_v23  ;;  %4149 = vmatprep.mubr.bf16.mxu0 %v2828_v16  ;;  %v2810_v43 = vmax.f32 %v2778_v57, 0.0 }
 0x355   : > { %v2693_v19 = vpop.f32.mrf.mxu1  ;;  %4150 = vmatmul.mubr.bf16.gmra.mxu0 %v2829_v31 }
 0x356   : > { %v2813_v20 = vmax.f32 %v2781_v58, 0.0  ;;  %v2779_v21 = vadd.f32 %v5459_v34, %v2740_v11  ;;  %v2694_v33 = vadd.f32 %v2693_v19, %v2533_v36  ;;  %v2745_v54 = vmul.f32 %v5445_v29, %v2702_v45  ;;  %v3143_v36 = vld [vmem:[%s4739_s11 + $0x30] sm:$0xff] }
 0x357   : > { %v4112_v1 = vpop.f32.mrf.mxu1 }
 0x358   : > { %v2831_v7 = vpack.c.bf16 %v2813_v20, %v2812_v39  ;;  %v2811_v27 = vmax.f32 %v2779_v21, 0.0  ;;  %v2743_v12 = vmul.f32 %v5445_v29, %v2694_v33  ;;  %v2705_v4 = vadd.f32 %v4112_v1, %v2544_v42  ;;  %v3144_v21 = vld [vmem:[%s4739_s11 + $0x38] sm:$0xff] }
 0x359   : > { %v2696_v41 = vpop.f32.mrf.mxu1  ;;  %v2784_v8 = vadd.f32 %v5459_v34, %v2745_v54 }
 0x35a   : > { %v2697_v13 = vadd.f32 %v2696_v41, %v2536_v46  ;;  %v2830_v63 = vpack.c.bf16 %v2811_v27, %v2810_v43  ;;  %v2746_v55 = vmul.f32 %v5445_v29, %v2705_v4  ;;  %v2782_v26 = vadd.f32 %v5459_v34, %v2743_v12  ;;  %v3142_v46 = vld [vmem:[%s4739_s11 + $0x28] sm:$0xff]  ;;  %v3147_v41 = vld [vmem:[%s4739_s11 + $0x50] sm:$0xff] }
 0x35b   : > { %v2816_v61 = vmax.f32 %v2784_v8, 0.0 }
 0x35c   : > { %v2744_v48 = vmul.f32 %v5445_v29, %v2697_v13  ;;  %4153 = vmatprep.mubr.bf16.mxu0 %v2830_v63  ;;  %v2785_v9 = vadd.f32 %v5459_v34, %v2746_v55  ;;  %v2814_v5 = vmax.f32 %v2782_v26, 0.0  ;;  %v5624_v29 = vld [vmem:[%s5821_s8] ss:$0 sm:$0xff] }
 0x35d   : > { %4154 = vmatmul.mubr.bf16.gmra.mxu0 %v2831_v7 }
 0x35e   : > { %v2783_v53 = vadd.f32 %v5459_v34, %v2744_v48  ;;  %v2817_v59 = vmax.f32 %v2785_v9, 0.0  ;;  %v5629_v34 = vld [vmem:[%s5822_s9] ss:$0 sm:$0xff]  ;;  %v3145_v48 = vld [vmem:[%s4739_s11 + $0x40] sm:$0xff] }
 0x360   : > { %v2815_v49 = vmax.f32 %v2783_v53, 0.0  ;;  %v2833_v28 = vpack.c.bf16 %v2817_v59, %v2816_v61 }
 0x362   : > { %v2832_v56 = vpack.c.bf16 %v2815_v49, %v2814_v5  ;;  %v3148_v49 = vld [vmem:[%s4739_s11 + $0x58] sm:$0xff] }
 0x364   : > { %4157 = vmatprep.mubr.bf16.mxu0 %v2832_v56 }
 0x365   : > { %4158 = vmatmul.mubr.bf16.gmra.mxu0 %v2833_v28 }
 0x3ed   : > { %v4131_v15 = vpop.f32.mrf.mxu0 }
 0x3ee   : > { %v3068_v30 = vmul.f32 %v4131_v15, %v5624_v29 }
 0x3ef   : > { %v2932_v35 = vpop.f32.mrf.mxu0 }
 0x3f0   : > { %v3107_v52 = vadd.f32 %v5629_v34, %v3068_v30  ;;  %v3066_v40 = vmul.f32 %v5624_v29, %v2932_v35  ;;  %v3146_v35 = vld [vmem:[%s4739_s11 + $0x48] sm:$0xff] }
 0x3f1   : > { %v4132_v17 = vpop.f32.mrf.mxu0 }
 0x3f2   : > { %v3171_v60 = vadd.f32 %v3139_v25, %v3107_v52  ;;  %v3105_v62 = vadd.f32 %v5629_v34, %v3066_v40  ;;  %v3069_v3 = vmul.f32 %v4132_v17, %v5624_v29 }
 0x3f3   : > { %v2935_v22 = vpop.f32.mrf.mxu0 }
 0x3f4   : > { %v3203_v18 = vmax.f32 %v3171_v60, 0.0  ;;  %v3169_v0 = vadd.f32 %v3137_v24, %v3105_v62  ;;  %v3108_v31 = vadd.f32 %v5629_v34, %v3069_v3  ;;  %v3067_v6 = vmul.f32 %v5624_v29, %v2935_v22  ;;  %v3151_v62 = vld [vmem:[%s4739_s11 + $0x70] sm:$0xff] }
 0x3f5   : > { %v4135_v14 = vpop.f32.mrf.mxu0 }
 0x3f6   : > { %3235 = vst [vmem:[%s5644_s1 + $0x10] sm:$0xff] %v3203_v18  ;;  %v3201_v2 = vmax.f32 %v3169_v0, 0.0  ;;  %v3172_v44 = vadd.f32 %v3140_v51, %v3108_v31  ;;  %v3106_v23 = vadd.f32 %v5629_v34, %v3067_v6  ;;  %v3072_v50 = vmul.f32 %v4135_v14, %v5624_v29  ;;  %v3149_v31 = vld [vmem:[%s4739_s11 + $0x60] sm:$0xff]  ;;  %v3152_v14 = vld [vmem:[%s4739_s11 + $0x78] sm:$0xff] }
 0x3f7   : > { %v2948_v57 = vpop.f32.mrf.mxu0 }
 0x3f8   : > { %3233 = vst [vmem:[%s5644_s1] sm:$0xff] %v3201_v2  ;;  %v3204_v32 = vmax.f32 %v3172_v44, 0.0  ;;  %v3170_v16 = vadd.f32 %v3138_v37, %v3106_v23  ;;  %v3111_v58 = vadd.f32 %v5629_v34, %v3072_v50  ;;  %v3070_v11 = vmul.f32 %v5624_v29, %v2948_v57 }
 0x3f9   : > { %v4136_v38 = vpop.f32.mrf.mxu0 }
 0x3fa   : > { %3236 = vst [vmem:[%s5644_s1 + $0x18] sm:$0xff] %v3204_v32  ;;  %v3202_v45 = vmax.f32 %v3170_v16, 0.0  ;;  %v3175_v19 = vadd.f32 %v3143_v36, %v3111_v58  ;;  %v3109_v39 = vadd.f32 %v5629_v34, %v3070_v11  ;;  %v3073_v20 = vmul.f32 %v4136_v38, %v5624_v29  ;;  %v3150_v58 = vld [vmem:[%s4739_s11 + $0x68] sm:$0xff] }
 0x3fb   : > { %v2951_v33 = vpop.f32.mrf.mxu0 }
 0x3fc   : > { %3234 = vst [vmem:[%s5644_s1 + $0x8] sm:$0xff] %v3202_v45  ;;  %v3207_v54 = vmax.f32 %v3175_v19, 0.0  ;;  %v3173_v42 = vadd.f32 %v3141_v10, %v3109_v39  ;;  %v3112_v1 = vadd.f32 %v5629_v34, %v3073_v20  ;;  %v3071_v47 = vmul.f32 %v5624_v29, %v2951_v33  ;;  %v3155_v39 = vld [vmem:[%s4739_s11 + $0x90] sm:$0xff] }
 0x3fd   : > { %v4139_v43 = vpop.f32.mrf.mxu0 }
 0x3fe   : > { %3239 = vst [vmem:[%s5644_s1 + $0x30] sm:$0xff] %v3207_v54  ;;  %v3205_v7 = vmax.f32 %v3173_v42, 0.0  ;;  %v3176_v27 = vadd.f32 %v3144_v21, %v3112_v1  ;;  %v3110_v12 = vadd.f32 %v5629_v34, %v3071_v47  ;;  %v3076_v4 = vmul.f32 %v4139_v43, %v5624_v29  ;;  %v3153_v1 = vld [vmem:[%s4739_s11 + $0x80] sm:$0xff] }
 0x3ff   : > { %v2964_v13 = vpop.f32.mrf.mxu0 }
 0x400   : > { %3237 = vst [vmem:[%s5644_s1 + $0x20] sm:$0xff] %v3205_v7  ;;  %v3208_v63 = vmax.f32 %v3176_v27, 0.0  ;;  %v3174_v8 = vadd.f32 %v3142_v46, %v3110_v12  ;;  %v3115_v55 = vadd.f32 %v5629_v34, %v3076_v4  ;;  %v3074_v26 = vmul.f32 %v5624_v29, %v2964_v13  ;;  %v3156_v12 = vld [vmem:[%s4739_s11 + $0x98] sm:$0xff] }
 0x401   : > { %v4140_v9 = vpop.f32.mrf.mxu0 }
 0x402   : > { %3240 = vst [vmem:[%s5644_s1 + $0x38] sm:$0xff] %v3208_v63  ;;  %v3206_v53 = vmax.f32 %v3174_v8, 0.0  ;;  %v3179_v61 = vadd.f32 %v3147_v41, %v3115_v55  ;;  %v3113_v59 = vadd.f32 %v5629_v34, %v3074_v26  ;;  %v3077_v5 = vmul.f32 %v4140_v9, %v5624_v29  ;;  %v3154_v55 = vld [vmem:[%s4739_s11 + $0x88] sm:$0xff] }
 0x403   : > { %v2967_v28 = vpop.f32.mrf.mxu0 }
 0x404   : > { %3238 = vst [vmem:[%s5644_s1 + $0x28] sm:$0xff] %v3206_v53  ;;  %v3211_v56 = vmax.f32 %v3179_v61, 0.0  ;;  %v3177_v15 = vadd.f32 %v3145_v48, %v3113_v59  ;;  %v3116_v30 = vadd.f32 %v5629_v34, %v3077_v5  ;;  %v3075_v25 = vmul.f32 %v5624_v29, %v2967_v28  ;;  %v3159_v59 = vld [vmem:[%s4739_s11 + $0xb0] sm:$0xff] }
 0x405   : > { %v4143_v52 = vpop.f32.mrf.mxu0 }
 0x406   : > { %3243 = vst [vmem:[%s5644_s1 + $0x50] sm:$0xff] %v3211_v56  ;;  %v3209_v40 = vmax.f32 %v3177_v15, 0.0  ;;  %v3180_v24 = vadd.f32 %v3148_v49, %v3116_v30  ;;  %v3114_v17 = vadd.f32 %v5629_v34, %v3075_v25  ;;  %v3080_v60 = vmul.f32 %v4143_v52, %v5624_v29  ;;  %v3157_v30 = vld [vmem:[%s4739_s11 + $0xa0] sm:$0xff] }
 0x407   : > { %v2980_v3 = vpop.f32.mrf.mxu0 }
 0x408   : > { %3241 = vst [vmem:[%s5644_s1 + $0x40] sm:$0xff] %v3209_v40  ;;  %v3212_v51 = vmax.f32 %v3180_v24, 0.0  ;;  %v3178_v22 = vadd.f32 %v3146_v35, %v3114_v17  ;;  %v3119_v18 = vadd.f32 %v5629_v34, %v3080_v60  ;;  %v3078_v0 = vmul.f32 %v5624_v29, %v2980_v3  ;;  %v3160_v17 = vld [vmem:[%s4739_s11 + $0xb8] sm:$0xff] }
 0x409   : > { %v4144_v6 = vpop.f32.mrf.mxu0 }
 0x40a   : > { %3244 = vst [vmem:[%s5644_s1 + $0x58] sm:$0xff] %v3212_v51  ;;  %v3210_v37 = vmax.f32 %v3178_v22, 0.0  ;;  %v3183_v2 = vadd.f32 %v3151_v62, %v3119_v18  ;;  %v3117_v44 = vadd.f32 %v5629_v34, %v3078_v0  ;;  %v3081_v23 = vmul.f32 %v4144_v6, %v5624_v29  ;;  %v3158_v18 = vld [vmem:[%s4739_s11 + $0xa8] sm:$0xff] }
 0x40b   : > { %v2983_v50 = vpop.f32.mrf.mxu0 }
 0x40c   : > { %3242 = vst [vmem:[%s5644_s1 + $0x48] sm:$0xff] %v3210_v37  ;;  %v3215_v32 = vmax.f32 %v3183_v2, 0.0  ;;  %v3181_v16 = vadd.f32 %v3149_v31, %v3117_v44  ;;  %v3120_v36 = vadd.f32 %v5629_v34, %v3081_v23  ;;  %v3079_v57 = vmul.f32 %v5624_v29, %v2983_v50  ;;  %v3163_v44 = vld [vmem:[%s4739_s11 + $0xd0] sm:$0xff] }
 0x40d   : > { %v4147_v11 = vpop.f32.mrf.mxu0 }
 0x40e   : > { %3247 = vst [vmem:[%s5644_s1 + $0x70] sm:$0xff] %v3215_v32  ;;  %v3213_v45 = vmax.f32 %v3181_v16, 0.0  ;;  %v3184_v10 = vadd.f32 %v3152_v14, %v3120_v36  ;;  %v3118_v38 = vadd.f32 %v5629_v34, %v3079_v57  ;;  %v3084_v19 = vmul.f32 %v4147_v11, %v5624_v29  ;;  %v3161_v36 = vld [vmem:[%s4739_s11 + $0xc0] sm:$0xff] }
 0x40f   : > { %v2996_v20 = vpop.f32.mrf.mxu0 }
 0x410   : > { %3245 = vst [vmem:[%s5644_s1 + $0x60] sm:$0xff] %v3213_v45  ;;  %v3216_v21 = vmax.f32 %v3184_v10, 0.0  ;;  %v3182_v33 = vadd.f32 %v3150_v58, %v3118_v38  ;;  %v3123_v54 = vadd.f32 %v5629_v34, %v3084_v19  ;;  %v3082_v42 = vmul.f32 %v5624_v29, %v2996_v20  ;;  %v3164_v38 = vld [vmem:[%s4739_s11 + $0xd8] sm:$0xff] }
 0x411   : > { %v4148_v47 = vpop.f32.mrf.mxu0 }
 0x412   : > { %3248 = vst [vmem:[%s5644_s1 + $0x78] sm:$0xff] %v3216_v21  ;;  %v3214_v46 = vmax.f32 %v3182_v33, 0.0  ;;  %v3187_v43 = vadd.f32 %v3155_v39, %v3123_v54  ;;  %v3121_v7 = vadd.f32 %v5629_v34, %v3082_v42  ;;  %v3085_v27 = vmul.f32 %v4148_v47, %v5624_v29  ;;  %v3162_v54 = vld [vmem:[%s4739_s11 + $0xc8] sm:$0xff] }
 0x413   : > { %v2999_v4 = vpop.f32.mrf.mxu0 }
 0x414   : > { %3246 = vst [vmem:[%s5644_s1 + $0x68] sm:$0xff] %v3214_v46  ;;  %v3219_v41 = vmax.f32 %v3187_v43, 0.0  ;;  %v3185_v13 = vadd.f32 %v3153_v1, %v3121_v7  ;;  %v3124_v63 = vadd.f32 %v5629_v34, %v3085_v27  ;;  %v3083_v8 = vmul.f32 %v5624_v29, %v2999_v4  ;;  %v3167_v7 = vld [vmem:[%s4739_s11 + $0xf0] sm:$0xff] }
 0x415   : > { %v4151_v26 = vpop.f32.mrf.mxu0 }
 0x416   : > { %3251 = vst [vmem:[%s5644_s1 + $0x90] sm:$0xff] %v3219_v41  ;;  %v3217_v48 = vmax.f32 %v3185_v13, 0.0  ;;  %v3188_v9 = vadd.f32 %v3156_v12, %v3124_v63  ;;  %v3122_v53 = vadd.f32 %v5629_v34, %v3083_v8  ;;  %v3088_v61 = vmul.f32 %v4151_v26, %v5624_v29  ;;  %v3165_v63 = vld [vmem:[%s4739_s11 + $0xe0] sm:$0xff] }
 0x417   : > { %v3012_v5 = vpop.f32.mrf.mxu0 }
 0x418   : > { %3249 = vst [vmem:[%s5644_s1 + $0x80] sm:$0xff] %v3217_v48  ;;  %v3220_v49 = vmax.f32 %v3188_v9, 0.0  ;;  %v3186_v28 = vadd.f32 %v3154_v55, %v3122_v53  ;;  %v3127_v56 = vadd.f32 %v5629_v34, %v3088_v61  ;;  %v3086_v15 = vmul.f32 %v5624_v29, %v3012_v5  ;;  %v3168_v53 = vld [vmem:[%s4739_s11 + $0xf8] sm:$0xff] }
 0x419   : > { %v4152_v25 = vpop.f32.mrf.mxu0 }
 0x41a   : > { %3252 = vst [vmem:[%s5644_s1 + $0x98] sm:$0xff] %v3220_v49  ;;  %v3218_v35 = vmax.f32 %v3186_v28, 0.0  ;;  %v3191_v52 = vadd.f32 %v3159_v59, %v3127_v56  ;;  %v3125_v40 = vadd.f32 %v5629_v34, %v3086_v15  ;;  %v3089_v24 = vmul.f32 %v4152_v25, %v5624_v29  ;;  %v3166_v56 = vld [vmem:[%s4739_s11 + $0xe8] sm:$0xff]  ;;  %s3266_s11 = scalar_lea.sflag [#allocation5], %s4733_s7 }
 0x41b   : > { %v3015_v60 = vpop.f32.mrf.mxu0 }
 0x41c   : > { %3250 = vst [vmem:[%s5644_s1 + $0x88] sm:$0xff] %v3218_v35  ;;  %v3223_v62 = vmax.f32 %v3191_v52, 0.0  ;;  %v3189_v3 = vadd.f32 %v3157_v30, %v3125_v40  ;;  %v3128_v51 = vadd.f32 %v5629_v34, %v3089_v24  ;;  %v3087_v22 = vmul.f32 %v5624_v29, %v3015_v60 }
 0x41d   : > { %v4155_v0 = vpop.f32.mrf.mxu0 }
 0x41e   : > { %3255 = vst [vmem:[%s5644_s1 + $0xb0] sm:$0xff] %v3223_v62  ;;  %v3221_v31 = vmax.f32 %v3189_v3, 0.0  ;;  %v3192_v6 = vadd.f32 %v3160_v17, %v3128_v51  ;;  %v3126_v37 = vadd.f32 %v5629_v34, %v3087_v22  ;;  %v3092_v2 = vmul.f32 %v4155_v0, %v5624_v29 }
 0x41f   : > { %v3028_v23 = vpop.f32.mrf.mxu0 }
 0x420   : > { %3253 = vst [vmem:[%s5644_s1 + $0xa0] sm:$0xff] %v3221_v31  ;;  %v3224_v14 = vmax.f32 %v3192_v6, 0.0  ;;  %v3190_v50 = vadd.f32 %v3158_v18, %v3126_v37  ;;  %v3131_v32 = vadd.f32 %v5629_v34, %v3092_v2  ;;  %v3090_v16 = vmul.f32 %v5624_v29, %v3028_v23 }
 0x421   : > { %v4156_v57 = vpop.f32.mrf.mxu0 }
 0x422   : > { %3256 = vst [vmem:[%s5644_s1 + $0xb8] sm:$0xff] %v3224_v14  ;;  %v3222_v58 = vmax.f32 %v3190_v50, 0.0  ;;  %v3195_v11 = vadd.f32 %v3163_v44, %v3131_v32  ;;  %v3129_v45 = vadd.f32 %v5629_v34, %v3090_v16  ;;  %v3093_v10 = vmul.f32 %v4156_v57, %v5624_v29 }
 0x423   : > { %v3031_v19 = vpop.f32.mrf.mxu0 }
 0x424   : > { %3254 = vst [vmem:[%s5644_s1 + $0xa8] sm:$0xff] %v3222_v58  ;;  %v3227_v39 = vmax.f32 %v3195_v11, 0.0  ;;  %v3193_v20 = vadd.f32 %v3161_v36, %v3129_v45  ;;  %v3132_v21 = vadd.f32 %v5629_v34, %v3093_v10  ;;  %v3091_v33 = vmul.f32 %v5624_v29, %v3031_v19 }
 0x425   : > { %v4159_v42 = vpop.f32.mrf.mxu0 }
 0x426   : > { %3259 = vst [vmem:[%s5644_s1 + $0xd0] sm:$0xff] %v3227_v39  ;;  %v3225_v1 = vmax.f32 %v3193_v20, 0.0  ;;  %v3196_v47 = vadd.f32 %v3164_v38, %v3132_v21  ;;  %v3130_v46 = vadd.f32 %v5629_v34, %v3091_v33  ;;  %v3096_v43 = vmul.f32 %v4159_v42, %v5624_v29 }
 0x427   : > { %v3044_v27 = vpop.f32.mrf.mxu0 }
 0x428   : > { %3257 = vst [vmem:[%s5644_s1 + $0xc0] sm:$0xff] %v3225_v1  ;;  %v3228_v12 = vmax.f32 %v3196_v47, 0.0  ;;  %v3194_v4 = vadd.f32 %v3162_v54, %v3130_v46  ;;  %v3135_v41 = vadd.f32 %v5629_v34, %v3096_v43  ;;  %v3094_v13 = vmul.f32 %v5624_v29, %v3044_v27 }
 0x429   : > { %v4160_v8 = vpop.f32.mrf.mxu0 }
 0x42a   : > { %3260 = vst [vmem:[%s5644_s1 + $0xd8] sm:$0xff] %v3228_v12  ;;  %v3226_v55 = vmax.f32 %v3194_v4, 0.0  ;;  %v3199_v26 = vadd.f32 %v3167_v7, %v3135_v41  ;;  %v3133_v48 = vadd.f32 %v5629_v34, %v3094_v13  ;;  %v3097_v9 = vmul.f32 %v4160_v8, %v5624_v29 }
 0x42b   : > { %v3047_v61 = vpop.f32.mrf.mxu0 }
 0x42c   : > { %3258 = vst [vmem:[%s5644_s1 + $0xc8] sm:$0xff] %v3226_v55  ;;  %v3231_v59 = vmax.f32 %v3199_v26, 0.0  ;;  %v3197_v5 = vadd.f32 %v3165_v63, %v3133_v48  ;;  %v3136_v49 = vadd.f32 %v5629_v34, %v3097_v9  ;;  %v3095_v28 = vmul.f32 %v5624_v29, %v3047_v61 }
 0x42e   : > { %3263 = vst [vmem:[%s5644_s1 + $0xf0] sm:$0xff] %v3231_v59  ;;  %v3229_v15 = vmax.f32 %v3197_v5, 0.0  ;;  %v3200_v30 = vadd.f32 %v3168_v53, %v3136_v49  ;;  %v3134_v25 = vadd.f32 %v5629_v34, %v3095_v28 }
 0x430   : > { %3261 = vst [vmem:[%s5644_s1 + $0xe0] sm:$0xff] %v3229_v15  ;;  %v3232_v35 = vmax.f32 %v3200_v30, 0.0  ;;  %v3198_v52 = vadd.f32 %v3166_v56, %v3134_v25 }
 0x432   : > { %3264 = vst [vmem:[%s5644_s1 + $0xf8] sm:$0xff] %v3232_v35  ;;  %v3230_v29 = vmax.f32 %v3198_v52, 0.0 }
 0x434   : > { %3262 = vst [vmem:[%s5644_s1 + $0xe8] sm:$0xff] %v3230_v29 }
 0x435   : > { %4469 = shalt.err (!%p4466_p9)
}
 0x436   : > { %s4470_s23 = scalar_lea.hbm %s5766_s18, 4096  ;;  %s4474_s28 = scalar_lea.hbm %s5823_s10, 8192 }
 0x437   : > { %p4471_p1 = scmp.ne.s32.totalorder %s5766_s18, %s4470_s23  ;;  %p4475_p11 = scmp.lt.s32.totalorder %s5766_s18, %s5823_s10 }
 0x438   : > { %p4476_p13 = scmp.lt.s32.totalorder %s4474_s28, %s4470_s23 }
 0x439   : > { %p4472_p8 = pnand %p4471_p1, %p5900_p6 }
 0x43a   : > { %p4477_p2 = por %p4476_p13, %p4475_p11 }
 0x43b   : > { %p4473_p10 = pneg %p4472_p8 }
 0x43d   : > { %p4478_p4 = pnand %p4477_p2, %p4473_p10 }
 0x43f   : > { %4481 = shalt.err (!%p4478_p4)
}
 0x440   : > { %s4541_s21 = smov 128   ;;  %s4542_s29 = smov 8  }
 0x441   : > { %4191 = dma.vmem_to_hbm [thread:$0]  (%p5900_p6), %s5768_s19, 4096, %s5766_s18, %s3266_s11, %s4541_s21, %s4541_s21, %s4542_s29  }
 0x442 PF: > { %s3294_s24 = sand.u32 1, %s4516_s13   ;;  %p5901_p12 = scmp.ne.s32.totalorder %s5832_s20, 0 }
 0x443   : > { %p5902_p0 = scmp.ge.s32.totalorder %s4528_s16, 2  ;;  %s3295_s17 = scalar_lea.sflag [#allocation5], %s3294_s24 }
 0x445   : > { %p4208_p5 = pnand %p5902_p0, %p5901_p12 }
 0x447   : > { %p4209_p3 = pneg %p4208_p5 }
 0x449   : > { %4511 = dma.done.wait (%p4209_p3), %s3295_s17, 4096  }
 0x44a   : > { %4513 = vsyncadd (%p4209_p3), %s3295_s17, 4294963200  ;;  %s5903_s12 = sld [smem:[#allocation16_spill]]  ;;  %p25_p7 = scmp.ge.s32.totalorder %s4678_s26, 4  }
 0x44b   : > { %s5904_s13 = smov %s4520_s14  ;;  %s5905_s14 = smov %s4524_s15 }
 0x44c   : > { %s5907_s16 = smov %s4678_s26  ;;  %27 = sbr.rel (!%p25_p7) target bundleno = 11 (0xb), region = 119 }
 0x450   : > { %s5906_s15 = smov %s5903_s12 }
 0x451   :  { %3300 = vsyncpa [#allocation4], 1 }
 0x452   :  { %3302 = vsyncpa [#allocation4 + $0x1], 1 }
 0x453   :  { %3303 = vsyncpa [#allocation7], 1 }
 0x454   :  { %3304 = vsyncpa [#allocation10], 1 }
 0x455   :  { %3305 = vsyncpa [#allocation5], 1 }
 0x456   :  { %3307 = vsyncpa [#allocation5 + $0x1], 1 }

</bundles_post_ra>
